<compile_context>
chip_gen: v6e
topology: v6e:2x2x1
jax: 0.10.0
libtpu: 0.0.40
codegen_flags: <defaults>
</compile_context>

<pallas_src>
import functools

import jax
import jax.numpy as jnp
import numpy as np
from jax.experimental import pallas as pl
from jax.experimental.pallas import tpu as pltpu


# ----------------------------------------------------------------------------
# Pallas kernel
# ----------------------------------------------------------------------------
def tensorf_feat_kernel(px_ref, py_ref, pz_ref,
                        bigx_ref, bigy_ref, vz_ref,
                        selY_ref, selZ_ref, fT_ref,
                        out_ref, *, X, Y, Z, R, Rxy):
    TN = out_ref.shape[1]
    bf = jnp.bfloat16

    def axis_weights_T(ix, size):
        """wT[a, n]: bilinear weight of grid row `a` for point n.

        Exactly F.grid_sample bilinear / align_corners=True weights; OOB taps
        never match any iota row, which reproduces padding_mode='zeros'.
        ix: (1, TN) fractional grid index in [0, size-1] space.
        """
        i0 = jnp.floor(ix)
        w1 = ix - i0                                  # (1, TN)
        w0 = 1.0 - w1
        i0i = i0.astype(jnp.int32)
        rows = jax.lax.broadcasted_iota(jnp.int32, (size, TN), 0)
        oh0 = (rows == i0i).astype(jnp.float32)       # (size, TN)
        oh1 = (rows == (i0i + 1)).astype(jnp.float32)
        return w0 * oh0 + w1 * oh1                    # (size, TN) f32

    wxT = axis_weights_T(px_ref[...], X)              # (X, TN)
    wyT = axis_weights_T(py_ref[...], Y)              # (Y, TN)
    wzT = axis_weights_T(pz_ref[...], Z)              # (Z, TN)

    # --- first interpolation axis: one fused MXU matmul per weight operand ---
    ax = jnp.dot(bigx_ref[...], wxT.astype(bf),
                 preferred_element_type=jnp.float32)  # (Rxy*Y + R*Z + R, TN)
    ay = jnp.dot(bigy_ref[...], wyT.astype(bf),
                 preferred_element_type=jnp.float32)  # (R*Z + R, TN)
    z_feat = jnp.dot(vz_ref[...], wzT.astype(bf),
                     preferred_element_type=jnp.float32)  # (Rxy, TN)

    acc_xy = ax[0:Rxy * Y, :]                         # (Rxy*Y, TN)
    acc_xz = ax[Rxy * Y:Rxy * Y + R * Z, :]           # (R*Z, TN)
    x_feat = ax[Rxy * Y + R * Z:, :]                  # (R, TN)
    acc_yz = ay[0:R * Z, :]                           # (R*Z, TN)
    y_feat = ay[R * Z:, :]                            # (R, TN)

    # --- second interpolation axis: elementwise weight + MXU block-diag reduce
    wyT_tiled = jnp.tile(wyT, (Rxy, 1))               # (Rxy*Y, TN)
    wzT_tiled = jnp.tile(wzT, (R, 1))                 # (R*Z, TN)
    xy_feat = jnp.dot(selY_ref[...], (acc_xy * wyT_tiled).astype(bf),
                      preferred_element_type=jnp.float32)   # (Rxy, TN)
    xz_feat = jnp.dot(selZ_ref[...], (acc_xz * wzT_tiled).astype(bf),
                      preferred_element_type=jnp.float32)   # (R, TN)
    yz_feat = jnp.dot(selZ_ref[...], (acc_yz * wzT_tiled).astype(bf),
                      preferred_element_type=jnp.float32)   # (R, TN)

    # --- feature projection: cat([xy*z, xz*y, yz*x]) @ f_vec, transposed -----
    featT = jnp.concatenate(
        [xy_feat * z_feat, xz_feat * y_feat, yz_feat * x_feat], axis=0)
    outT = jnp.dot(fT_ref[...], featT.astype(bf),
                   preferred_element_type=jnp.float32)       # (C, TN)
    out_ref[...] = outT.astype(out_ref.dtype)


# ----------------------------------------------------------------------------
# Plain-JAX glue
# ----------------------------------------------------------------------------
def init_params(key, channels, world_size, n_comp, n_comp_xy=None):
    X, Y, Z = world_size
    R = n_comp
    Rxy = n_comp_xy if n_comp_xy is not None else R
    ks = jax.random.split(key, 7)
    params = {
        "xy_plane": jax.random.normal(ks[0], (Rxy, X, Y), jnp.float32) * 0.1,
        "xz_plane": jax.random.normal(ks[1], (R, X, Z), jnp.float32) * 0.1,
        "yz_plane": jax.random.normal(ks[2], (R, Y, Z), jnp.float32) * 0.1,
        "x_vec": jax.random.normal(ks[3], (R, X), jnp.float32) * 0.1,
        "y_vec": jax.random.normal(ks[4], (R, Y), jnp.float32) * 0.1,
        "z_vec": jax.random.normal(ks[5], (Rxy, Z), jnp.float32) * 0.1,
    }
    # kaiming_uniform_(a=sqrt(5)) on [R+R+Rxy, channels] -> U(-1/sqrt(C), 1/sqrt(C))
    bound = 1.0 / (channels ** 0.5)
    params["f_vec"] = jax.random.uniform(
        ks[6], (Rxy + 2 * R, channels), jnp.float32, minval=-bound, maxval=bound)
    return params


def tensorf_forward(params, xyz, xyz_min, xyz_max, channels, tn=512):
    shape = xyz.shape[:-1]
    pts = xyz.reshape(-1, 3).astype(jnp.float32)
    N = pts.shape[0]
    ind_norm = (pts - xyz_min) / (xyz_max - xyz_min) * 2.0 - 1.0

    Rxy, X, Y = params["xy_plane"].shape
    R, _, Z = params["xz_plane"].shape
    C = channels

    # fractional grid indices (align_corners=True): ix = (g + 1)/2 * (size - 1)
    sizes = jnp.array([X, Y, Z], jnp.float32)
    ix = (ind_norm + 1.0) * 0.5 * (sizes - 1.0)       # (N, 3)

    Np = ((N + tn - 1) // tn) * tn
    pad = Np - N
    if pad:
        ix = jnp.pad(ix, ((0, pad), (0, 0)))
    px = ix[:, 0].reshape(1, Np)
    py = ix[:, 1].reshape(1, Np)
    pz = ix[:, 2].reshape(1, Np)

    bf = jnp.bfloat16
    # repack planes (R, A, B) -> (R*B, A) so the first interpolation axis A is
    # the MXU contraction dim; fuse operands that share a weight matrix.
    pxyT = jnp.transpose(params["xy_plane"], (0, 2, 1)).reshape(Rxy * Y, X)
    pxzT = jnp.transpose(params["xz_plane"], (0, 2, 1)).reshape(R * Z, X)
    pyzT = jnp.transpose(params["yz_plane"], (0, 2, 1)).reshape(R * Z, Y)
    bigx = jnp.concatenate([pxyT, pxzT, params["x_vec"]], axis=0).astype(bf)
    bigy = jnp.concatenate([pyzT, params["y_vec"]], axis=0).astype(bf)
    vzT = params["z_vec"].astype(bf)                                   # (Rxy, Z)
    # block-diagonal selection matrices for the second-axis reduction on MXU
    selY = jnp.kron(jnp.eye(Rxy, dtype=jnp.float32),
                    jnp.ones((1, Y), jnp.float32)).astype(bf)          # (Rxy, Rxy*Y)
    selZ = jnp.kron(jnp.eye(R, dtype=jnp.float32),
                    jnp.ones((1, Z), jnp.float32)).astype(bf)          # (R, R*Z)
    fT = params["f_vec"].T.astype(bf)                                  # (C, Rxy+2R)

    kernel = functools.partial(tensorf_feat_kernel,
                               X=X, Y=Y, Z=Z, R=R, Rxy=Rxy)
    out = pl.pallas_call(
        kernel,
        out_shape=jax.ShapeDtypeStruct((C, Np), jnp.float32),
        grid=(Np // tn,),
        in_specs=[
            pl.BlockSpec((1, tn), lambda i: (0, i)),                   # px
            pl.BlockSpec((1, tn), lambda i: (0, i)),                   # py
            pl.BlockSpec((1, tn), lambda i: (0, i)),                   # pz
            pl.BlockSpec((Rxy * Y + R * Z + R, X), lambda i: (0, 0)),  # bigx
            pl.BlockSpec((R * Z + R, Y), lambda i: (0, 0)),            # bigy
            pl.BlockSpec((Rxy, Z), lambda i: (0, 0)),                  # z_vec
            pl.BlockSpec((Rxy, Rxy * Y), lambda i: (0, 0)),            # selY
            pl.BlockSpec((R, R * Z), lambda i: (0, 0)),                # selZ
            pl.BlockSpec((C, Rxy + 2 * R), lambda i: (0, 0)),          # f_vec^T
        ],
        out_specs=pl.BlockSpec((C, tn), lambda i: (0, i)),             # lane-dense
        compiler_params=pltpu.CompilerParams(
            dimension_semantics=("parallel",),
            vmem_limit_bytes=32 * 1024 * 1024),
    )(px, py, pz, bigx, bigy, vzT, selY, selZ, fT)

    return out[:, :N].T.reshape(*shape, C)


# ----------------------------------------------------------------------------
# Pure-JAX reference (gather-based grid_sample, f32) for validation
# ----------------------------------------------------------------------------
def _ref_sample_plane(plane, ga, gb):
    R_, A, B = plane.shape
    ia = (ga + 1.0) * 0.5 * (A - 1)
    ib = (gb + 1.0) * 0.5 * (B - 1)
    a0 = jnp.floor(ia)
    b0 = jnp.floor(ib)
    wa1 = ia - a0
    wb1 = ib - b0
    a0i = a0.astype(jnp.int32)
    b0i = b0.astype(jnp.int32)

    def g(ai, bi):
        valid = (ai >= 0) & (ai < A) & (bi >= 0) & (bi < B)
        vals = plane[:, jnp.clip(ai, 0, A - 1), jnp.clip(bi, 0, B - 1)]
        return jnp.where(valid[None, :], vals, 0.0)

    out = (g(a0i, b0i) * ((1 - wa1) * (1 - wb1))[None]
           + g(a0i + 1, b0i) * (wa1 * (1 - wb1))[None]
           + g(a0i, b0i + 1) * ((1 - wa1) * wb1)[None]
           + g(a0i + 1, b0i + 1) * (wa1 * wb1)[None])
    return out.T


def _ref_sample_vec(vec, ga):
    R_, A = vec.shape
    ia = (ga + 1.0) * 0.5 * (A - 1)
    a0 = jnp.floor(ia)
    wa1 = ia - a0
    a0i = a0.astype(jnp.int32)

    def g(ai):
        valid = (ai >= 0) & (ai < A)
        return jnp.where(valid[None, :], vec[:, jnp.clip(ai, 0, A - 1)], 0.0)

    return (g(a0i) * (1 - wa1)[None] + g(a0i + 1) * wa1[None]).T


def ref_forward(params, xyz, xyz_min, xyz_max, channels):
    shape = xyz.shape[:-1]
    pts = xyz.reshape(-1, 3).astype(jnp.float32)
    ind = (pts - xyz_min) / (xyz_max - xyz_min) * 2.0 - 1.0
    gx, gy, gz = ind[:, 0], ind[:, 1], ind[:, 2]
    xy = _ref_sample_plane(params["xy_plane"], gx, gy)
    xz = _ref_sample_plane(params["xz_plane"], gx, gz)
    yz = _ref_sample_plane(params["yz_plane"], gy, gz)
    xv = _ref_sample_vec(params["x_vec"], gx)
    yv = _ref_sample_vec(params["y_vec"], gy)
    zv = _ref_sample_vec(params["z_vec"], gz)
    feat = jnp.concatenate([xy * zv, xz * yv, yz * xv], axis=-1) @ params["f_vec"]
    return feat.reshape(*shape, channels)


# ----------------------------------------------------------------------------
if __name__ == "__main__":
    key = jax.random.PRNGKey(0)
    channels = 4
    world_size = (16, 24, 32)          # (X, Y, Z)
    config = {"n_comp": 8}
    xyz_min = jnp.array([-1.0, -1.0, -1.0], jnp.float32)
    xyz_max = jnp.array([1.0, 1.0, 1.0], jnp.float32)

    kp, kx = jax.random.split(key)
    params = init_params(kp, channels, world_size, config["n_comp"])

    # query points: shape (2, 128, 3) -> output (2, 128, channels)
    xyz = jax.random.uniform(kx, (2, 128, 3), jnp.float32,
                             minval=-0.95, maxval=0.95)

    out = tensorf_forward(params, xyz, xyz_min, xyz_max, channels)
    out = jax.block_until_ready(out)

    ref = ref_forward(params, xyz, xyz_min, xyz_max, channels)
    assert out.shape == (2, 128, channels)
    # bf16 operands (planes/vectors/f_vec + matmul inputs) -> relaxed tolerance
    np.testing.assert_allclose(np.asarray(out), np.asarray(ref),
                               rtol=2e-2, atol=2e-2)
    print("KERNEL_OK")
</pallas_src>

<mosaic_0001>
module attributes {stable_mosaic.version = 11 : i64} {
  func.func @tensorf_feat_kernel(%arg0: i32, %arg1: memref<1x512xf32, #tpu.memory_space<vmem>>, %arg2: memref<1x512xf32, #tpu.memory_space<vmem>>, %arg3: memref<1x512xf32, #tpu.memory_space<vmem>>, %arg4: memref<456x16xbf16, #tpu.memory_space<vmem>>, %arg5: memref<264x24xbf16, #tpu.memory_space<vmem>>, %arg6: memref<8x32xbf16, #tpu.memory_space<vmem>>, %arg7: memref<8x192xbf16, #tpu.memory_space<vmem>>, %arg8: memref<8x256xbf16, #tpu.memory_space<vmem>>, %arg9: memref<4x24xbf16, #tpu.memory_space<vmem>>, %arg10: memref<4x512xf32, #tpu.memory_space<vmem>>) attributes {dimension_semantics = [#tpu.dimension_semantics<parallel>], iteration_bounds = array<i64: 1>, scalar_prefetch = 0 : i64, scratch_operands = 0 : i64, tpu.core_type = #tpu.core_type<tc>, window_params = [{transform_indices = @transform_0, window_bounds = array<i64: 1, 512>}, {transform_indices = @transform_1, window_bounds = array<i64: 1, 512>}, {transform_indices = @transform_2, window_bounds = array<i64: 1, 512>}, {pipeline_mode = #tpu.pipeline_mode<synchronous>, transform_indices = @transform_3, window_bounds = array<i64: 456, 16>}, {pipeline_mode = #tpu.pipeline_mode<synchronous>, transform_indices = @transform_4, window_bounds = array<i64: 264, 24>}, {pipeline_mode = #tpu.pipeline_mode<synchronous>, transform_indices = @transform_5, window_bounds = array<i64: 8, 32>}, {pipeline_mode = #tpu.pipeline_mode<synchronous>, transform_indices = @transform_6, window_bounds = array<i64: 8, 192>}, {pipeline_mode = #tpu.pipeline_mode<synchronous>, transform_indices = @transform_7, window_bounds = array<i64: 8, 256>}, {pipeline_mode = #tpu.pipeline_mode<synchronous>, transform_indices = @transform_8, window_bounds = array<i64: 4, 24>}, {transform_indices = @transform_9, window_bounds = array<i64: 4, 512>}]} {
    %c0 = arith.constant 0 : index
    %c0_0 = arith.constant 0 : index
    %0 = vector.load %arg1[%c0, %c0_0] : memref<1x512xf32, #tpu.memory_space<vmem>>, vector<1x512xf32>
    %1 = math.floor %0 : vector<1x512xf32>
    %2 = arith.subf %0, %1 : vector<1x512xf32>
    %cst = arith.constant 1.000000e+00 : f32
    %3 = vector.broadcast %cst : f32 to vector<1x512xf32>
    %4 = arith.subf %3, %2 : vector<1x512xf32>
    %5 = arith.fptosi %1 : vector<1x512xf32> to vector<1x512xi32>
    %6 = tpu.iota {dimensions = array<i32: 0>} : vector<16x512xi32>
    %7 = vector.broadcast %5 : vector<1x512xi32> to vector<16x512xi32>
    %8 = arith.cmpi eq, %6, %7 : vector<16x512xi32>
    %9 = arith.extui %8 : vector<16x512xi1> to vector<16x512xi32>
    %10 = arith.sitofp %9 : vector<16x512xi32> to vector<16x512xf32>
    %c1_i32 = arith.constant 1 : i32
    %11 = vector.broadcast %c1_i32 : i32 to vector<1x512xi32>
    %12 = arith.addi %5, %11 : vector<1x512xi32>
    %13 = vector.broadcast %12 : vector<1x512xi32> to vector<16x512xi32>
    %14 = arith.cmpi eq, %6, %13 : vector<16x512xi32>
    %15 = arith.extui %14 : vector<16x512xi1> to vector<16x512xi32>
    %16 = arith.sitofp %15 : vector<16x512xi32> to vector<16x512xf32>
    %17 = vector.broadcast %4 : vector<1x512xf32> to vector<16x512xf32>
    %18 = arith.mulf %17, %10 : vector<16x512xf32>
    %19 = vector.broadcast %2 : vector<1x512xf32> to vector<16x512xf32>
    %20 = arith.mulf %19, %16 : vector<16x512xf32>
    %21 = arith.addf %18, %20 : vector<16x512xf32>
    %c0_1 = arith.constant 0 : index
    %c0_2 = arith.constant 0 : index
    %22 = vector.load %arg2[%c0_1, %c0_2] : memref<1x512xf32, #tpu.memory_space<vmem>>, vector<1x512xf32>
    %23 = math.floor %22 : vector<1x512xf32>
    %24 = arith.subf %22, %23 : vector<1x512xf32>
    %cst_3 = arith.constant 1.000000e+00 : f32
    %25 = vector.broadcast %cst_3 : f32 to vector<1x512xf32>
    %26 = arith.subf %25, %24 : vector<1x512xf32>
    %27 = arith.fptosi %23 : vector<1x512xf32> to vector<1x512xi32>
    %28 = tpu.iota {dimensions = array<i32: 0>} : vector<24x512xi32>
    %29 = vector.broadcast %27 : vector<1x512xi32> to vector<24x512xi32>
    %30 = arith.cmpi eq, %28, %29 : vector<24x512xi32>
    %31 = arith.extui %30 : vector<24x512xi1> to vector<24x512xi32>
    %32 = arith.sitofp %31 : vector<24x512xi32> to vector<24x512xf32>
    %c1_i32_4 = arith.constant 1 : i32
    %33 = vector.broadcast %c1_i32_4 : i32 to vector<1x512xi32>
    %34 = arith.addi %27, %33 : vector<1x512xi32>
    %35 = vector.broadcast %34 : vector<1x512xi32> to vector<24x512xi32>
    %36 = arith.cmpi eq, %28, %35 : vector<24x512xi32>
    %37 = arith.extui %36 : vector<24x512xi1> to vector<24x512xi32>
    %38 = arith.sitofp %37 : vector<24x512xi32> to vector<24x512xf32>
    %39 = vector.broadcast %26 : vector<1x512xf32> to vector<24x512xf32>
    %40 = arith.mulf %39, %32 : vector<24x512xf32>
    %41 = vector.broadcast %24 : vector<1x512xf32> to vector<24x512xf32>
    %42 = arith.mulf %41, %38 : vector<24x512xf32>
    %43 = arith.addf %40, %42 : vector<24x512xf32>
    %c0_5 = arith.constant 0 : index
    %c0_6 = arith.constant 0 : index
    %44 = vector.load %arg3[%c0_5, %c0_6] : memref<1x512xf32, #tpu.memory_space<vmem>>, vector<1x512xf32>
    %45 = math.floor %44 : vector<1x512xf32>
    %46 = arith.subf %44, %45 : vector<1x512xf32>
    %cst_7 = arith.constant 1.000000e+00 : f32
    %47 = vector.broadcast %cst_7 : f32 to vector<1x512xf32>
    %48 = arith.subf %47, %46 : vector<1x512xf32>
    %49 = arith.fptosi %45 : vector<1x512xf32> to vector<1x512xi32>
    %50 = tpu.iota {dimensions = array<i32: 0>} : vector<32x512xi32>
    %51 = vector.broadcast %49 : vector<1x512xi32> to vector<32x512xi32>
    %52 = arith.cmpi eq, %50, %51 : vector<32x512xi32>
    %53 = arith.extui %52 : vector<32x512xi1> to vector<32x512xi32>
    %54 = arith.sitofp %53 : vector<32x512xi32> to vector<32x512xf32>
    %c1_i32_8 = arith.constant 1 : i32
    %55 = vector.broadcast %c1_i32_8 : i32 to vector<1x512xi32>
    %56 = arith.addi %49, %55 : vector<1x512xi32>
    %57 = vector.broadcast %56 : vector<1x512xi32> to vector<32x512xi32>
    %58 = arith.cmpi eq, %50, %57 : vector<32x512xi32>
    %59 = arith.extui %58 : vector<32x512xi1> to vector<32x512xi32>
    %60 = arith.sitofp %59 : vector<32x512xi32> to vector<32x512xf32>
    %61 = vector.broadcast %48 : vector<1x512xf32> to vector<32x512xf32>
    %62 = arith.mulf %61, %54 : vector<32x512xf32>
    %63 = vector.broadcast %46 : vector<1x512xf32> to vector<32x512xf32>
    %64 = arith.mulf %63, %60 : vector<32x512xf32>
    %65 = arith.addf %62, %64 : vector<32x512xf32>
    %c0_9 = arith.constant 0 : index
    %c0_10 = arith.constant 0 : index
    %66 = vector.load %arg4[%c0_9, %c0_10] : memref<456x16xbf16, #tpu.memory_space<vmem>>, vector<456x16xbf16>
    %67 = arith.truncf %21 : vector<16x512xf32> to vector<16x512xbf16>
    %cst_11 = arith.constant dense<0.000000e+00> : vector<456x512xf32>
    %68 = tpu.matmul %66, %67, %cst_11 {dimension_numbers = #tpu.dot_dimension_numbers<[1], [0], [0], [1], [0, 0, 1, 1], [], []>} : vector<456x16xbf16>, vector<16x512xbf16>, vector<456x512xf32> -> vector<456x512xf32>
    %c0_12 = arith.constant 0 : index
    %c0_13 = arith.constant 0 : index
    %69 = vector.load %arg5[%c0_12, %c0_13] : memref<264x24xbf16, #tpu.memory_space<vmem>>, vector<264x24xbf16>
    %70 = arith.truncf %43 : vector<24x512xf32> to vector<24x512xbf16>
    %cst_14 = arith.constant dense<0.000000e+00> : vector<264x512xf32>
    %71 = tpu.matmul %69, %70, %cst_14 {dimension_numbers = #tpu.dot_dimension_numbers<[1], [0], [0], [1], [0, 0, 1, 1], [], []>} : vector<264x24xbf16>, vector<24x512xbf16>, vector<264x512xf32> -> vector<264x512xf32>
    %c0_15 = arith.constant 0 : index
    %c0_16 = arith.constant 0 : index
    %72 = vector.load %arg6[%c0_15, %c0_16] : memref<8x32xbf16, #tpu.memory_space<vmem>>, vector<8x32xbf16>
    %73 = arith.truncf %65 : vector<32x512xf32> to vector<32x512xbf16>
    %cst_17 = arith.constant dense<0.000000e+00> : vector<8x512xf32>
    %74 = tpu.matmul %72, %73, %cst_17 {dimension_numbers = #tpu.dot_dimension_numbers<[1], [0], [0], [1], [0, 0, 1, 1], [], []>} : vector<8x32xbf16>, vector<32x512xbf16>, vector<8x512xf32> -> vector<8x512xf32>
    %75 = vector.extract_strided_slice %68 {offsets = [0, 0], sizes = [192, 512], strides = [1, 1]} : vector<456x512xf32> to vector<192x512xf32>
    %76 = vector.extract_strided_slice %68 {offsets = [192, 0], sizes = [256, 512], strides = [1, 1]} : vector<456x512xf32> to vector<256x512xf32>
    %77 = vector.extract_strided_slice %68 {offsets = [448, 0], sizes = [8, 512], strides = [1, 1]} : vector<456x512xf32> to vector<8x512xf32>
    %78 = vector.extract_strided_slice %71 {offsets = [0, 0], sizes = [256, 512], strides = [1, 1]} : vector<264x512xf32> to vector<256x512xf32>
    %79 = vector.extract_strided_slice %71 {offsets = [256, 0], sizes = [8, 512], strides = [1, 1]} : vector<264x512xf32> to vector<8x512xf32>
    %80 = tpu.concatenate %43, %43, %43, %43, %43, %43, %43, %43 in 0 : vector<24x512xf32>, vector<24x512xf32>, vector<24x512xf32>, vector<24x512xf32>, vector<24x512xf32>, vector<24x512xf32>, vector<24x512xf32>, vector<24x512xf32> -> vector<192x512xf32>
    %81 = tpu.concatenate %65, %65, %65, %65, %65, %65, %65, %65 in 0 : vector<32x512xf32>, vector<32x512xf32>, vector<32x512xf32>, vector<32x512xf32>, vector<32x512xf32>, vector<32x512xf32>, vector<32x512xf32>, vector<32x512xf32> -> vector<256x512xf32>
    %c0_18 = arith.constant 0 : index
    %c0_19 = arith.constant 0 : index
    %82 = vector.load %arg7[%c0_18, %c0_19] : memref<8x192xbf16, #tpu.memory_space<vmem>>, vector<8x192xbf16>
    %83 = arith.mulf %75, %80 : vector<192x512xf32>
    %84 = arith.truncf %83 : vector<192x512xf32> to vector<192x512xbf16>
    %cst_20 = arith.constant dense<0.000000e+00> : vector<8x512xf32>
    %85 = tpu.matmul %82, %84, %cst_20 {dimension_numbers = #tpu.dot_dimension_numbers<[1], [0], [0], [1], [0, 0, 1, 1], [], []>} : vector<8x192xbf16>, vector<192x512xbf16>, vector<8x512xf32> -> vector<8x512xf32>
    %c0_21 = arith.constant 0 : index
    %c0_22 = arith.constant 0 : index
    %86 = vector.load %arg8[%c0_21, %c0_22] : memref<8x256xbf16, #tpu.memory_space<vmem>>, vector<8x256xbf16>
    %87 = arith.mulf %76, %81 : vector<256x512xf32>
    %88 = arith.truncf %87 : vector<256x512xf32> to vector<256x512xbf16>
    %cst_23 = arith.constant dense<0.000000e+00> : vector<8x512xf32>
    %89 = tpu.matmul %86, %88, %cst_23 {dimension_numbers = #tpu.dot_dimension_numbers<[1], [0], [0], [1], [0, 0, 1, 1], [], []>} : vector<8x256xbf16>, vector<256x512xbf16>, vector<8x512xf32> -> vector<8x512xf32>
    %c0_24 = arith.constant 0 : index
    %c0_25 = arith.constant 0 : index
    %90 = vector.load %arg8[%c0_24, %c0_25] : memref<8x256xbf16, #tpu.memory_space<vmem>>, vector<8x256xbf16>
    %91 = arith.mulf %78, %81 : vector<256x512xf32>
    %92 = arith.truncf %91 : vector<256x512xf32> to vector<256x512xbf16>
    %cst_26 = arith.constant dense<0.000000e+00> : vector<8x512xf32>
    %93 = tpu.matmul %90, %92, %cst_26 {dimension_numbers = #tpu.dot_dimension_numbers<[1], [0], [0], [1], [0, 0, 1, 1], [], []>} : vector<8x256xbf16>, vector<256x512xbf16>, vector<8x512xf32> -> vector<8x512xf32>
    %94 = arith.mulf %85, %74 : vector<8x512xf32>
    %95 = arith.mulf %89, %79 : vector<8x512xf32>
    %96 = arith.mulf %93, %77 : vector<8x512xf32>
    %97 = tpu.concatenate %94, %95, %96 in 0 : vector<8x512xf32>, vector<8x512xf32>, vector<8x512xf32> -> vector<24x512xf32>
    %c0_27 = arith.constant 0 : index
    %c0_28 = arith.constant 0 : index
    %98 = vector.load %arg9[%c0_27, %c0_28] : memref<4x24xbf16, #tpu.memory_space<vmem>>, vector<4x24xbf16>
    %99 = arith.truncf %97 : vector<24x512xf32> to vector<24x512xbf16>
    %cst_29 = arith.constant dense<0.000000e+00> : vector<4x512xf32>
    %100 = tpu.matmul %98, %99, %cst_29 {dimension_numbers = #tpu.dot_dimension_numbers<[1], [0], [0], [1], [0, 0, 1, 1], [], []>} : vector<4x24xbf16>, vector<24x512xbf16>, vector<4x512xf32> -> vector<4x512xf32>
    %c0_30 = arith.constant 0 : index
    %c0_31 = arith.constant 0 : index
    %101 = vector.load %arg10[%c0_30, %c0_31] : memref<4x512xf32, #tpu.memory_space<vmem>>, vector<4x512xf32>
    tpu.vector_store %arg10[%c0_30, %c0_31], %100 {strides = array<i32>} : memref<4x512xf32, #tpu.memory_space<vmem>>, vector<4x512xf32>,
    return
  }
  func.func @transform_0(%arg0: i32) -> (i32, i32) {
    %c0_i32 = arith.constant 0 : i32
    %c0_i32_0 = arith.constant 0 : i32
    return %c0_i32, %arg0 : i32, i32
  }
  func.func @transform_1(%arg0: i32) -> (i32, i32) {
    %c0_i32 = arith.constant 0 : i32
    %c0_i32_0 = arith.constant 0 : i32
    return %c0_i32, %arg0 : i32, i32
  }
  func.func @transform_2(%arg0: i32) -> (i32, i32) {
    %c0_i32 = arith.constant 0 : i32
    %c0_i32_0 = arith.constant 0 : i32
    return %c0_i32, %arg0 : i32, i32
  }
  func.func @transform_3(%arg0: i32) -> (i32, i32) {
    %c0_i32 = arith.constant 0 : i32
    %c0_i32_0 = arith.constant 0 : i32
    %c0_i32_1 = arith.constant 0 : i32
    return %c0_i32, %c0_i32_0 : i32, i32
  }
  func.func @transform_4(%arg0: i32) -> (i32, i32) {
    %c0_i32 = arith.constant 0 : i32
    %c0_i32_0 = arith.constant 0 : i32
    %c0_i32_1 = arith.constant 0 : i32
    return %c0_i32, %c0_i32_0 : i32, i32
  }
  func.func @transform_5(%arg0: i32) -> (i32, i32) {
    %c0_i32 = arith.constant 0 : i32
    %c0_i32_0 = arith.constant 0 : i32
    %c0_i32_1 = arith.constant 0 : i32
    return %c0_i32, %c0_i32_0 : i32, i32
  }
  func.func @transform_6(%arg0: i32) -> (i32, i32) {
    %c0_i32 = arith.constant 0 : i32
    %c0_i32_0 = arith.constant 0 : i32
    %c0_i32_1 = arith.constant 0 : i32
    return %c0_i32, %c0_i32_0 : i32, i32
  }
  func.func @transform_7(%arg0: i32) -> (i32, i32) {
    %c0_i32 = arith.constant 0 : i32
    %c0_i32_0 = arith.constant 0 : i32
    %c0_i32_1 = arith.constant 0 : i32
    return %c0_i32, %c0_i32_0 : i32, i32
  }
  func.func @transform_8(%arg0: i32) -> (i32, i32) {
    %c0_i32 = arith.constant 0 : i32
    %c0_i32_0 = arith.constant 0 : i32
    %c0_i32_1 = arith.constant 0 : i32
    return %c0_i32, %c0_i32_0 : i32, i32
  }
  func.func @transform_9(%arg0: i32) -> (i32, i32) {
    %c0_i32 = arith.constant 0 : i32
    %c0_i32_0 = arith.constant 0 : i32
    return %c0_i32, %arg0 : i32, i32
  }
}

</mosaic_0001>

<bundles_post_ra>
// kernel: tpu_custom_call.1
= control target key start
LH: loop header
LB: loop body
LE: loop exit
PB: predicated region body
PF: predicated region fallthrough
CT: control target
= control target key end

     0   :  { %v39_v1 = vlaneseq  ;;  %v6075_v5 = vmov 0   ;;  %v3464_v26 = vmov 0.0   ;;  %vm807_vm12 = vcmask 130048   ;;  %s6065_s0 = inlined_call_operand.vmem [shape: f32[1,512], index: 0, kind: input, shape index: {}]   ;;  %s6066_s1 = inlined_call_operand.vmem [shape: f32[1,512], index: 1, kind: input, shape index: {}]   ;;  %s6067_s2 = inlined_call_operand.vmem [shape: f32[1,512], index: 2, kind: input, shape index: {}]   ;;  %s6068_s3 = inlined_call_operand.vmem [shape: bf16[456,16], index: 3, kind: input, shape index: {}]   ;;  %s6069_s4 = inlined_call_operand.vmem [shape: bf16[264,24], index: 4, kind: input, shape index: {}]   ;;  %s6070_s5 = inlined_call_operand.vmem [shape: bf16[8,32], index: 5, kind: input, shape index: {}]   ;;  %s6071_s6 = inlined_call_operand.vmem [shape: bf16[8,192], index: 6, kind: input, shape index: {}]   ;;  %s6072_s7 = inlined_call_operand.vmem [shape: bf16[8,256], index: 7, kind: input, shape index: {}]   ;;  %s6073_s8 = inlined_call_operand.vmem [shape: bf16[4,24], index: 8, kind: input, shape index: {}]   ;;  %s6074_s9 = inlined_call_operand.hbm [shape: f32[4,512], index: 9, kind: output, shape index: {}]  }
   0x1   :  { %v34_v0 = vld [vmem:[%s6065_s0] sm:$0xf]  ;;  %927 = vmatprep.mubr.bf16.mxu0 %v6075_v5  ;;  %1248 = vmatprep.mubr.bf16.mxu1 %v6075_v5 }
   0x2   :  { %v378_v2 = vld [vmem:[%s6067_s2] sm:$0xf]  ;;  %v35_v3 = vfloor.f32 %v34_v0  ;;  %v3524_v6 = vshrl.u32 %v39_v1, 7 }
   0x3   :  { %v379_v4 = vfloor.f32 %v378_v2  ;;  %v189_v56 = vld [vmem:[%s6066_s1] sm:$0xf] }
   0x4   :  { %v3526_v7 = vsub.f32 %v34_v0, %v35_v3  ;;  %v3382_v8 = vtrunc.f32 %v35_v3  ;;  %v3529_v9 = vsub.s32 1, %v3524_v6  ;;  %v3532_v11 = vsub.s32 3, %v3524_v6 }
   0x5   :  { %v3386_v10 = vtrunc.f32 %v379_v4  ;;  %v3540_v14 = vadd.s32 8, %v3524_v6  ;;  %v3542_v15 = vsub.f32 %v378_v2, %v379_v4  ;;  %v3552_v19 = vsub.s32 0, %v3524_v6 }
   0x6   :  { %v3535_v12 = vsub.f32 1.0, %v3526_v7  ;;  %v3537_v13 = vcvt.f32.s32 %v3382_v8  ;;  %v160_v20 = vrot.slane %v3526_v7, %v3529_v9  ;;  %v168_v23 = vrot.slane %v3526_v7, %v3532_v11 }
   0x7   :  { %v3556_v21 = vcvt.f32.s32 %v3386_v10  ;;  %v3585_v45 = vsub.f32 1.0, %v3542_v15  ;;  %v156_v54 = vrot.slane %v3526_v7, %v3552_v19  ;;  %v3623_v4 = vrot.slane %v3542_v15, %v3552_v19 }
   0x8   :  { %v49_v16 = vrot.slane %v3537_v13, %v3529_v9  ;;  %v3547_v17 = vadd.s32 1, %v3537_v13  ;;  %v131_v18 = vrot.slane %v3535_v12, %v3529_v9  ;;  %v57_v22 = vrot.slane %v3537_v13, %v3532_v11 }
   0x9   :  { %v139_v29 = vrot.slane %v3535_v12, %v3532_v11  ;;  %v3588_v46 = vadd.s32 1, %v3556_v21  ;;  %v45_v50 = vrot.slane %v3537_v13, %v3552_v19  ;;  %v127_v53 = vrot.slane %v3535_v12, %v3552_v19 }
   0xa   :  { %vm59_vm0 = vcmp.eq.s32.totalorder %v3524_v6, %v49_v16  ;;  %vm63_vm1 = vcmp.eq.s32.totalorder %v3540_v14, %v49_v16  ;;  %v90_v24 = vrot.slane %v3547_v17, %v3529_v9  ;;  %v98_v25 = vrot.slane %v3547_v17, %v3532_v11 }
   0xb   :  { %v3159_v27 = vsel %vm59_vm0, 1.0, %v3464_v26  ;;  %v3163_v28 = vsel %vm63_vm1, 1.0, %v3464_v26  ;;  %vm61_vm2 = vcmp.eq.s32.totalorder %v3524_v6, %v57_v22  ;;  %vm65_vm5 = vcmp.eq.s32.totalorder %v3540_v14, %v57_v22 }
   0xc   :  { %vm100_vm3 = vcmp.eq.s32.totalorder %v3524_v6, %v90_v24  ;;  %vm104_vm4 = vcmp.eq.s32.totalorder %v3540_v14, %v90_v24  ;;  %v145_v30 = vmul.f32 %v3159_v27, %v131_v18  ;;  %v149_v31 = vmul.f32 %v3163_v28, %v131_v18 }
   0xd   :  { %v3167_v32 = vsel %vm100_vm3, 1.0, %v3464_v26  ;;  %v3171_v33 = vsel %vm104_vm4, 1.0, %v3464_v26  ;;  %v3161_v34 = vsel %vm61_vm2, 1.0, %v3464_v26  ;;  %v3165_v37 = vsel %vm65_vm5, 1.0, %v3464_v26 }
   0xe   :  { %v174_v35 = vmul.f32 %v3167_v32, %v160_v20  ;;  %v178_v36 = vmul.f32 %v3171_v33, %v160_v20  ;;  %vm102_vm6 = vcmp.eq.s32.totalorder %v3524_v6, %v98_v25  ;;  %vm106_vm7 = vcmp.eq.s32.totalorder %v3540_v14, %v98_v25  ;;  %v3391_v25 = vld [vmem:[%s6068_s3] sm:$0xff]  }
   0xf   :  { %v3169_v38 = vsel %vm102_vm6, 1.0, %v3464_v26  ;;  %v147_v39 = vmul.f32 %v3161_v34, %v139_v29  ;;  %v151_v40 = vmul.f32 %v3165_v37, %v139_v29  ;;  %v3173_v43 = vsel %vm106_vm7, 1.0, %v3464_v26 }
  0x10   :  { %v182_v41 = vadd.f32 %v174_v35, %v145_v30  ;;  %v186_v42 = vadd.f32 %v178_v36, %v149_v31  ;;  %v176_v44 = vmul.f32 %v3169_v38, %v168_v23  ;;  %v180_v47 = vmul.f32 %v3173_v43, %v168_v23 }
  0x11   :  { %v86_v51 = vrot.slane %v3547_v17, %v3552_v19  ;;  %v3600_v55 = vrot.slane %v3556_v21, %v3552_v19  ;;  %vm58_vm8 = vcmp.eq.s32.totalorder %v3524_v6, %v45_v50  ;;  %vm62_vm9 = vcmp.eq.s32.totalorder %v3540_v14, %v45_v50 }
  0x12   :  { %v661_v48 = vpack.c.bf16 %v186_v42, %v182_v41  ;;  %v184_v49 = vadd.f32 %v176_v44, %v147_v39  ;;  %v188_v52 = vadd.f32 %v180_v47, %v151_v40  ;;  %v3158_v58 = vsel %vm58_vm8, 1.0, %v3464_v26 }
  0x13   :  { %vm99_vm10 = vcmp.eq.s32.totalorder %v3524_v6, %v86_v51  ;;  %vm103_vm11 = vcmp.eq.s32.totalorder %v3540_v14, %v86_v51  ;;  %v3162_v59 = vsel %vm62_vm9, 1.0, %v3464_v26  ;;  %v144_v62 = vmul.f32 %v3158_v58, %v127_v53 }
  0x14   :  { %909 = vmatprep.subr.bf16.mxu0 %v661_v48  ;;  %v663_v57 = vpack.c.bf16 %v188_v52, %v184_v49  ;;  %v3166_v60 = vsel %vm99_vm10, 1.0, %v3464_v26  ;;  %v3170_v61 = vsel %vm103_vm11, 1.0, %v3464_v26  ;;  %v148_v63 = vmul.f32 %v3162_v59, %v127_v53 }
  0x15   :  { %v173_v0 = vmul.f32 %v3166_v60, %v156_v54  ;;  %v177_v1 = vmul.f32 %v3170_v61, %v156_v54  ;;  %v3615_v2 = vrot.slane %v3588_v46, %v3552_v19  ;;  %v3619_v3 = vrot.slane %v3585_v45, %v3552_v19  ;;  %v3392_v54 = vld [vmem:[%s6068_s3 + $0x8] sm:$0xff]  }
  0x16   :  { %1230 = vmatprep.subr.bf16.mxu1 %v663_v57  ;;  %v3626_v10 = vsub.s32 2, %v3524_v6  ;;  %v190_v18 = vfloor.f32 %v189_v56  ;;  %v3665_v42 = vadd.s32 16, %v3524_v6  ;;  %vm1713_vm1 = vcmask 1043456  }
  0x17   :  { %v181_v8 = vadd.f32 %v173_v0, %v144_v62  ;;  %v185_v16 = vadd.f32 %v177_v1, %v148_v63 }
  0x18   :  { %v53_v20 = vrot.slane %v3537_v13, %v3626_v10  ;;  %v94_v22 = vrot.slane %v3547_v17, %v3626_v10  ;;  %v135_v23 = vrot.slane %v3535_v12, %v3626_v10  ;;  %v164_v24 = vrot.slane %v3526_v7, %v3626_v10 }
  0x19   :  { %v660_v27 = vpack.c.bf16 %v185_v16, %v181_v8  ;;  %v3641_v28 = vrot.slane %v3556_v21, %v3626_v10  ;;  %v3645_v13 = vrot.slane %v3588_v46, %v3626_v10  ;;  %v3649_v17 = vrot.slane %v3585_v45, %v3626_v10 }
  0x1a   :  { %vm60_vm13 = vcmp.eq.s32.totalorder %v3524_v6, %v53_v20  ;;  %vm64_vm14 = vcmp.eq.s32.totalorder %v3540_v14, %v53_v20  ;;  %vm101_vm15 = vcmp.eq.s32.totalorder %v3524_v6, %v94_v22  ;;  %vm105_vm0 = vcmp.eq.s32.totalorder %v3540_v14, %v94_v22 }
  0x1b   :  { %910 = vmatpush1.bf16.msra.mxu0 %v660_v27  ;;  %v3160_v7 = vsel %vm60_vm13, 1.0, %v3464_v26  ;;  %v3164_v12 = vsel %vm64_vm14, 1.0, %v3464_v26  ;;  %v3168_v29 = vsel %vm101_vm15, 1.0, %v3464_v26  ;;  %v3172_v30 = vsel %vm105_vm0, 1.0, %v3464_v26 }
  0x1c   :  { %v146_v31 = vmul.f32 %v3160_v7, %v135_v23  ;;  %v150_v32 = vmul.f32 %v3164_v12, %v135_v23  ;;  %v175_v33 = vmul.f32 %v3168_v29, %v164_v24  ;;  %v179_v34 = vmul.f32 %v3172_v30, %v164_v24 }
  0x1d   :  { %v3661_v35 = vrot.slane %v3542_v15, %v3626_v10  ;;  %v191_v36 = vsub.f32 %v189_v56, %v190_v18  ;;  %v3384_v37 = vtrunc.f32 %v190_v18 }
  0x1e   :  { %v183_v38 = vadd.f32 %v175_v33, %v146_v31  ;;  %v187_v39 = vadd.f32 %v179_v34, %v150_v32  ;;  %3259 = vmatmul.mubr.msk.bf16.vlgmr.msra.gmra.mxu0 %vm807_vm12, %v3391_v25 }
  0x1f   :  { %v192_v40 = vsub.f32 1.0, %v191_v36  ;;  %v3385_v41 = vcvt.f32.s32 %v3384_v37  ;;  %v3668_v43 = vrot.slane %v191_v36, %v3529_v9  ;;  %937 = vmatprep.mubr.bf16.mxu0 %v6075_v5  ;;  %v3672_v47 = vrot.slane %v191_v36, %v3532_v11 }
  0x20   :  { %v662_v44 = vpack.c.bf16 %v187_v39, %v183_v38  ;;  %v3675_v48 = vrot.slane %v191_v36, %v3552_v19  ;;  %v3678_v49 = vrot.slane %v191_v36, %v3626_v10 }
  0x21   :  { %v202_v50 = vrot.slane %v3385_v41, %v3529_v9  ;;  %v247_v51 = vadd.s32 1, %v3385_v41  ;;  %v308_v52 = vrot.slane %v192_v40, %v3529_v9  ;;  %v3683_v53 = vrot.slane %v3385_v41, %v3532_v11 }
  0x22   :  { %1231 = vmatpush1.bf16.msra.mxu1 %v662_v44  ;;  %v3689_v56 = vrot.slane %v192_v40, %v3532_v11  ;;  %v3692_v57 = vrot.slane %v3385_v41, %v3552_v19  ;;  %v3695_v58 = vrot.slane %v192_v40, %v3552_v19  ;;  %v3698_v59 = vrot.slane %v3385_v41, %v3626_v10 }
  0x23   :  { %vm220_vm2 = vcmp.eq.s32.totalorder %v3665_v42, %v202_v50  ;;  %v255_v60 = vrot.slane %v247_v51, %v3529_v9  ;;  %vm222_vm3 = vcmp.eq.s32.totalorder %v3665_v42, %v3683_v53  ;;  %v3705_v61 = vrot.slane %v247_v51, %v3532_v11 }
  0x24   :  { %v3183_v62 = vsel %vm220_vm2, 1.0, %v3464_v26  ;;  %v3185_v63 = vsel %vm222_vm3, 1.0, %v3464_v26  ;;  %vm219_vm4 = vcmp.eq.s32.totalorder %v3665_v42, %v3692_v57  ;;  %v3712_v0 = vrot.slane %v247_v51, %v3552_v19 }
  0x25   :  { %3288 = vmatmul.mubr.msk.bf16.vlgmr.msra.gmra.mxu1 %vm807_vm12, %v3391_v25  ;;  %vm273_vm5 = vcmp.eq.s32.totalorder %v3665_v42, %v255_v60  ;;  %v330_v1 = vmul.f32 %v3183_v62, %v308_v52  ;;  %vm275_vm6 = vcmp.eq.s32.totalorder %v3665_v42, %v3705_v61  ;;  %v332_v8 = vmul.f32 %v3185_v63, %v3689_v56 }
  0x26   :  { %v3195_v16 = vsel %vm273_vm5, 1.0, %v3464_v26  ;;  %v3197_v18 = vsel %vm275_vm6, 1.0, %v3464_v26  ;;  %v3182_v20 = vsel %vm219_vm4, 1.0, %v3464_v26  ;;  %vm272_vm7 = vcmp.eq.s32.totalorder %v3665_v42, %v3712_v0  ;;  %1258 = vmatprep.mubr.bf16.mxu1 %v6075_v5  ;;  %3260 = vmatmul.mubr.msk.bf16.gmra.mxu0 %vm807_vm12, %v3392_v54 }
  0x27   :  { %v363_v19 = vmul.f32 %v3195_v16, %v3668_v43  ;;  %v365_v22 = vmul.f32 %v3197_v18, %v3672_v47  ;;  %v3194_v23 = vsel %vm272_vm7, 1.0, %v3464_v26  ;;  %v329_v24 = vmul.f32 %v3182_v20, %v3695_v58  ;;  %947 = vmatprep.mubr.bf16.mxu0 %v6075_v5 }
  0x28   :  { %v362_v25 = vmul.f32 %v3194_v23, %v3675_v48  ;;  %vm221_vm8 = vcmp.eq.s32.totalorder %v3665_v42, %v3698_v59  ;;  %v3735_v27 = vrot.slane %v247_v51, %v3626_v10  ;;  %v3738_v7 = vrot.slane %v192_v40, %v3626_v10 }
  0x29   :  { %v3740_v12 = vadd.f32 %v363_v19, %v330_v1  ;;  %v3742_v29 = vadd.f32 %v365_v22, %v332_v8  ;;  %v3184_v30 = vsel %vm221_vm8, 1.0, %v3464_v26  ;;  %vm212_vm9 = vcmp.eq.s32.totalorder %v3524_v6, %v202_v50 }
  0x2a   :  { %14 = vsyncpa [#allocation3], 0  ;;  %v3746_v31 = vadd.f32 %v362_v25, %v329_v24  ;;  %vm274_vm10 = vcmp.eq.s32.totalorder %v3665_v42, %v3735_v27  ;;  %v331_v32 = vmul.f32 %v3184_v30, %v3738_v7  ;;  %v3393_v10 = vld [vmem:[%s6068_s3 + $0x10] sm:$0xff]   ;;  %vm216_vm11 = vcmp.eq.s32.totalorder %v3540_v14, %v202_v50  ;;  %v3394_v20 = vld [vmem:[%s6068_s3 + $0x18] sm:$0xff]  }
  0x2b   :  { %v1575_v33 = vpack.c.bf16 %v3740_v12, %v3740_v12  ;;  %v1577_v34 = vpack.c.bf16 %v3742_v29, %v3742_v29  ;;  %v3196_v36 = vsel %vm274_vm10, 1.0, %v3464_v26  ;;  %v3175_v37 = vsel %vm212_vm9, 1.0, %v3464_v26 }
  0x2c   :  { %v1574_v38 = vpack.c.bf16 %v3746_v31, %v3746_v31  ;;  %v364_v39 = vmul.f32 %v3196_v36, %v3678_v49  ;;  %v3179_v40 = vsel %vm216_vm11, 1.0, %v3464_v26  ;;  %vm265_vm13 = vcmp.eq.s32.totalorder %v3524_v6, %v255_v60 }
  0x2d   :  { %3334 = vmatprep.subr.msk.bf16.mxu0 %vm1713_vm1, %v1575_v33  ;;  %3352 = vmatprep.subr.msk.bf16.mxu1 %vm1713_vm1, %v1577_v34  ;;  %vm269_vm14 = vcmp.eq.s32.totalorder %v3540_v14, %v255_v60  ;;  %v3187_v41 = vsel %vm265_vm13, 1.0, %v3464_v26  ;;  %v322_v44 = vmul.f32 %v3175_v37, %v308_v52  ;;  %v326_v50 = vmul.f32 %v3179_v40, %v308_v52 }
  0x2e   :  { %v1715_v51 = vsel %vm1713_vm1, %v1574_v38, 0  ;;  %v3771_v62 = vadd.f32 %v364_v39, %v331_v32  ;;  %3289 = vmatmul.mubr.msk.bf16.gmra.mxu1 %vm807_vm12, %v3392_v54  ;;  %3261 = vmatmul.mubr.msk.bf16.gmra.mxu0 %vm807_vm12, %v3393_v10  ;;  %v3191_v63 = vsel %vm269_vm14, 1.0, %v3464_v26  ;;  %v355_v1 = vmul.f32 %v3187_v41, %v3668_v43  ;;  %v3395_v41 = vld [vmem:[%s6068_s3 + $0x20] sm:$0xff]  }
  0x2f   :  { %1739 = vmatpush1.bf16.msra.mxu0 %v1715_v51  ;;  %1268 = vmatprep.mubr.bf16.mxu1 %v6075_v5  ;;  %v359_v60 = vmul.f32 %v3191_v63, %v3668_v43  ;;  %vm214_vm15 = vcmp.eq.s32.totalorder %v3524_v6, %v3683_v53  ;;  %vm218_vm0 = vcmp.eq.s32.totalorder %v3540_v14, %v3683_v53 }
  0x30   :  { %v1576_v52 = vpack.c.bf16 %v3771_v62, %v3771_v62  ;;  %957 = vmatprep.mubr.bf16.mxu0 %v6075_v5  ;;  %v3786_v54 = vadd.f32 %v355_v1, %v322_v44  ;;  %v3177_v8 = vsel %vm214_vm15, 1.0, %v3464_v26  ;;  %v3181_v16 = vsel %vm218_vm0, 1.0, %v3464_v26 }
  0x31   :  { %v3790_v18 = vadd.f32 %v359_v60, %v326_v50  ;;  %vm267_vm2 = vcmp.eq.s32.totalorder %v3524_v6, %v3705_v61  ;;  %vm271_vm3 = vcmp.eq.s32.totalorder %v3540_v14, %v3705_v61  ;;  %v324_v43 = vmul.f32 %v3177_v8, %v3689_v56  ;;  %v3398_v8 = vld [vmem:[%s6068_s3 + $0x38] sm:$0xff]  }
  0x32   :  { %v1721_v53 = vsel %vm1713_vm1, %v1576_v52, 0  ;;  %v3189_v19 = vsel %vm267_vm2, 1.0, %v3464_v26  ;;  %v3193_v22 = vsel %vm271_vm3, 1.0, %v3464_v26  ;;  %v328_v23 = vmul.f32 %v3181_v16, %v3689_v56  ;;  %v3397_v52 = vld [vmem:[%s6068_s3 + $0x30] sm:$0xff]   ;;  %v3399_v16 = vld [vmem:[%s6068_s3 + $0x40] sm:$0xff]  }
  0x33   :  { %1940 = vmatpush1.bf16.msra.mxu1 %v1721_v53  ;;  %v1571_v24 = vpack.c.bf16 %v3790_v18, %v3786_v54  ;;  %v357_v61 = vmul.f32 %v3189_v19, %v3672_v47  ;;  %v361_v25 = vmul.f32 %v3193_v22, %v3672_v47  ;;  %vm211_vm4 = vcmp.eq.s32.totalorder %v3524_v6, %v3692_v57  ;;  %v3401_v53 = vld [vmem:[%s6068_s3 + $0x50] sm:$0xff]   ;;  %v3403_v19 = vld [vmem:[%s6068_s3 + $0x60] sm:$0xff]   ;;  %v3404_v22 = vld [vmem:[%s6068_s3 + $0x68] sm:$0xff]  }
  0x34   :  { %vm215_vm5 = vcmp.eq.s32.totalorder %v3540_v14, %v3692_v57  ;;  %v3174_v30 = vsel %vm211_vm4, 1.0, %v3464_v26  ;;  %vm264_vm6 = vcmp.eq.s32.totalorder %v3524_v6, %v3712_v0  ;;  %vm268_vm7 = vcmp.eq.s32.totalorder %v3540_v14, %v3712_v0 }
  0x35   :  { %1740 = vmatprep.subr.bf16.mxu0 %v1571_v24  ;;  %v3817_v56 = vadd.f32 %v357_v61, %v324_v43  ;;  %v3819_v32 = vadd.f32 %v361_v25, %v328_v23  ;;  %v3178_v47 = vsel %vm215_vm5, 1.0, %v3464_v26  ;;  %v3186_v33 = vsel %vm264_vm6, 1.0, %v3464_v26  ;;  %v3400_v43 = vld [vmem:[%s6068_s3 + $0x48] sm:$0xff]   ;;  %v3405_v23 = vld [vmem:[%s6068_s3 + $0x70] sm:$0xff]   ;;  %v3406_v24 = vld [vmem:[%s6068_s3 + $0x78] sm:$0xff]  }
  0x36   :  { %3290 = vmatmul.mubr.msk.bf16.gmra.mxu1 %vm807_vm12, %v3393_v10  ;;  %3262 = vmatmul.mubr.msk.bf16.gmra.mxu0 %vm807_vm12, %v3394_v20  ;;  %v3190_v57 = vsel %vm268_vm7, 1.0, %v3464_v26  ;;  %v321_v34 = vmul.f32 %v3174_v30, %v3695_v58  ;;  %v325_v36 = vmul.f32 %v3178_v47, %v3695_v58  ;;  %v354_v0 = vmul.f32 %v3186_v33, %v3675_v48 }
  0x37   :  { %1278 = vmatprep.mubr.bf16.mxu1 %v6075_v5  ;;  %967 = vmatprep.mubr.bf16.mxu0 %v6075_v5  ;;  %v1573_v37 = vpack.c.bf16 %v3819_v32, %v3817_v56  ;;  %v358_v38 = vmul.f32 %v3190_v57, %v3675_v48  ;;  %vm213_vm8 = vcmp.eq.s32.totalorder %v3524_v6, %v3698_v59  ;;  %v3963_v33 = vadd.s32 24, %v3524_v6 }
  0x38   :  { %v3836_v10 = vadd.f32 %v354_v0, %v321_v34  ;;  %vm217_vm9 = vcmp.eq.s32.totalorder %v3540_v14, %v3698_v59  ;;  %v3176_v58 = vsel %vm213_vm8, 1.0, %v3464_v26  ;;  %vm266_vm10 = vcmp.eq.s32.totalorder %v3524_v6, %v3735_v27 }
  0x39   :  { %1941 = vmatprep.subr.bf16.mxu1 %v1573_v37  ;;  %v3843_v39 = vadd.f32 %v358_v38, %v325_v36  ;;  %v3180_v40 = vsel %vm217_vm9, 1.0, %v3464_v26  ;;  %vm270_vm11 = vcmp.eq.s32.totalorder %v3540_v14, %v3735_v27  ;;  %v3188_v48 = vsel %vm266_vm10, 1.0, %v3464_v26 }
  0x3a   :  { %v3192_v59 = vsel %vm270_vm11, 1.0, %v3464_v26  ;;  %v323_v44 = vmul.f32 %v3176_v58, %v3738_v7  ;;  %v327_v50 = vmul.f32 %v3180_v40, %v3738_v7  ;;  %v356_v51 = vmul.f32 %v3188_v48, %v3678_v49 }
  0x3b   :  { %v1570_v63 = vpack.c.bf16 %v3843_v39, %v3836_v10  ;;  %v360_v1 = vmul.f32 %v3192_v59, %v3678_v49  ;;  %v3396_v49 = vld [vmem:[%s6068_s3 + $0x28] sm:$0xff]   ;;  %v3946_v61 = vrot.slane %v3556_v21, %v3529_v9  ;;  %v3950_v25 = vrot.slane %v3588_v46, %v3529_v9 }
  0x3c   :  { %v3859_v27 = vadd.f32 %v356_v51, %v323_v44  ;;  %v3956_v30 = vrot.slane %v3585_v45, %v3529_v9  ;;  %v3960_v47 = vrot.slane %v3542_v15, %v3529_v9  ;;  %v3967_v57 = vrot.slane %v3556_v21, %v3532_v11  ;;  %v3407_v9 = vld [vmem:[%s6068_s3 + $0x80] sm:$0xff]  }
  0x3d   :  { %1741 = vmatpush1.bf16.msra.mxu0 %v1570_v63  ;;  %v3861_v60 = vadd.f32 %v360_v1, %v327_v50  ;;  %v3971_v34 = vrot.slane %v3588_v46, %v3532_v11  ;;  %v3975_v36 = vrot.slane %v3585_v45, %v3532_v11  ;;  %v3979_v0 = vrot.slane %v3542_v15, %v3532_v11 }
  0x3e   :  { %3291 = vmatmul.mubr.msk.bf16.gmra.mxu1 %vm807_vm12, %v3394_v20  ;;  %3263 = vmatmul.mubr.msk.bf16.gmra.mxu0 %vm807_vm12, %v3395_v41  ;;  %v3402_v20 = vld [vmem:[%s6068_s3 + $0x58] sm:$0xff]   ;;  %vm409_vm13 = vcmp.eq.s32.totalorder %v3665_v42, %v3946_v61  ;;  %vm413_vm14 = vcmp.eq.s32.totalorder %v3963_v33, %v3946_v61  ;;  %vm474_vm15 = vcmp.eq.s32.totalorder %v3665_v42, %v3950_v25 }
  0x3f   :  { %1288 = vmatprep.mubr.bf16.mxu1 %v6075_v5  ;;  %977 = vmatprep.mubr.bf16.mxu0 %v6075_v5  ;;  %v1572_v7 = vpack.c.bf16 %v3861_v60, %v3859_v27  ;;  %vm478_vm0 = vcmp.eq.s32.totalorder %v3963_v33, %v3950_v25  ;;  %v3207_v21 = vsel %vm409_vm13, 1.0, %v3464_v26  ;;  %v3211_v11 = vsel %vm413_vm14, 1.0, %v3464_v26 }
  0x40   :  { %v3223_v15 = vsel %vm474_vm15, 1.0, %v3464_v26  ;;  %v3227_v45 = vsel %vm478_vm0, 1.0, %v3464_v26  ;;  %v543_v46 = vmul.f32 %v3207_v21, %v3956_v30  ;;  %v547_v37 = vmul.f32 %v3211_v11, %v3956_v30 }
  0x41   :  { %1942 = vmatpush1.bf16.msra.mxu1 %v1572_v7  ;;  %v580_v38 = vmul.f32 %v3223_v15, %v3960_v47  ;;  %v584_v58 = vmul.f32 %v3227_v45, %v3960_v47  ;;  %vm411_vm2 = vcmp.eq.s32.totalorder %v3665_v42, %v3967_v57  ;;  %vm415_vm3 = vcmp.eq.s32.totalorder %v3963_v33, %v3967_v57 }
  0x42   :  { %vm476_vm4 = vcmp.eq.s32.totalorder %v3665_v42, %v3971_v34  ;;  %v3213_v59 = vsel %vm415_vm3, 1.0, %v3464_v26  ;;  %vm480_vm5 = vcmp.eq.s32.totalorder %v3963_v33, %v3971_v34  ;;  %vm408_vm6 = vcmp.eq.s32.totalorder %v3665_v42, %v3600_v55 }
  0x43   :  { %v4010_v40 = vadd.f32 %v580_v38, %v543_v46  ;;  %v4012_v48 = vadd.f32 %v584_v58, %v547_v37  ;;  %v3225_v44 = vsel %vm476_vm4, 1.0, %v3464_v26  ;;  %v549_v51 = vmul.f32 %v3213_v59, %v3975_v36 }
  0x44   :  { %v3229_v1 = vsel %vm480_vm5, 1.0, %v3464_v26  ;;  %v582_v7 = vmul.f32 %v3225_v44, %v3979_v0  ;;  %vm412_vm7 = vcmp.eq.s32.totalorder %v3963_v33, %v3600_v55  ;;  %vm473_vm8 = vcmp.eq.s32.totalorder %v3665_v42, %v3615_v2 }
  0x45   :  { %v2134_v63 = vpack.c.bf16 %v4012_v48, %v4010_v40  ;;  %vm477_vm9 = vcmp.eq.s32.totalorder %v3963_v33, %v3615_v2  ;;  %vm410_vm10 = vcmp.eq.s32.totalorder %v3665_v42, %v3641_v28  ;;  %vm414_vm11 = vcmp.eq.s32.totalorder %v3963_v33, %v3641_v28 }
  0x46   :  { %3292 = vmatmul.mubr.msk.bf16.gmra.mxu1 %vm807_vm12, %v3395_v41  ;;  %3264 = vmatmul.mubr.msk.bf16.gmra.mxu0 %vm807_vm12, %v3396_v49  ;;  %v3209_v41 = vsel %vm411_vm2, 1.0, %v3464_v26  ;;  %v3208_v15 = vsel %vm410_vm10, 1.0, %v3464_v26  ;;  %v3212_v45 = vsel %vm414_vm11, 1.0, %v3464_v26  ;;  %vm475_vm13 = vcmp.eq.s32.totalorder %v3665_v42, %v3645_v13 }
  0x47   :  { %1298 = vmatprep.mubr.bf16.mxu1 %v6075_v5  ;;  %987 = vmatprep.mubr.bf16.mxu0 %v6075_v5  ;;  %v545_v50 = vmul.f32 %v3209_v41, %v3975_v36  ;;  %vm479_vm14 = vcmp.eq.s32.totalorder %v3963_v33, %v3645_v13  ;;  %v544_v58 = vmul.f32 %v3208_v15, %v3649_v17  ;;  %v3409_v33 = vld [vmem:[%s6068_s3 + $0x90] sm:$0xff]  }
  0x48   :  { %2153 = vmatprep.subr.bf16.mxu0 %v2134_v63  ;;  %v3228_v38 = vsel %vm479_vm14, 1.0, %v3464_v26  ;;  %v548_v42 = vmul.f32 %v3212_v45, %v3649_v17  ;;  %vm401_vm15 = vcmp.eq.s32.totalorder %v3524_v6, %v3946_v61  ;;  %vm405_vm0 = vcmp.eq.s32.totalorder %v3540_v14, %v3946_v61 }
  0x49   :  { %v585_v59 = vmul.f32 %v3228_v38, %v3661_v35  ;;  %vm466_vm2 = vcmp.eq.s32.totalorder %v3524_v6, %v3950_v25  ;;  %vm470_vm3 = vcmp.eq.s32.totalorder %v3540_v14, %v3950_v25  ;;  %vm403_vm4 = vcmp.eq.s32.totalorder %v3524_v6, %v3967_v57 }
  0x4a   :  { %v3215_v61 = vsel %vm466_vm2, 1.0, %v3464_v26  ;;  %vm407_vm5 = vcmp.eq.s32.totalorder %v3540_v14, %v3967_v57  ;;  %v3201_v25 = vsel %vm403_vm4, 1.0, %v3464_v26  ;;  %vm465_vm10 = vcmp.eq.s32.totalorder %v3524_v6, %v3615_v2 }
  0x4b   :  { %v4088_v63 = vadd.f32 %v585_v59, %v548_v42  ;;  %vm469_vm11 = vcmp.eq.s32.totalorder %v3540_v14, %v3615_v2  ;;  %vm406_vm14 = vcmp.eq.s32.totalorder %v3540_v14, %v3641_v28  ;;  %vm1661_vm2 = vcmask 195584  }
  0x4c   :  { %v3218_v15 = vsel %vm469_vm11, 1.0, %v3464_v26  ;;  %v3204_v42 = vsel %vm406_vm14, 1.0, %v3464_v26 }
  0x4e   :  { %3293 = vmatmul.mubr.msk.bf16.gmra.mxu1 %vm807_vm12, %v3396_v49  ;;  %3265 = vmatmul.mubr.msk.bf16.gmra.mxu0 %vm807_vm12, %v3397_v52  ;;  %v3408_v49 = vld [vmem:[%s6068_s3 + $0x88] sm:$0xff]  }
  0x4f   :  { %1308 = vmatprep.mubr.bf16.mxu1 %v6075_v5  ;;  %997 = vmatprep.mubr.bf16.mxu0 %v6075_v5 }
  0x56   :  { %3294 = vmatmul.mubr.msk.bf16.gmra.mxu1 %vm807_vm12, %v3397_v52  ;;  %3266 = vmatmul.mubr.msk.bf16.gmra.mxu0 %vm807_vm12, %v3398_v8  ;;  %v586_v52 = vmul.f32 %v3229_v1, %v3979_v0 }
  0x57   :  { %1318 = vmatprep.mubr.bf16.mxu1 %v6075_v5  ;;  %1007 = vmatprep.mubr.bf16.mxu0 %v6075_v5 }
  0x5e   :  { %3295 = vmatmul.mubr.msk.bf16.gmra.mxu1 %vm807_vm12, %v3398_v8  ;;  %3267 = vmatmul.mubr.msk.bf16.gmra.mxu0 %vm807_vm12, %v3399_v16  ;;  %v3206_v8 = vsel %vm408_vm6, 1.0, %v3464_v26  ;;  %vm468_vm6 = vcmp.eq.s32.totalorder %v3524_v6, %v3971_v34 }
  0x5f   :  { %1328 = vmatprep.mubr.bf16.mxu1 %v6075_v5  ;;  %1017 = vmatprep.mubr.bf16.mxu0 %v6075_v5  ;;  %v3217_v57 = vsel %vm468_vm6, 1.0, %v3464_v26 }
  0x66   :  { %3296 = vmatmul.mubr.msk.bf16.gmra.mxu1 %vm807_vm12, %v3399_v16  ;;  %3268 = vmatmul.mubr.msk.bf16.gmra.mxu0 %vm807_vm12, %v3400_v43  ;;  %v4036_v16 = vadd.f32 %v582_v7, %v545_v50  ;;  %v3199_v50 = vsel %vm401_vm15, 1.0, %v3464_v26  ;;  %v3219_v7 = vsel %vm470_vm3, 1.0, %v3464_v26  ;;  %vm467_vm15 = vcmp.eq.s32.totalorder %v3524_v6, %v3645_v13 }
  0x67   :  { %1338 = vmatprep.mubr.bf16.mxu1 %v6075_v5  ;;  %1027 = vmatprep.mubr.bf16.mxu0 %v6075_v5  ;;  %v535_v1 = vmul.f32 %v3199_v50, %v3956_v30  ;;  %v3411_v50 = vld [vmem:[%s6068_s3 + $0xa0] sm:$0xff]   ;;  %vm2374_vm3 = vcmask 523264  }
  0x6e   :  { %3297 = vmatmul.mubr.msk.bf16.gmra.mxu1 %vm807_vm12, %v3400_v43  ;;  %3269 = vmatmul.mubr.msk.bf16.gmra.mxu0 %vm807_vm12, %v3401_v53  ;;  %v3210_v43 = vsel %vm412_vm7, 1.0, %v3464_v26  ;;  %vm472_vm7 = vcmp.eq.s32.totalorder %v3540_v14, %v3971_v34 }
  0x6f   :  { %1348 = vmatprep.mubr.bf16.mxu1 %v6075_v5  ;;  %1037 = vmatprep.mubr.bf16.mxu0 %v6075_v5 }
  0x76   :  { %3298 = vmatmul.mubr.msk.bf16.gmra.mxu1 %vm807_vm12, %v3401_v53  ;;  %3270 = vmatmul.mubr.msk.bf16.gmra.mxu0 %vm807_vm12, %v3402_v20  ;;  %v3222_v53 = vsel %vm473_vm8, 1.0, %v3464_v26  ;;  %vm400_vm8 = vcmp.eq.s32.totalorder %v3524_v6, %v3600_v55 }
  0x77   :  { %1358 = vmatprep.mubr.bf16.mxu1 %v6075_v5  ;;  %1047 = vmatprep.mubr.bf16.mxu0 %v6075_v5  ;;  %v3198_v34 = vsel %vm400_vm8, 1.0, %v3464_v26 }
  0x78   :  { %v534_v45 = vmul.f32 %v3198_v34, %v3619_v3 }
  0x7e   :  { %3299 = vmatmul.mubr.msk.bf16.gmra.mxu1 %vm807_vm12, %v3402_v20  ;;  %3271 = vmatmul.mubr.msk.bf16.gmra.mxu0 %vm807_vm12, %v3403_v19  ;;  %v4042_v20 = vadd.f32 %v586_v52, %v549_v51  ;;  %v3203_v51 = vsel %vm405_vm0, 1.0, %v3464_v26  ;;  %vm471_vm0 = vcmp.eq.s32.totalorder %v3540_v14, %v3645_v13  ;;  %v540_v13 = vmul.f32 %v3204_v42, %v3649_v17 }
  0x7f   :  { %1368 = vmatprep.mubr.bf16.mxu1 %v6075_v5  ;;  %1057 = vmatprep.mubr.bf16.mxu0 %v6075_v5  ;;  %v539_v52 = vmul.f32 %v3203_v51, %v3956_v30  ;;  %v3205_v30 = vsel %vm407_vm5, 1.0, %v3464_v26 }
  0x80   :  { %v2136_v11 = vpack.c.bf16 %v4042_v20, %v4036_v16 }
  0x82   :  { %2194 = vmatprep.subr.bf16.mxu1 %v2136_v11 }
  0x86   :  { %3300 = vmatmul.mubr.msk.bf16.gmra.mxu1 %vm807_vm12, %v3403_v19  ;;  %3272 = vmatmul.mubr.msk.bf16.gmra.mxu0 %vm807_vm12, %v3404_v22  ;;  %v3226_v19 = vsel %vm477_vm9, 1.0, %v3464_v26  ;;  %vm404_vm9 = vcmp.eq.s32.totalorder %v3540_v14, %v3600_v55  ;;  %v3214_v55 = vsel %vm465_vm10, 1.0, %v3464_v26 }
  0x87   :  { %1378 = vmatprep.mubr.bf16.mxu1 %v6075_v5  ;;  %1067 = vmatprep.mubr.bf16.mxu0 %v6075_v5  ;;  %v583_v21 = vmul.f32 %v3226_v19, %v3623_v4  ;;  %v537_v19 = vmul.f32 %v3201_v25, %v3975_v36  ;;  %v571_v38 = vmul.f32 %v3214_v55, %v3623_v4 }
  0x8e   :  { %3301 = vmatmul.mubr.msk.bf16.gmra.mxu1 %vm807_vm12, %v3404_v22  ;;  %3273 = vmatmul.mubr.msk.bf16.gmra.mxu0 %vm807_vm12, %v3405_v23  ;;  %v542_v22 = vmul.f32 %v3206_v8, %v3619_v3  ;;  %v572_v8 = vmul.f32 %v3215_v61, %v3960_v47  ;;  %v3415_v61 = vld [vmem:[%s6068_s3 + $0xc0] sm:$0xff]  }
  0x8f   :  { %1388 = vmatprep.mubr.bf16.mxu1 %v6075_v5  ;;  %1077 = vmatprep.mubr.bf16.mxu0 %v6075_v5 }
  0x96   :  { %3302 = vmatmul.mubr.msk.bf16.gmra.mxu1 %vm807_vm12, %v3405_v23  ;;  %3274 = vmatmul.mubr.msk.bf16.gmra.mxu0 %vm807_vm12, %v3406_v24  ;;  %v546_v23 = vmul.f32 %v3210_v43, %v3619_v3  ;;  %v576_v43 = vmul.f32 %v3219_v7, %v3960_v47 }
  0x97   :  { %1398 = vmatprep.mubr.bf16.mxu1 %v6075_v5  ;;  %1087 = vmatprep.mubr.bf16.mxu0 %v6075_v5 }
  0x98   :  { %v4065_v37 = vadd.f32 %v583_v21, %v546_v23  ;;  %v4114_v47 = vadd.f32 %v576_v43, %v539_v52  ;;  %v574_v23 = vmul.f32 %v3217_v57, %v3979_v0  ;;  %v3410_v21 = vld [vmem:[%s6068_s3 + $0x98] sm:$0xff]  }
  0x9e   :  { %3303 = vmatmul.mubr.msk.bf16.gmra.mxu1 %vm807_vm12, %v3406_v24  ;;  %3275 = vmatmul.mubr.msk.bf16.gmra.mxu0 %vm807_vm12, %v3407_v9  ;;  %v579_v24 = vmul.f32 %v3222_v53, %v3623_v4  ;;  %v4105_v53 = vadd.f32 %v572_v8, %v535_v1  ;;  %v3416_v8 = vld [vmem:[%s6068_s3 + $0xc8] sm:$0xff]  }
  0x9f   :  { %1408 = vmatprep.mubr.bf16.mxu1 %v6075_v5  ;;  %1097 = vmatprep.mubr.bf16.mxu0 %v6075_v5 }
  0xa0   :  { %v4063_v46 = vadd.f32 %v579_v24, %v542_v22  ;;  %v541_v22 = vmul.f32 %v3205_v30, %v3975_v36  ;;  %v4132_v36 = vadd.f32 %v574_v23, %v537_v19 }
  0xa2   :  { %6265 = vst [vmem:[#allocation5_spill] sm:$0xff] %v4132_v36 }
  0xa6   :  { %3304 = vmatmul.mubr.msk.bf16.gmra.mxu1 %vm807_vm12, %v3407_v9  ;;  %3276 = vmatmul.mubr.msk.bf16.gmra.mxu0 %vm807_vm12, %v3408_v49  ;;  %v3224_v9 = vsel %vm475_vm13, 1.0, %v3464_v26  ;;  %vm402_vm13 = vcmp.eq.s32.totalorder %v3524_v6, %v3641_v28  ;;  %v3216_v28 = vsel %vm467_vm15, 1.0, %v3464_v26  ;;  %v3220_v6 = vsel %vm471_vm0, 1.0, %v3464_v26 }
  0xa7   :  { %1418 = vmatprep.mubr.bf16.mxu1 %v6075_v5  ;;  %1107 = vmatprep.mubr.bf16.mxu0 %v6075_v5  ;;  %v581_v41 = vmul.f32 %v3224_v9, %v3661_v35  ;;  %v3200_v2 = vsel %vm402_vm13, 1.0, %v3464_v26  ;;  %v577_v59 = vmul.f32 %v3220_v6, %v3661_v35 }
  0xa8   :  { %v536_v14 = vmul.f32 %v3200_v2, %v3649_v17  ;;  %v3413_v17 = vld [vmem:[%s6068_s3 + $0xb0] sm:$0xff]  }
  0xa9   :  { %v4082_v44 = vadd.f32 %v581_v41, %v544_v58  ;;  %v575_v58 = vmul.f32 %v3218_v15, %v3623_v4  ;;  %v573_v41 = vmul.f32 %v3216_v28, %v3661_v35  ;;  %v4174_v51 = vadd.f32 %v577_v59, %v540_v13  ;;  %v3414_v35 = vld [vmem:[%s6068_s3 + $0xb8] sm:$0xff]  }
  0xae   :  { %3305 = vmatmul.mubr.msk.bf16.gmra.mxu1 %vm807_vm12, %v3408_v49  ;;  %3277 = vmatmul.mubr.msk.bf16.gmra.mxu0 %vm807_vm12, %v3409_v33  ;;  %v3221_v49 = vsel %vm472_vm7, 1.0, %v3464_v26 }
  0xaf   :  { %1428 = vmatprep.mubr.bf16.mxu1 %v6075_v5  ;;  %1117 = vmatprep.mubr.bf16.mxu0 %v6075_v5  ;;  %v578_v24 = vmul.f32 %v3221_v49, %v3979_v0  ;;  %v3202_v0 = vsel %vm404_vm9, 1.0, %v3464_v26  ;;  %v3412_v26 = vld [vmem:[%s6068_s3 + $0xa8] sm:$0xff]  }
  0xb0   :  { %v538_v9 = vmul.f32 %v3202_v0, %v3619_v3  ;;  %v4156_v3 = vadd.f32 %v571_v38, %v534_v45 }
  0xb1   :  { %v4134_v11 = vadd.f32 %v578_v24, %v541_v22 }
  0xb2   :  { %v4158_v4 = vadd.f32 %v575_v58, %v538_v9  ;;  %v3417_v9 = vld [vmem:[%s6068_s3 + $0xd0] sm:$0xff]  }
  0xb3   :  { %6266 = vst [vmem:[#allocation6_spill] sm:$0xff] %v4134_v11 }
  0xb6   :  { %3306 = vmatmul.mubr.msk.bf16.gmra.mxu1 %vm807_vm12, %v3409_v33  ;;  %3278 = vmatmul.mubr.msk.bf16.gmra.mxu0 %vm807_vm12, %v3410_v21  ;;  %v4169_v33 = vadd.f32 %v573_v41, %v536_v14 }
  0xb7   :  { %1438 = vmatprep.mubr.bf16.mxu1 %v6075_v5  ;;  %1127 = vmatprep.mubr.bf16.mxu0 %v6075_v5 }
  0xbe   :  { %3307 = vmatmul.mubr.msk.bf16.gmra.mxu1 %vm807_vm12, %v3410_v21  ;;  %3279 = vmatmul.mubr.msk.bf16.gmra.mxu0 %vm807_vm12, %v3411_v50 }
  0xbf   :  { %1448 = vmatprep.mubr.bf16.mxu1 %v6075_v5  ;;  %1137 = vmatprep.mubr.bf16.mxu0 %v6075_v5 }
  0xc6   :  { %3308 = vmatmul.mubr.msk.bf16.gmra.mxu1 %vm807_vm12, %v3411_v50  ;;  %3280 = vmatmul.mubr.msk.bf16.gmra.mxu0 %vm807_vm12, %v3412_v26 }
  0xc7   :  { %1458 = vmatprep.mubr.bf16.mxu1 %v6075_v5  ;;  %1147 = vmatprep.mubr.bf16.mxu0 %v6075_v5 }
  0xce   :  { %3309 = vmatmul.mubr.msk.bf16.gmra.mxu1 %vm807_vm12, %v3412_v26  ;;  %3281 = vmatmul.mubr.msk.bf16.gmra.mxu0 %vm807_vm12, %v3413_v17 }
  0xcf   :  { %1468 = vmatprep.mubr.bf16.mxu1 %v6075_v5  ;;  %1157 = vmatprep.mubr.bf16.mxu0 %v6075_v5 }
  0xd6   :  { %3310 = vmatmul.mubr.msk.bf16.gmra.mxu1 %vm807_vm12, %v3413_v17  ;;  %3282 = vmatmul.mubr.msk.bf16.gmra.mxu0 %vm807_vm12, %v3414_v35 }
  0xd7   :  { %1478 = vmatprep.mubr.bf16.mxu1 %v6075_v5  ;;  %1167 = vmatprep.mubr.bf16.mxu0 %v6075_v5 }
  0xde   :  { %3311 = vmatmul.mubr.msk.bf16.gmra.mxu1 %vm807_vm12, %v3414_v35  ;;  %v929_v1 = vpop.f32.mrf.mxu0  ;;  %3283 = vmatmul.mubr.msk.bf16.gmra.mxu0 %vm807_vm12, %v3415_v61 }
  0xdf   :  { %1488 = vmatprep.mubr.bf16.mxu1 %v6075_v5  ;;  %1177 = vmatprep.mubr.bf16.mxu0 %v6075_v5  ;;  %v4212_v43 = vmul.f32 %v929_v1, %v3836_v10 }
  0xe0   :  { %v931_v7 = vpop.f32.mrf.mxu0 }
  0xe1   :  { %6267 = vst [vmem:[#allocation7_spill] sm:$0xff] %v4212_v43  ;;  %v4218_v49 = vmul.f32 %v931_v7, %v3786_v54 }
  0xe2   :  { %v933_v52 = vpop.f32.mrf.mxu0 }
  0xe3   :  { %v4215_v25 = vmul.f32 %v933_v52, %v3843_v39  ;;  %6269 = vst [vmem:[#allocation9_spill] sm:$0xff] %v4218_v49 }
  0xe4   :  { %v935_v30 = vpop.f32.mrf.mxu0 }
  0xe5   :  { %6268 = vst [vmem:[#allocation8_spill] sm:$0xff] %v4215_v25  ;;  %v1250_v57 = vpop.f32.mrf.mxu1  ;;  %v4223_v22 = vmul.f32 %v935_v30, %v3790_v18  ;;  %v3418_v30 = vld [vmem:[%s6068_s3 + $0xd8] sm:$0xff]  }
  0xe6   :  { %3312 = vmatmul.mubr.msk.bf16.gmra.mxu1 %vm807_vm12, %v3415_v61  ;;  %v939_v23 = vpop.f32.mrf.mxu0  ;;  %3284 = vmatmul.mubr.msk.bf16.gmra.mxu0 %vm807_vm12, %v3416_v8  ;;  %v4232_v55 = vmul.f32 %v1250_v57, %v3859_v27 }
  0xe7   :  { %6270 = vst [vmem:[#allocation10_spill] sm:$0xff] %v4223_v22  ;;  %v1252_v24 = vpop.f32.mrf.mxu1  ;;  %1498 = vmatprep.mubr.bf16.mxu1 %v6075_v5  ;;  %1187 = vmatprep.mubr.bf16.mxu0 %v6075_v5  ;;  %v4241_v58 = vmul.f32 %v939_v23, %v3746_v31 }
  0xe8   :  { %v941_v21 = vpop.f32.mrf.mxu0  ;;  %6271 = vst [vmem:[#allocation11_spill] sm:$0xff] %v4232_v55  ;;  %v4247_v42 = vmul.f32 %v1252_v24, %v3817_v56 }
  0xe9   :  { %v1254_v0 = vpop.f32.mrf.mxu1  ;;  %6273 = vst [vmem:[#allocation13_spill] sm:$0xff] %v4241_v58  ;;  %v4255_v13 = vmul.f32 %v941_v21, %v3740_v12 }
  0xea   :  { %v4235_v15 = vmul.f32 %v1254_v0, %v3861_v60  ;;  %v943_v45 = vpop.f32.mrf.mxu0  ;;  %6275 = vst [vmem:[#allocation15_spill] sm:$0xff] %v4247_v42 }
  0xeb   :  { %v1256_v38 = vpop.f32.mrf.mxu1  ;;  %v4244_v2 = vmul.f32 %v943_v45, %v3836_v10  ;;  %6277 = vst [vmem:[#allocation17_spill] sm:$0xff] %v4255_v13 }
  0xec   :  { %6272 = vst [vmem:[#allocation12_spill] sm:$0xff] %v4235_v15  ;;  %v4252_v6 = vmul.f32 %v1256_v38, %v3819_v32  ;;  %v945_v14 = vpop.f32.mrf.mxu0 }
  0xed   :  { %6274 = vst [vmem:[#allocation14_spill] sm:$0xff] %v4244_v2  ;;  %v4260_v59 = vmul.f32 %v945_v14, %v3786_v54 }
  0xee   :  { %6276 = vst [vmem:[#allocation16_spill] sm:$0xff] %v4252_v6  ;;  %v1260_v26 = vpop.f32.mrf.mxu1  ;;  %3313 = vmatmul.mubr.msk.bf16.gmra.mxu1 %vm807_vm12, %v3416_v8  ;;  %v949_v17 = vpop.f32.mrf.mxu0  ;;  %3285 = vmatmul.mubr.msk.bf16.gmra.mxu0 %vm807_vm12, %v3417_v9 }
  0xef   :  { %6278 = vst [vmem:[#allocation18_spill] sm:$0xff] %v4260_v59  ;;  %1508 = vmatprep.mubr.bf16.mxu1 %v6075_v5  ;;  %1197 = vmatprep.mubr.bf16.mxu0 %v6075_v5  ;;  %v4274_v8 = vmul.f32 %v1260_v26, %v3771_v62  ;;  %v4280_v23 = vmul.f32 %v949_v17, %v3843_v39 }
  0xf0   :  { %v1262_v61 = vpop.f32.mrf.mxu1  ;;  %v951_v1 = vpop.f32.mrf.mxu0 }
  0xf1   :  { %6279 = vst [vmem:[#allocation19_spill] sm:$0xff] %v4274_v8  ;;  %6281 = vst [vmem:[#allocation21_spill] sm:$0xff] %v4280_v23  ;;  %v4286_v21 = vmul.f32 %v1262_v61, %v3742_v29  ;;  %v4289_v45 = vmul.f32 %v951_v1, %v3790_v18 }
  0xf2   :  { %v1264_v7 = vpop.f32.mrf.mxu1  ;;  %v953_v52 = vpop.f32.mrf.mxu0 }
  0xf3   :  { %v4277_v57 = vmul.f32 %v1264_v7, %v3859_v27  ;;  %v4283_v24 = vmul.f32 %v953_v52, %v3746_v31  ;;  %6283 = vst [vmem:[#allocation23_spill] sm:$0xff] %v4286_v21  ;;  %6284 = vst [vmem:[#allocation24_spill] sm:$0xff] %v4289_v45 }
  0xf4   :  { %v1266_v0 = vpop.f32.mrf.mxu1  ;;  %v955_v38 = vpop.f32.mrf.mxu0 }
  0xf5   :  { %6280 = vst [vmem:[#allocation20_spill] sm:$0xff] %v4277_v57  ;;  %6282 = vst [vmem:[#allocation22_spill] sm:$0xff] %v4283_v24  ;;  %v4294_v26 = vmul.f32 %v1266_v0, %v3817_v56  ;;  %v4299_v7 = vmul.f32 %v955_v38, %v3740_v12 }
  0xf6   :  { %v1270_v52 = vpop.f32.mrf.mxu1  ;;  %3314 = vmatmul.mubr.msk.bf16.gmra.mxu1 %vm807_vm12, %v3417_v9  ;;  %v959_v61 = vpop.f32.mrf.mxu0  ;;  %3286 = vmatmul.mubr.msk.bf16.gmra.mxu0 %vm807_vm12, %v3418_v30  ;;  %v3419_v9 = vld [vmem:[%s6068_s3 + $0xe0] ss:$0 sps:$4 sm:$0xff]  }
  0xf7   :  { %6285 = vst [vmem:[#allocation25_spill] sm:$0xff] %v4294_v26  ;;  %6286 = vst [vmem:[#allocation26_spill] sm:$0xff] %v4299_v7  ;;  %1518 = vmatprep.mubr.bf16.mxu1 %v6075_v5  ;;  %1207 = vmatprep.mubr.bf16.mxu0 %v6075_v5  ;;  %v4313_v19 = vmul.f32 %v1270_v52, %v3861_v60  ;;  %v4319_v34 = vmul.f32 %v959_v61, %v3836_v10 }
  0xf8   :  { %v1272_v0 = vpop.f32.mrf.mxu1  ;;  %v961_v50 = vpop.f32.mrf.mxu0 }
  0xf9   :  { %6287 = vst [vmem:[#allocation27_spill] sm:$0xff] %v4313_v19  ;;  %6289 = vst [vmem:[#allocation29_spill] sm:$0xff] %v4319_v34  ;;  %v4325_v35 = vmul.f32 %v1272_v0, %v3819_v32  ;;  %v4328_v28 = vmul.f32 %v961_v50, %v3786_v54 }
  0xfa   :  { %v1274_v38 = vpop.f32.mrf.mxu1  ;;  %v963_v14 = vpop.f32.mrf.mxu0 }
  0xfb   :  { %v4316_v1 = vmul.f32 %v1274_v38, %v3771_v62  ;;  %v4322_v41 = vmul.f32 %v963_v14, %v3843_v39  ;;  %6291 = vst [vmem:[#allocation31_spill] sm:$0xff] %v4325_v35  ;;  %6292 = vst [vmem:[#allocation32_spill] sm:$0xff] %v4328_v28 }
  0xfc   :  { %v1276_v17 = vpop.f32.mrf.mxu1  ;;  %v965_v5 = vpop.f32.mrf.mxu0 }
  0xfd   :  { %6288 = vst [vmem:[#allocation28_spill] sm:$0xff] %v4316_v1  ;;  %6290 = vst [vmem:[#allocation30_spill] sm:$0xff] %v4322_v41  ;;  %v4333_v38 = vmul.f32 %v1276_v17, %v3742_v29  ;;  %v4338_v14 = vmul.f32 %v965_v5, %v3790_v18  ;;  %v6295_v17 = vmov 0   ;;  %v3421_v1 = vld [vmem:[%s6069_s4 + $0x8] sm:$0xff]  }
  0xfe   :  { %v1280_v55 = vpop.f32.mrf.mxu1  ;;  %3315 = vmatmul.mubr.msk.bf16.gmra.mxu1 %vm807_vm12, %v3418_v30  ;;  %v969_v0 = vpop.f32.mrf.mxu0  ;;  %3287 = vmatmul.mubr.msk.bf16.gmra.mxu0 %vm807_vm12, %v3419_v9  ;;  %v3420_v30 = vld [vmem:[%s6069_s4] sm:$0xff]  }
  0xff   :  { %6293 = vst [vmem:[#allocation33_spill] sm:$0xff] %v4333_v38  ;;  %6294 = vst [vmem:[#allocation34_spill] sm:$0xff] %v4338_v14  ;;  %1528 = vmatprep.mubr.bf16.mxu1 %v6295_v17  ;;  %1758 = vmatprep.mubr.bf16.mxu0 %v6295_v17  ;;  %v4352_v6 = vmul.f32 %v1280_v55, %v3859_v27  ;;  %v4358_v52 = vmul.f32 %v969_v0, %v3746_v31 }
 0x100   :  { %v1282_v15 = vpop.f32.mrf.mxu1  ;;  %v971_v42 = vpop.f32.mrf.mxu0  ;;  %v2133_v55 = vpack.c.bf16 %v4065_v37, %v4063_v46 }
 0x101   :  { %6296 = vst [vmem:[#allocation35_spill] sm:$0xff] %v4352_v6  ;;  %6298 = vst [vmem:[#allocation37_spill] sm:$0xff] %v4358_v52  ;;  %v4364_v57 = vmul.f32 %v1282_v15, %v3817_v56  ;;  %v4367_v25 = vmul.f32 %v971_v42, %v3740_v12 }
 0x102   :  { %v1284_v5 = vpop.f32.mrf.mxu1  ;;  %v973_v61 = vpop.f32.mrf.mxu0 }
 0x103   :  { %v4355_v50 = vmul.f32 %v1284_v5, %v3861_v60  ;;  %v4361_v8 = vmul.f32 %v973_v61, %v3836_v10  ;;  %6300 = vst [vmem:[#allocation39_spill] sm:$0xff] %v4364_v57  ;;  %v2130_v5 = vpack.c.bf16 %v4114_v47, %v4105_v53 }
 0x104   :  { %v1286_v43 = vpop.f32.mrf.mxu1  ;;  %v975_v21 = vpop.f32.mrf.mxu0 }
 0x105   :  { %6297 = vst [vmem:[#allocation36_spill] sm:$0xff] %v4355_v50  ;;  %6299 = vst [vmem:[#allocation38_spill] sm:$0xff] %v4361_v8  ;;  %v4376_v61 = vmul.f32 %v1286_v43, %v3819_v32  ;;  %v4381_v26 = vmul.f32 %v975_v21, %v3786_v54  ;;  %v2129_v21 = vpack.c.bf16 %v4158_v4, %v4156_v3 }
 0x106   :  { %v1290_v42 = vpop.f32.mrf.mxu1  ;;  %3316 = vmatmul.mubr.msk.bf16.gmra.mxu1 %vm807_vm12, %v3419_v9  ;;  %v979_v19 = vpop.f32.mrf.mxu0  ;;  %3335 = vmatmul.mubr.msk.bf16.vlgmr.msra.gmra.mxu0 %vm1661_vm2, %v3420_v30  ;;  %vm2137_vm12 = vcmask 261120  }
 0x107   :  { %6301 = vst [vmem:[#allocation40_spill] sm:$0xff] %v4376_v61  ;;  %1959 = vmatprep.mubr.bf16.mxu1 %v6295_v17  ;;  %1768 = vmatprep.mubr.bf16.mxu0 %v6295_v17  ;;  %v4397_v22 = vmul.f32 %v1290_v42, %v3771_v62  ;;  %v4403_v58 = vmul.f32 %v979_v19, %v3843_v39 }
 0x108   :  { %v1292_v43 = vpop.f32.mrf.mxu1  ;;  %v981_v49 = vpop.f32.mrf.mxu0  ;;  %2154 = vmatpush1.bf16.msra.mxu0 %v2133_v55  ;;  %v2135_v42 = vpack.c.bf16 %v4088_v63, %v4082_v44 }
 0x109   :  { %2155 = vmatprep.subr.bf16.mxu0 %v2130_v5  ;;  %6302 = vst [vmem:[#allocation41_spill] sm:$0xff] %v4397_v22  ;;  %v4409_v5 = vmul.f32 %v1292_v43, %v3742_v29  ;;  %v4412_v35 = vmul.f32 %v981_v49, %v3790_v18 }
 0x10a   :  { %v1294_v9 = vpop.f32.mrf.mxu1  ;;  %v983_v15 = vpop.f32.mrf.mxu0 }
 0x10b   :  { %v4400_v0 = vmul.f32 %v1294_v9, %v3859_v27  ;;  %v4406_v55 = vmul.f32 %v983_v15, %v3746_v31  ;;  %6304 = vst [vmem:[#allocation43_spill] sm:$0xff] %v4409_v5  ;;  %v2132_v9 = vpack.c.bf16 %v4134_v11, %v4132_v36 }
 0x10c   :  { %v1296_v2 = vpop.f32.mrf.mxu1  ;;  %v985_v38 = vpop.f32.mrf.mxu0  ;;  %2156 = vmatpush1.bf16.msra.mxu0 %v2129_v21  ;;  %v3422_v21 = vld [vmem:[%s6069_s4 + $0x10] sm:$0xff]  }
 0x10d   :  { %6303 = vst [vmem:[#allocation42_spill] sm:$0xff] %v4400_v0  ;;  %v4421_v15 = vmul.f32 %v1296_v2, %v3817_v56  ;;  %v4426_v49 = vmul.f32 %v985_v38, %v3740_v12  ;;  %v2131_v38 = vpack.c.bf16 %v4174_v51, %v4169_v33 }
 0x10e   :  { %v1300_v6 = vpop.f32.mrf.mxu1  ;;  %3353 = vmatmul.mubr.msk.bf16.vlgmr.msra.gmra.mxu1 %vm1661_vm2, %v3420_v30  ;;  %v989_v50 = vpop.f32.mrf.mxu0  ;;  %3336 = vmatmul.mubr.msk.bf16.gmra.mxu0 %vm1661_vm2, %v3421_v1 }
 0x10f   :  { %6305 = vst [vmem:[#allocation44_spill] sm:$0xff] %v4421_v15  ;;  %1969 = vmatprep.mubr.bf16.mxu1 %v6295_v17  ;;  %1778 = vmatprep.mubr.bf16.mxu0 %v6295_v17  ;;  %v4442_v59 = vmul.f32 %v1300_v6, %v3861_v60  ;;  %v4448_v23 = vmul.f32 %v989_v50, %v3836_v10 }
 0x110   :  { %v1302_v2 = vpop.f32.mrf.mxu1  ;;  %v991_v13 = vpop.f32.mrf.mxu0  ;;  %2195 = vmatpush1.bf16.msra.mxu1 %v2135_v42 }
 0x111   :  { %2196 = vmatprep.subr.bf16.mxu1 %v2132_v9  ;;  %6306 = vst [vmem:[#allocation45_spill] sm:$0xff] %v4442_v59  ;;  %v4454_v9 = vmul.f32 %v1302_v2, %v3819_v32  ;;  %v4457_v57 = vmul.f32 %v991_v13, %v3786_v54 }
 0x112   :  { %v1304_v30 = vpop.f32.mrf.mxu1  ;;  %v993_v43 = vpop.f32.mrf.mxu0 }
 0x113   :  { %v4445_v19 = vmul.f32 %v1304_v30, %v3771_v62  ;;  %v4451_v42 = vmul.f32 %v993_v43, %v3843_v39  ;;  %6308 = vst [vmem:[#allocation47_spill] sm:$0xff] %v4454_v9 }
 0x114   :  { %v1306_v24 = vpop.f32.mrf.mxu1  ;;  %v995_v61 = vpop.f32.mrf.mxu0  ;;  %2197 = vmatpush1.bf16.msra.mxu1 %v2131_v38 }
 0x115   :  { %6307 = vst [vmem:[#allocation46_spill] sm:$0xff] %v4445_v19  ;;  %v4462_v30 = vmul.f32 %v1306_v24, %v3742_v29  ;;  %v4467_v43 = vmul.f32 %v995_v61, %v3790_v18 }
 0x116   :  { %v1310_v2 = vpop.f32.mrf.mxu1  ;;  %3354 = vmatmul.mubr.msk.bf16.gmra.mxu1 %vm1661_vm2, %v3421_v1  ;;  %v999_v22 = vpop.f32.mrf.mxu0  ;;  %3337 = vmatmul.mubr.msk.bf16.gmra.mxu0 %vm1661_vm2, %v3422_v21  ;;  %v3423_v1 = vld [vmem:[%s6069_s4 + $0x18] sm:$0xff]  }
 0x117   :  { %6309 = vst [vmem:[#allocation48_spill] sm:$0xff] %v4462_v30  ;;  %1979 = vmatprep.mubr.bf16.mxu1 %v6295_v17  ;;  %1788 = vmatprep.mubr.bf16.mxu0 %v6295_v17  ;;  %v4481_v0 = vmul.f32 %v1310_v2, %v3859_v27  ;;  %v4487_v38 = vmul.f32 %v999_v22, %v3746_v31 }
 0x118   :  { %v1312_v24 = vpop.f32.mrf.mxu1  ;;  %v1001_v6 = vpop.f32.mrf.mxu0 }
 0x119   :  { %v4493_v7 = vmul.f32 %v1312_v24, %v3817_v56  ;;  %v2281_v41 = vmul.f32 %v1001_v6, %v3740_v12 }
 0x11a   :  { %v1314_v61 = vpop.f32.mrf.mxu1  ;;  %v1003_v50 = vpop.f32.mrf.mxu0 }
 0x11b   :  { %v4484_v13 = vmul.f32 %v1314_v61, %v3861_v60  ;;  %v4490_v45 = vmul.f32 %v1003_v50, %v3836_v10 }
 0x11c   :  { %v1316_v34 = vpop.f32.mrf.mxu1  ;;  %v1005_v5 = vpop.f32.mrf.mxu0 }
 0x11d   :  { %v4499_v15 = vmul.f32 %v1316_v34, %v3819_v32  ;;  %v2285_v61 = vmul.f32 %v1005_v5, %v3786_v54  ;;  %v3424_v5 = vld [vmem:[%s6069_s4 + $0x20] sm:$0xff]  }
 0x11e   :  { %v1320_v50 = vpop.f32.mrf.mxu1  ;;  %3355 = vmatmul.mubr.msk.bf16.gmra.mxu1 %vm1661_vm2, %v3422_v21  ;;  %v1009_v24 = vpop.f32.mrf.mxu0  ;;  %3338 = vmatmul.mubr.msk.bf16.gmra.mxu0 %vm1661_vm2, %v3423_v1 }
 0x11f   :  { %v2349_v59 = vpack.c.bf16 %v2285_v61, %v2281_v41  ;;  %1989 = vmatprep.mubr.bf16.mxu1 %v6295_v17  ;;  %1798 = vmatprep.mubr.bf16.mxu0 %v6295_v17  ;;  %v4514_v21 = vmul.f32 %v1320_v50, %v3771_v62  ;;  %v4520_v41 = vmul.f32 %v1009_v24, %v3843_v39 }
 0x120   :  { %v1322_v2 = vpop.f32.mrf.mxu1  ;;  %v1011_v34 = vpop.f32.mrf.mxu0 }
 0x121   :  { %2378 = vmatprep.subr.bf16.mxu0 %v2349_v59  ;;  %6310 = vst [vmem:[#allocation49_spill] sm:$0xff] %v4520_v41  ;;  %v2283_v59 = vmul.f32 %v1322_v2, %v3742_v29  ;;  %v4527_v14 = vmul.f32 %v1011_v34, %v3790_v18 }
 0x122   :  { %v1324_v22 = vpop.f32.mrf.mxu1  ;;  %v1013_v19 = vpop.f32.mrf.mxu0 }
 0x123   :  { %v4517_v28 = vmul.f32 %v1324_v22, %v3859_v27  ;;  %v4523_v61 = vmul.f32 %v1013_v19, %v3746_v31  ;;  %6312 = vst [vmem:[#allocation51_spill] sm:$0xff] %v4527_v14 }
 0x124   :  { %v1326_v6 = vpop.f32.mrf.mxu1  ;;  %v1015_v52 = vpop.f32.mrf.mxu0 }
 0x125   :  { %6311 = vst [vmem:[#allocation50_spill] sm:$0xff] %v4523_v61  ;;  %v2287_v8 = vmul.f32 %v1326_v6, %v3817_v56  ;;  %v4535_v24 = vmul.f32 %v1015_v52, %v3740_v12 }
 0x126   :  { %v1330_v19 = vpop.f32.mrf.mxu1  ;;  %3356 = vmatmul.mubr.msk.bf16.gmra.mxu1 %vm1661_vm2, %v3423_v1  ;;  %v1019_v2 = vpop.f32.mrf.mxu0  ;;  %3339 = vmatmul.mubr.msk.bf16.gmra.mxu0 %vm1661_vm2, %v3424_v5  ;;  %v3425_v1 = vld [vmem:[%s6069_s4 + $0x28] sm:$0xff]  }
 0x127   :  { %6313 = vst [vmem:[#allocation52_spill] sm:$0xff] %v4535_v24  ;;  %v2351_v34 = vpack.c.bf16 %v2287_v8, %v2283_v59  ;;  %1999 = vmatprep.mubr.bf16.mxu1 %v6295_v17  ;;  %1808 = vmatprep.mubr.bf16.mxu0 %v6295_v17  ;;  %v4547_v41 = vmul.f32 %v1330_v19, %v3861_v60 }
 0x128   :  { %v1332_v50 = vpop.f32.mrf.mxu1  ;;  %v1021_v6 = vpop.f32.mrf.mxu0  ;;  %v4553_v59 = vmul.f32 %v1019_v2, %v3836_v10 }
 0x129   :  { %2419 = vmatprep.subr.bf16.mxu1 %v2351_v34  ;;  %6314 = vst [vmem:[#allocation53_spill] sm:$0xff] %v4547_v41  ;;  %v4559_v34 = vmul.f32 %v1332_v50, %v3819_v32  ;;  %v4562_v14 = vmul.f32 %v1021_v6, %v3786_v54 }
 0x12a   :  { %v1334_v22 = vpop.f32.mrf.mxu1  ;;  %v1023_v52 = vpop.f32.mrf.mxu0  ;;  %6316 = vst [vmem:[#allocation55_spill] sm:$0xff] %v4553_v59 }
 0x12b   :  { %v4550_v8 = vmul.f32 %v1334_v22, %v3771_v62  ;;  %v4556_v9 = vmul.f32 %v1023_v52, %v3843_v39  ;;  %6318 = vst [vmem:[#allocation57_spill] sm:$0xff] %v4559_v34  ;;  %6319 = vst [vmem:[#allocation58_spill] sm:$0xff] %v4562_v14 }
 0x12c   :  { %v1336_v61 = vpop.f32.mrf.mxu1  ;;  %v1025_v24 = vpop.f32.mrf.mxu0 }
 0x12d   :  { %6315 = vst [vmem:[#allocation54_spill] sm:$0xff] %v4550_v8  ;;  %6317 = vst [vmem:[#allocation56_spill] sm:$0xff] %v4556_v9  ;;  %v4567_v22 = vmul.f32 %v1336_v61, %v3742_v29  ;;  %v4572_v52 = vmul.f32 %v1025_v24, %v3790_v18 }
 0x12e   :  { %v1340_v30 = vpop.f32.mrf.mxu1  ;;  %3357 = vmatmul.mubr.msk.bf16.gmra.mxu1 %vm1661_vm2, %v3424_v5  ;;  %v1029_v50 = vpop.f32.mrf.mxu0  ;;  %3340 = vmatmul.mubr.msk.bf16.gmra.mxu0 %vm1661_vm2, %v3425_v1  ;;  %v3426_v5 = vld [vmem:[%s6069_s4 + $0x30] sm:$0xff]  }
 0x12f   :  { %6320 = vst [vmem:[#allocation59_spill] sm:$0xff] %v4567_v22  ;;  %6321 = vst [vmem:[#allocation60_spill] sm:$0xff] %v4572_v52  ;;  %2009 = vmatprep.mubr.bf16.mxu1 %v6295_v17  ;;  %1818 = vmatprep.mubr.bf16.mxu0 %v6295_v17  ;;  %v4586_v8 = vmul.f32 %v1340_v30, %v3859_v27  ;;  %v4592_v19 = vmul.f32 %v1029_v50, %v3746_v31 }
 0x130   :  { %v1342_v61 = vpop.f32.mrf.mxu1  ;;  %v1031_v41 = vpop.f32.mrf.mxu0 }
 0x131   :  { %6322 = vst [vmem:[#allocation61_spill] sm:$0xff] %v4586_v8  ;;  %6324 = vst [vmem:[#allocation63_spill] sm:$0xff] %v4592_v19  ;;  %v4598_v22 = vmul.f32 %v1342_v61, %v3817_v56  ;;  %v4601_v9 = vmul.f32 %v1031_v41, %v3740_v12 }
 0x132   :  { %v1344_v24 = vpop.f32.mrf.mxu1  ;;  %v1033_v2 = vpop.f32.mrf.mxu0 }
 0x133   :  { %v4589_v6 = vmul.f32 %v1344_v24, %v3861_v60  ;;  %v4595_v34 = vmul.f32 %v1033_v2, %v3836_v10  ;;  %6325 = vst [vmem:[#allocation64_spill] sm:$0xff] %v4598_v22 }
 0x134   :  { %v1346_v59 = vpop.f32.mrf.mxu1  ;;  %v1035_v14 = vpop.f32.mrf.mxu0 }
 0x135   :  { %6323 = vst [vmem:[#allocation62_spill] sm:$0xff] %v4589_v6  ;;  %v4606_v24 = vmul.f32 %v1346_v59, %v3819_v32  ;;  %v4611_v10 = vmul.f32 %v1035_v14, %v3786_v54 }
 0x136   :  { %v1350_v2 = vpop.f32.mrf.mxu1  ;;  %3358 = vmatmul.mubr.msk.bf16.gmra.mxu1 %vm1661_vm2, %v3425_v1  ;;  %v1039_v61 = vpop.f32.mrf.mxu0  ;;  %3341 = vmatmul.mubr.msk.bf16.gmra.mxu0 %vm1661_vm2, %v3426_v5  ;;  %v3427_v1 = vld [vmem:[%s6069_s4 + $0x38] sm:$0xff]  }
 0x137   :  { %6326 = vst [vmem:[#allocation65_spill] sm:$0xff] %v4606_v24  ;;  %2019 = vmatprep.mubr.bf16.mxu1 %v6295_v17  ;;  %1828 = vmatprep.mubr.bf16.mxu0 %v6295_v17  ;;  %v4625_v50 = vmul.f32 %v1350_v2, %v3771_v62  ;;  %v4631_v30 = vmul.f32 %v1039_v61, %v3843_v39 }
 0x138   :  { %v1352_v59 = vpop.f32.mrf.mxu1  ;;  %v1041_v8 = vpop.f32.mrf.mxu0 }
 0x139   :  { %6327 = vst [vmem:[#allocation66_spill] sm:$0xff] %v4625_v50  ;;  %v4637_v22 = vmul.f32 %v1352_v59, %v3742_v29  ;;  %v4640_v52 = vmul.f32 %v1041_v8, %v3790_v18 }
 0x13a   :  { %v1354_v54 = vpop.f32.mrf.mxu1  ;;  %v1043_v14 = vpop.f32.mrf.mxu0 }
 0x13b   :  { %v4628_v41 = vmul.f32 %v1354_v54, %v3859_v27  ;;  %v4634_v6 = vmul.f32 %v1043_v14, %v3746_v31  ;;  %6329 = vst [vmem:[#allocation68_spill] sm:$0xff] %v4637_v22 }
 0x13c   :  { %v1356_v24 = vpop.f32.mrf.mxu1  ;;  %v1045_v19 = vpop.f32.mrf.mxu0 }
 0x13d   :  { %6328 = vst [vmem:[#allocation67_spill] sm:$0xff] %v4628_v41  ;;  %v4645_v27 = vmul.f32 %v1356_v24, %v3817_v56  ;;  %v4650_v31 = vmul.f32 %v1045_v19, %v3740_v12 }
 0x13e   :  { %v1360_v61 = vpop.f32.mrf.mxu1  ;;  %3359 = vmatmul.mubr.msk.bf16.gmra.mxu1 %vm1661_vm2, %v3426_v5  ;;  %v1049_v59 = vpop.f32.mrf.mxu0  ;;  %3342 = vmatmul.mubr.msk.bf16.gmra.mxu0 %vm1661_vm2, %v3427_v1  ;;  %v3428_v5 = vld [vmem:[%s6069_s4 + $0x40] sm:$0xff]  }
 0x13f   :  { %2029 = vmatprep.mubr.bf16.mxu1 %v6295_v17  ;;  %1838 = vmatprep.mubr.bf16.mxu0 %v6295_v17  ;;  %v4664_v54 = vmul.f32 %v1360_v61, %v3861_v60  ;;  %v4670_v2 = vmul.f32 %v1049_v59, %v4156_v3 }
 0x140   :  { %v1362_v56 = vpop.f32.mrf.mxu1  ;;  %v1051_v24 = vpop.f32.mrf.mxu0 }
 0x141   :  { %6330 = vst [vmem:[#allocation69_spill] sm:$0xff] %v4670_v2  ;;  %v4676_v39 = vmul.f32 %v1362_v56, %v3819_v32  ;;  %v4679_v50 = vmul.f32 %v1051_v24, %v4105_v53 }
 0x142   :  { %v1364_v12 = vpop.f32.mrf.mxu1  ;;  %v1053_v19 = vpop.f32.mrf.mxu0 }
 0x143   :  { %v4667_v14 = vmul.f32 %v1364_v12, %v3771_v62  ;;  %v4673_v18 = vmul.f32 %v1053_v19, %v4158_v4  ;;  %6332 = vst [vmem:[#allocation71_spill] sm:$0xff] %v4679_v50 }
 0x144   :  { %v1366_v8 = vpop.f32.mrf.mxu1  ;;  %v1055_v41 = vpop.f32.mrf.mxu0 }
 0x145   :  { %6331 = vst [vmem:[#allocation70_spill] sm:$0xff] %v4673_v18  ;;  %v4684_v62 = vmul.f32 %v1366_v8, %v3742_v29  ;;  %v4689_v59 = vmul.f32 %v1055_v41, %v4114_v47 }
 0x146   :  { %v1370_v12 = vpop.f32.mrf.mxu1  ;;  %3360 = vmatmul.mubr.msk.bf16.gmra.mxu1 %vm1661_vm2, %v3427_v1  ;;  %v1059_v32 = vpop.f32.mrf.mxu0  ;;  %3343 = vmatmul.mubr.msk.bf16.gmra.mxu0 %vm1661_vm2, %v3428_v5  ;;  %v3429_v1 = vld [vmem:[%s6069_s4 + $0x48] sm:$0xff]  }
 0x147   :  { %6333 = vst [vmem:[#allocation72_spill] sm:$0xff] %v4689_v59  ;;  %2039 = vmatprep.mubr.bf16.mxu1 %v6295_v17  ;;  %1848 = vmatprep.mubr.bf16.mxu0 %v6295_v17  ;;  %v4703_v61 = vmul.f32 %v1370_v12, %v4169_v33  ;;  %v4709_v24 = vmul.f32 %v1059_v32, %v4063_v46 }
 0x148   :  { %v1372_v29 = vpop.f32.mrf.mxu1  ;;  %v1061_v8 = vpop.f32.mrf.mxu0 }
 0x149   :  { %6334 = vst [vmem:[#allocation73_spill] sm:$0xff] %v4703_v61  ;;  %6336 = vst [vmem:[#allocation75_spill] sm:$0xff] %v4709_v24  ;;  %v4715_v2 = vmul.f32 %v1372_v29, %v4132_v36  ;;  %v4718_v50 = vmul.f32 %v1061_v8, %v4010_v40 }
 0x14a   :  { %v1374_v41 = vpop.f32.mrf.mxu1  ;;  %v1063_v19 = vpop.f32.mrf.mxu0 }
 0x14b   :  { %v4706_v60 = vmul.f32 %v1374_v41, %v4174_v51  ;;  %v4712_v56 = vmul.f32 %v1063_v19, %v4065_v37  ;;  %6338 = vst [vmem:[#allocation77_spill] sm:$0xff] %v4715_v2  ;;  %6339 = vst [vmem:[#allocation78_spill] sm:$0xff] %v4718_v50 }
 0x14c   :  { %v1376_v18 = vpop.f32.mrf.mxu1  ;;  %v1065_v59 = vpop.f32.mrf.mxu0 }
 0x14d   :  { %6335 = vst [vmem:[#allocation74_spill] sm:$0xff] %v4706_v60  ;;  %6337 = vst [vmem:[#allocation76_spill] sm:$0xff] %v4712_v56  ;;  %v4723_v41 = vmul.f32 %v1376_v18, %v4134_v11  ;;  %v4728_v19 = vmul.f32 %v1065_v59, %v4012_v48 }
 0x14e   :  { %v1380_v22 = vpop.f32.mrf.mxu1  ;;  %3361 = vmatmul.mubr.msk.bf16.gmra.mxu1 %vm1661_vm2, %v3428_v5  ;;  %v1069_v29 = vpop.f32.mrf.mxu0  ;;  %3344 = vmatmul.mubr.msk.bf16.gmra.mxu0 %vm1661_vm2, %v3429_v1  ;;  %v3430_v5 = vld [vmem:[%s6069_s4 + $0x50] sm:$0xff]  }
 0x14f   :  { %6340 = vst [vmem:[#allocation79_spill] sm:$0xff] %v4723_v41  ;;  %6341 = vst [vmem:[#allocation80_spill] sm:$0xff] %v4728_v19  ;;  %2049 = vmatprep.mubr.bf16.mxu1 %v6295_v17  ;;  %1858 = vmatprep.mubr.bf16.mxu0 %v6295_v17  ;;  %v4742_v60 = vmul.f32 %v1380_v22, %v4082_v44  ;;  %v4748_v12 = vmul.f32 %v1069_v29, %v4156_v3 }
 0x150   :  { %v1382_v18 = vpop.f32.mrf.mxu1  ;;  %v1071_v61 = vpop.f32.mrf.mxu0 }
 0x151   :  { %6342 = vst [vmem:[#allocation81_spill] sm:$0xff] %v4742_v60  ;;  %6344 = vst [vmem:[#allocation83_spill] sm:$0xff] %v4748_v12  ;;  %v4754_v41 = vmul.f32 %v1382_v18, %v4036_v16  ;;  %v4757_v56 = vmul.f32 %v1071_v61, %v4105_v53 }
 0x152   :  { %v1384_v59 = vpop.f32.mrf.mxu1  ;;  %v1073_v32 = vpop.f32.mrf.mxu0 }
 0x153   :  { %v4745_v8 = vmul.f32 %v1384_v59, %v4088_v63  ;;  %v4751_v2 = vmul.f32 %v1073_v32, %v4158_v4  ;;  %6346 = vst [vmem:[#allocation85_spill] sm:$0xff] %v4754_v41  ;;  %6347 = vst [vmem:[#allocation86_spill] sm:$0xff] %v4757_v56 }
 0x154   :  { %v1386_v24 = vpop.f32.mrf.mxu1  ;;  %v1075_v50 = vpop.f32.mrf.mxu0 }
 0x155   :  { %6343 = vst [vmem:[#allocation82_spill] sm:$0xff] %v4745_v8  ;;  %6345 = vst [vmem:[#allocation84_spill] sm:$0xff] %v4751_v2  ;;  %v4762_v59 = vmul.f32 %v1386_v24, %v4042_v20  ;;  %v4767_v32 = vmul.f32 %v1075_v50, %v4114_v47 }
 0x156   :  { %v1390_v19 = vpop.f32.mrf.mxu1  ;;  %3362 = vmatmul.mubr.msk.bf16.gmra.mxu1 %vm1661_vm2, %v3429_v1  ;;  %v1079_v18 = vpop.f32.mrf.mxu0  ;;  %3345 = vmatmul.mubr.msk.bf16.gmra.mxu0 %vm1661_vm2, %v3430_v5  ;;  %v3431_v1 = vld [vmem:[%s6069_s4 + $0x58] sm:$0xff]  }
 0x157   :  { %6348 = vst [vmem:[#allocation87_spill] sm:$0xff] %v4762_v59  ;;  %6349 = vst [vmem:[#allocation88_spill] sm:$0xff] %v4767_v32  ;;  %2059 = vmatprep.mubr.bf16.mxu1 %v6295_v17  ;;  %1868 = vmatprep.mubr.bf16.mxu0 %v6295_v17  ;;  %v4781_v8 = vmul.f32 %v1390_v19, %v4169_v33  ;;  %v4787_v22 = vmul.f32 %v1079_v18, %v4063_v46 }
 0x158   :  { %v1392_v24 = vpop.f32.mrf.mxu1  ;;  %v1081_v60 = vpop.f32.mrf.mxu0 }
 0x159   :  { %6350 = vst [vmem:[#allocation89_spill] sm:$0xff] %v4781_v8  ;;  %6352 = vst [vmem:[#allocation91_spill] sm:$0xff] %v4787_v22  ;;  %v4793_v59 = vmul.f32 %v1392_v24, %v4132_v36  ;;  %v4796_v2 = vmul.f32 %v1081_v60, %v4010_v40 }
 0x15a   :  { %v1394_v50 = vpop.f32.mrf.mxu1  ;;  %v1083_v29 = vpop.f32.mrf.mxu0 }
 0x15b   :  { %v4784_v61 = vmul.f32 %v1394_v50, %v4174_v51  ;;  %v4790_v41 = vmul.f32 %v1083_v29, %v4065_v37  ;;  %6354 = vst [vmem:[#allocation93_spill] sm:$0xff] %v4793_v59  ;;  %6355 = vst [vmem:[#allocation94_spill] sm:$0xff] %v4796_v2 }
 0x15c   :  { %v1396_v12 = vpop.f32.mrf.mxu1  ;;  %v1085_v56 = vpop.f32.mrf.mxu0 }
 0x15d   :  { %6351 = vst [vmem:[#allocation90_spill] sm:$0xff] %v4784_v61  ;;  %6353 = vst [vmem:[#allocation92_spill] sm:$0xff] %v4790_v41  ;;  %v4801_v50 = vmul.f32 %v1396_v12, %v4134_v11  ;;  %v4806_v29 = vmul.f32 %v1085_v56, %v4012_v48 }
 0x15e   :  { %v1400_v32 = vpop.f32.mrf.mxu1  ;;  %3363 = vmatmul.mubr.msk.bf16.gmra.mxu1 %vm1661_vm2, %v3430_v5  ;;  %v1089_v24 = vpop.f32.mrf.mxu0  ;;  %3346 = vmatmul.mubr.msk.bf16.gmra.mxu0 %vm1661_vm2, %v3431_v1  ;;  %v3432_v5 = vld [vmem:[%s6069_s4 + $0x60] sm:$0xff]  }
 0x15f   :  { %6356 = vst [vmem:[#allocation95_spill] sm:$0xff] %v4801_v50  ;;  %6357 = vst [vmem:[#allocation96_spill] sm:$0xff] %v4806_v29  ;;  %2069 = vmatprep.mubr.bf16.mxu1 %v6295_v17  ;;  %1878 = vmatprep.mubr.bf16.mxu0 %v6295_v17  ;;  %v4820_v61 = vmul.f32 %v1400_v32, %v4082_v44  ;;  %v4826_v19 = vmul.f32 %v1089_v24, %v4156_v3 }
 0x160   :  { %v1402_v12 = vpop.f32.mrf.mxu1  ;;  %v1091_v8 = vpop.f32.mrf.mxu0 }
 0x161   :  { %6358 = vst [vmem:[#allocation97_spill] sm:$0xff] %v4820_v61  ;;  %6360 = vst [vmem:[#allocation99_spill] sm:$0xff] %v4826_v19  ;;  %v4832_v50 = vmul.f32 %v1402_v12, %v4036_v16  ;;  %v4835_v41 = vmul.f32 %v1091_v8, %v4105_v53 }
 0x162   :  { %v1404_v56 = vpop.f32.mrf.mxu1  ;;  %v1093_v18 = vpop.f32.mrf.mxu0 }
 0x163   :  { %v4823_v60 = vmul.f32 %v1404_v56, %v4088_v63  ;;  %v4829_v59 = vmul.f32 %v1093_v18, %v4158_v4  ;;  %6362 = vst [vmem:[#allocation101_spill] sm:$0xff] %v4832_v50  ;;  %6363 = vst [vmem:[#allocation102_spill] sm:$0xff] %v4835_v41 }
 0x164   :  { %v1406_v22 = vpop.f32.mrf.mxu1  ;;  %v1095_v2 = vpop.f32.mrf.mxu0 }
 0x165   :  { %6359 = vst [vmem:[#allocation98_spill] sm:$0xff] %v4823_v60  ;;  %6361 = vst [vmem:[#allocation100_spill] sm:$0xff] %v4829_v59  ;;  %v4840_v56 = vmul.f32 %v1406_v22, %v4042_v20  ;;  %v4845_v18 = vmul.f32 %v1095_v2, %v4114_v47 }
 0x166   :  { %v1410_v29 = vpop.f32.mrf.mxu1  ;;  %3364 = vmatmul.mubr.msk.bf16.gmra.mxu1 %vm1661_vm2, %v3431_v1  ;;  %v1099_v12 = vpop.f32.mrf.mxu0  ;;  %3347 = vmatmul.mubr.msk.bf16.gmra.mxu0 %vm1661_vm2, %v3432_v5  ;;  %v3433_v1 = vld [vmem:[%s6069_s4 + $0x68] sm:$0xff]  }
 0x167   :  { %6364 = vst [vmem:[#allocation103_spill] sm:$0xff] %v4840_v56  ;;  %6365 = vst [vmem:[#allocation104_spill] sm:$0xff] %v4845_v18  ;;  %2079 = vmatprep.mubr.bf16.mxu1 %v6295_v17  ;;  %1888 = vmatprep.mubr.bf16.mxu0 %v6295_v17  ;;  %v4859_v60 = vmul.f32 %v1410_v29, %v4169_v33  ;;  %v4865_v32 = vmul.f32 %v1099_v12, %v4063_v46 }
 0x168   :  { %v1412_v22 = vpop.f32.mrf.mxu1  ;;  %v1101_v61 = vpop.f32.mrf.mxu0 }
 0x169   :  { %6366 = vst [vmem:[#allocation105_spill] sm:$0xff] %v4859_v60  ;;  %6368 = vst [vmem:[#allocation107_spill] sm:$0xff] %v4865_v32  ;;  %v4871_v56 = vmul.f32 %v1412_v22, %v4132_v36  ;;  %v4874_v59 = vmul.f32 %v1101_v61, %v4010_v40 }
 0x16a   :  { %v1414_v2 = vpop.f32.mrf.mxu1  ;;  %v1103_v24 = vpop.f32.mrf.mxu0 }
 0x16b   :  { %v4862_v8 = vmul.f32 %v1414_v2, %v4174_v51  ;;  %v4868_v50 = vmul.f32 %v1103_v24, %v4065_v37  ;;  %6370 = vst [vmem:[#allocation109_spill] sm:$0xff] %v4871_v56  ;;  %6371 = vst [vmem:[#allocation110_spill] sm:$0xff] %v4874_v59 }
 0x16c   :  { %v1416_v19 = vpop.f32.mrf.mxu1  ;;  %v1105_v41 = vpop.f32.mrf.mxu0 }
 0x16d   :  { %6367 = vst [vmem:[#allocation106_spill] sm:$0xff] %v4862_v8  ;;  %6369 = vst [vmem:[#allocation108_spill] sm:$0xff] %v4868_v50  ;;  %v4879_v2 = vmul.f32 %v1416_v19, %v4134_v11  ;;  %v4884_v24 = vmul.f32 %v1105_v41, %v4012_v48 }
 0x16e   :  { %v1420_v18 = vpop.f32.mrf.mxu1  ;;  %3365 = vmatmul.mubr.msk.bf16.gmra.mxu1 %vm1661_vm2, %v3432_v5  ;;  %v1109_v22 = vpop.f32.mrf.mxu0  ;;  %3348 = vmatmul.mubr.msk.bf16.gmra.mxu0 %vm1661_vm2, %v3433_v1  ;;  %v3434_v5 = vld [vmem:[%s6069_s4 + $0x70] sm:$0xff]  }
 0x16f   :  { %6372 = vst [vmem:[#allocation111_spill] sm:$0xff] %v4879_v2  ;;  %6373 = vst [vmem:[#allocation112_spill] sm:$0xff] %v4884_v24  ;;  %2089 = vmatprep.mubr.bf16.mxu1 %v6295_v17  ;;  %1898 = vmatprep.mubr.bf16.mxu0 %v6295_v17  ;;  %v4898_v8 = vmul.f32 %v1420_v18, %v4082_v44  ;;  %v4904_v29 = vmul.f32 %v1109_v22, %v4156_v3 }
 0x170   :  { %v1422_v19 = vpop.f32.mrf.mxu1  ;;  %v1111_v60 = vpop.f32.mrf.mxu0 }
 0x171   :  { %6374 = vst [vmem:[#allocation113_spill] sm:$0xff] %v4898_v8  ;;  %6376 = vst [vmem:[#allocation115_spill] sm:$0xff] %v4904_v29  ;;  %v4910_v2 = vmul.f32 %v1422_v19, %v4036_v16  ;;  %v4913_v50 = vmul.f32 %v1111_v60, %v4105_v53 }
 0x172   :  { %v1424_v41 = vpop.f32.mrf.mxu1  ;;  %v1113_v12 = vpop.f32.mrf.mxu0 }
 0x173   :  { %v4901_v61 = vmul.f32 %v1424_v41, %v4088_v63  ;;  %v4907_v56 = vmul.f32 %v1113_v12, %v4158_v4  ;;  %6378 = vst [vmem:[#allocation117_spill] sm:$0xff] %v4910_v2  ;;  %6379 = vst [vmem:[#allocation118_spill] sm:$0xff] %v4913_v50 }
 0x174   :  { %v1426_v32 = vpop.f32.mrf.mxu1  ;;  %v1115_v59 = vpop.f32.mrf.mxu0 }
 0x175   :  { %6375 = vst [vmem:[#allocation114_spill] sm:$0xff] %v4901_v61  ;;  %6377 = vst [vmem:[#allocation116_spill] sm:$0xff] %v4907_v56  ;;  %v4918_v41 = vmul.f32 %v1426_v32, %v4042_v20  ;;  %v4923_v12 = vmul.f32 %v1115_v59, %v4114_v47 }
 0x176   :  { %v1430_v24 = vpop.f32.mrf.mxu1  ;;  %3366 = vmatmul.mubr.msk.bf16.gmra.mxu1 %vm1661_vm2, %v3433_v1  ;;  %v1119_v19 = vpop.f32.mrf.mxu0  ;;  %3349 = vmatmul.mubr.msk.bf16.gmra.mxu0 %vm1661_vm2, %v3434_v5  ;;  %v3435_v1 = vld [vmem:[%s6069_s4 + $0x78] sm:$0xff]  }
 0x177   :  { %6380 = vst [vmem:[#allocation119_spill] sm:$0xff] %v4918_v41  ;;  %6381 = vst [vmem:[#allocation120_spill] sm:$0xff] %v4923_v12  ;;  %2099 = vmatprep.mubr.bf16.mxu1 %v6295_v17  ;;  %1908 = vmatprep.mubr.bf16.mxu0 %v6295_v17  ;;  %v4939_v61 = vmul.f32 %v1430_v24, %v4169_v33  ;;  %v4945_v18 = vmul.f32 %v1119_v19, %v4063_v46 }
 0x178   :  { %v1432_v32 = vpop.f32.mrf.mxu1  ;;  %v4932_v8 = vpop.f32.mrf.mxu0 }
 0x179   :  { %6382 = vst [vmem:[#allocation121_spill] sm:$0xff] %v4939_v61  ;;  %6384 = vst [vmem:[#allocation123_spill] sm:$0xff] %v4945_v18  ;;  %v4953_v56 = vmul.f32 %v1432_v32, %v4132_v36 }
 0x17a   :  { %v1434_v59 = vpop.f32.mrf.mxu1  ;;  %v1123_v22 = vpop.f32.mrf.mxu0 }
 0x17b   :  { %v4942_v60 = vmul.f32 %v1434_v59, %v4174_v51  ;;  %v4948_v2 = vmul.f32 %v1123_v22, %v4065_v37  ;;  %6386 = vst [vmem:[#allocation125_spill] sm:$0xff] %v4953_v56  ;;  %v5006_v56 = vld [vmem:[%s6071_s6] sm:$0xff] }
 0x17c   :  { %v1436_v41 = vpop.f32.mrf.mxu1  ;;  %v4950_v29 = vpop.f32.mrf.mxu0 }
 0x17d   :  { %6383 = vst [vmem:[#allocation122_spill] sm:$0xff] %v4942_v60  ;;  %6385 = vst [vmem:[#allocation124_spill] sm:$0xff] %v4948_v2  ;;  %v4958_v24 = vmul.f32 %v1436_v41, %v4134_v11 }
 0x17e   :  { %v1440_v19 = vpop.f32.mrf.mxu1  ;;  %3367 = vmatmul.mubr.msk.bf16.gmra.mxu1 %vm1661_vm2, %v3434_v5  ;;  %v1129_v22 = vpop.f32.mrf.mxu0  ;;  %3350 = vmatmul.mubr.msk.bf16.gmra.mxu0 %vm1661_vm2, %v3435_v1  ;;  %v3436_v5 = vld [vmem:[%s6069_s4 + $0x80] ss:$0 sps:$4 sm:$0xff]  }
 0x17f   :  { %6387 = vst [vmem:[#allocation126_spill] sm:$0xff] %v4958_v24  ;;  %2109 = vmatprep.mubr.bf16.mxu1 %v6295_v17  ;;  %1918 = vmatprep.mubr.bf16.mxu0 %v6295_v17  ;;  %v4976_v59 = vmul.f32 %v1440_v19, %v4082_v44  ;;  %v4982_v12 = vmul.f32 %v1129_v22, %v4156_v3 }
 0x180   :  { %v4967_v32 = vpop.f32.mrf.mxu1  ;;  %v4969_v50 = vpop.f32.mrf.mxu0 }
 0x181   :  { %6388 = vst [vmem:[#allocation127_spill] sm:$0xff] %v4969_v50  ;;  %6389 = vst [vmem:[#allocation128_spill] sm:$0xff] %v4976_v59 }
 0x182   :  { %v1444_v41 = vpop.f32.mrf.mxu1  ;;  %v1133_v11 = vpop.f32.mrf.mxu0  ;;  %6391 = vst [vmem:[#allocation130_spill] sm:$0xff] %v4982_v12 }
 0x183   :  { %v4979_v36 = vmul.f32 %v1444_v41, %v4088_v63  ;;  %v4985_v61 = vmul.f32 %v1133_v11, %v4158_v4 }
 0x184   :  { %v4987_v50 = vpop.f32.mrf.mxu1  ;;  %v4989_v60 = vpop.f32.mrf.mxu0 }
 0x185   :  { %6390 = vst [vmem:[#allocation129_spill] sm:$0xff] %v4979_v36  ;;  %6392 = vst [vmem:[#allocation131_spill] sm:$0xff] %v4985_v61 }
 0x186   :  { %6393 = vst [vmem:[#allocation132_spill] sm:$0xff] %v4989_v60  ;;  %v1450_v24 = vpop.f32.mrf.mxu1  ;;  %3368 = vmatmul.mubr.msk.bf16.gmra.mxu1 %vm1661_vm2, %v3435_v1  ;;  %v1139_v41 = vpop.f32.mrf.mxu0  ;;  %3351 = vmatmul.mubr.msk.bf16.gmra.mxu0 %vm1661_vm2, %v3436_v5 }
 0x187   :  { %2119 = vmatprep.mubr.bf16.mxu1 %v6295_v17  ;;  %2173 = vmatprep.mubr.bf16.mxu0 %v6295_v17  ;;  %v5009_v1 = vmul.f32 %v1450_v24, %v4169_v33  ;;  %v3373_v24 = vcombine.high %v5006_v56, %v5006_v56 }
 0x188   :  { %v4998_v11 = vpop.f32.mrf.mxu1  ;;  %v5000_v22 = vpop.f32.mrf.mxu0 }
 0x189   :  { %6394 = vst [vmem:[#allocation133_spill] sm:$0xff] %v4998_v11  ;;  %6395 = vst [vmem:[#allocation134_spill] sm:$0xff] %v5000_v22  ;;  %v5015_v11 = vmul.f32 %v1139_v41, %v4063_v46  ;;  %v2128_v22 = vld [vmem:[%s6070_s5] sm:$0xf] }
 0x18a   :  { %v1454_v19 = vpop.f32.mrf.mxu1  ;;  %v1143_v12 = vpop.f32.mrf.mxu0  ;;  %6396 = vst [vmem:[#allocation135_spill] sm:$0xff] %v5009_v1 }
 0x18b   :  { %v5012_v61 = vmul.f32 %v1454_v19, %v4174_v51  ;;  %6398 = vst [vmem:[#allocation137_spill] sm:$0xff] %v5015_v11  ;;  %v5018_v60 = vmul.f32 %v1143_v12, %v4065_v37  ;;  %v6405_v19 = vpack.c.bf16 %v4467_v43, %v4457_v57  ;;  %v6411_v57 = vpack.c.bf16 %v4451_v42, %v4448_v23  ;;  %v6468_v11 = vld [vmem:[#allocation33_spill] sm:$0xff] }
 0x18c   :  { %v5023_v59 = vpop.f32.mrf.mxu1  ;;  %v5025_v36 = vpop.f32.mrf.mxu0  ;;  %v6413_v23 = vpack.c.bf16 %v4517_v28, %v4514_v21  ;;  %v6414_v42 = vpack.c.bf16 %v4499_v15, %v4493_v7  ;;  %v6420_v15 = vpack.c.bf16 %v4484_v13, %v4481_v0 }
 0x18d   :  { %6397 = vst [vmem:[#allocation136_spill] sm:$0xff] %v5012_v61  ;;  %6399 = vst [vmem:[#allocation138_spill] sm:$0xff] %v5018_v60  ;;  %v6469_v60 = vld [vmem:[#allocation31_spill] sm:$0xff] }
 0x18e   :  { %6400 = vst [vmem:[#allocation139_spill] sm:$0xff] %v5023_v59  ;;  %6401 = vst [vmem:[#allocation140_spill] sm:$0xff] %v5025_v36  ;;  %v1460_v12 = vpop.f32.mrf.mxu1  ;;  %3369 = vmatmul.mubr.msk.bf16.gmra.mxu1 %vm1661_vm2, %v3436_v5  ;;  %v1149_v18 = vpop.f32.mrf.mxu0  ;;  %3370 = vmatmul.mubr.msk.bf16.vlgmr.msra.gmra.mxu0 %vm2137_vm12, %v2128_v22  ;;  %v6403_v36 = vpack.c.bf16 %v4490_v45, %v4487_v38  ;;  %v6439_v38 = vld [vmem:[#allocation43_spill] sm:$0xff] }
 0x18f   :  { %2214 = vmatprep.mubr.bf16.mxu1 %v6295_v17  ;;  %3374 = vmatprep.mubr.msk.bf16.mxu0 %vm2374_vm3, %v3373_v24  ;;  %v5048_v1 = vmul.f32 %v1460_v12, %v4082_v44  ;;  %v5054_v61 = vmul.f32 %v1149_v18, %v4156_v3  ;;  %v6412_v18 = vpack.c.bf16 %v4426_v49, %v4412_v35 }
 0x190   :  { %v5036_v59 = vpop.f32.mrf.mxu1  ;;  %2379 = vmatpush1.bf16.msra.mxu0 %v6403_v36  ;;  %v5041_v2 = vpop.f32.mrf.mxu0  ;;  %v6417_v49 = vpack.c.bf16 %v4381_v26, %v4367_v25  ;;  %v6423_v26 = vld [vmem:[#allocation48_spill] sm:$0xff] }
 0x191   :  { %6402 = vst [vmem:[#allocation141_spill] sm:$0xff] %v5036_v59  ;;  %6404 = vst [vmem:[#allocation142_spill] sm:$0xff] %v5041_v2  ;;  %2380 = vmatprep.subr.bf16.mxu0 %v6405_v19 }
 0x192   :  { %v1464_v5 = vpop.f32.mrf.mxu1  ;;  %v1153_v41 = vpop.f32.mrf.mxu0  ;;  %6406 = vst [vmem:[#allocation143_spill] sm:$0xff] %v5048_v1  ;;  %6408 = vst [vmem:[#allocation145_spill] sm:$0xff] %v5054_v61  ;;  %v6445_v1 = vld [vmem:[#allocation24_spill] sm:$0xff] }
 0x193   :  { %v5051_v17 = vmul.f32 %v1464_v5, %v4088_v63  ;;  %v5057_v36 = vmul.f32 %v1153_v41, %v4158_v4 }
 0x194   :  { %v5059_v45 = vpop.f32.mrf.mxu1  ;;  %2381 = vmatpush1.bf16.msra.mxu0 %v6411_v57  ;;  %v5064_v43 = vpop.f32.mrf.mxu0  ;;  %v6416_v57 = vpack.c.bf16 %v4406_v55, %v4403_v58  ;;  %v6424_v55 = vld [vmem:[#allocation47_spill] sm:$0xff] }
 0x195   :  { %6407 = vst [vmem:[#allocation144_spill] sm:$0xff] %v5051_v17  ;;  %6409 = vst [vmem:[#allocation146_spill] sm:$0xff] %v5057_v36  ;;  %2382 = vmatprep.subr.bf16.mxu0 %v6412_v18 }
 0x196   :  { %6410 = vst [vmem:[#allocation147_spill] sm:$0xff] %v5059_v45  ;;  %v1470_v41 = vpop.f32.mrf.mxu1  ;;  %3371 = vmatmul.mubr.msk.bf16.vlgmr.msra.gmra.mxu1 %vm2137_vm12, %v2128_v22  ;;  %v1159_v12 = vpop.f32.mrf.mxu0 }
 0x197   :  { %2420 = vmatpush1.bf16.msra.mxu1 %v6413_v23  ;;  %3375 = vmatprep.mubr.msk.bf16.mxu1 %vm2374_vm3, %v3373_v24  ;;  %v5090_v21 = vmul.f32 %v1470_v41, %v4169_v33  ;;  %v5099_v58 = vmul.f32 %v1159_v12, %v4063_v46  ;;  %v6425_v24 = vpack.c.bf16 %v6423_v26, %v6424_v55  ;;  %v6427_v41 = vld [vmem:[#allocation38_spill] sm:$0xff]  ;;  %v6428_v23 = vld [vmem:[#allocation37_spill] sm:$0xff] }
 0x198   :  { %2421 = vmatprep.subr.bf16.mxu1 %v6414_v42  ;;  %v5080_v5 = vpop.f32.mrf.mxu1  ;;  %2383 = vmatpush1.bf16.msra.mxu0 %v6416_v57  ;;  %v1161_v35 = vpop.f32.mrf.mxu0  ;;  %v6429_v42 = vpack.c.bf16 %v6427_v41, %v6428_v23  ;;  %v6436_v41 = vld [vmem:[#allocation45_spill] sm:$0xff]  ;;  %v6441_v12 = vld [vmem:[#allocation30_spill] sm:$0xff] }
 0x199   :  { %6415 = vst [vmem:[#allocation148_spill] sm:$0xff] %v5080_v5  ;;  %2384 = vmatprep.subr.bf16.mxu0 %v6417_v49  ;;  %6418 = vst [vmem:[#allocation149_spill] sm:$0xff] %v5090_v21  ;;  %v5115_v13 = vmul.f32 %v1161_v35, %v4010_v40  ;;  %v6431_v49 = vld [vmem:[#allocation34_spill] sm:$0xff]  ;;  %v6523_v5 = vld [vmem:[#allocation49_spill] sm:$0xff] }
 0x19a   :  { %v1474_v22 = vpop.f32.mrf.mxu1  ;;  %v1163_v28 = vpop.f32.mrf.mxu0  ;;  %6421 = vst [vmem:[#allocation151_spill] sm:$0xff] %v5099_v58  ;;  %v6458_v35 = vld [vmem:[#allocation22_spill] sm:$0xff] }
 0x19b   :  { %v5093_v7 = vmul.f32 %v1474_v22, %v4174_v51  ;;  %2422 = vmatpush1.bf16.msra.mxu1 %v6420_v15  ;;  %v5102_v25 = vmul.f32 %v1163_v28, %v4065_v37  ;;  %6430 = vst [vmem:[#allocation47_spill] sm:$0xff] %v5115_v13  ;;  %v6432_v22 = vld [vmem:[#allocation32_spill] sm:$0xff]  ;;  %v6538_v58 = vld [vmem:[#allocation118_spill] sm:$0xff] }
 0x19c   :  { %2423 = vmatprep.subr.bf16.mxu1 %v6425_v24  ;;  %v5107_v18 = vpop.f32.mrf.mxu1  ;;  %2385 = vmatpush1.bf16.msra.mxu0 %v6429_v42  ;;  %v1165_v57 = vpop.f32.mrf.mxu0  ;;  %v6433_v28 = vpack.c.bf16 %v6431_v49, %v6432_v22  ;;  %v6435_v24 = vld [vmem:[#allocation46_spill] sm:$0xff]  ;;  %v6438_v42 = vld [vmem:[#allocation44_spill] sm:$0xff]  ;;  %v6442_v49 = vld [vmem:[#allocation29_spill] sm:$0xff] }
 0x19d   :  { %6419 = vst [vmem:[#allocation150_spill] sm:$0xff] %v5093_v7  ;;  %6422 = vst [vmem:[#allocation152_spill] sm:$0xff] %v5102_v25  ;;  %v5123_v15 = vmul.f32 %v1165_v57, %v4012_v48  ;;  %v6437_v23 = vpack.c.bf16 %v6435_v24, %v6436_v41  ;;  %v6440_v0 = vpack.c.bf16 %v6438_v42, %v6439_v38  ;;  %v6449_v38 = vld [vmem:[#allocation42_spill] sm:$0xff]  ;;  %v6551_v13 = vld [vmem:[#allocation128_spill] sm:$0xff] }
 0x19e   :  { %6426 = vst [vmem:[#allocation48_spill] sm:$0xff] %v5107_v18  ;;  %2386 = vmatprep.subr.bf16.mxu0 %v6433_v28  ;;  %v1480_v26 = vpop.f32.mrf.mxu1  ;;  %v1169_v55 = vpop.f32.mrf.mxu0  ;;  %v6443_v22 = vpack.c.bf16 %v6441_v12, %v6442_v49  ;;  %v6444_v28 = vld [vmem:[#allocation26_spill] sm:$0xff] }
 0x19f   :  { %6434 = vst [vmem:[#allocation38_spill] sm:$0xff] %v5123_v15  ;;  %2424 = vmatpush1.bf16.msra.mxu1 %v6437_v23  ;;  %v6446_v17 = vpack.c.bf16 %v6444_v28, %v6445_v1  ;;  %v5140_v41 = vmul.f32 %v1480_v26, %v4082_v44  ;;  %v5149_v12 = vmul.f32 %v1169_v55, %v4156_v3  ;;  %v6455_v1 = vld [vmem:[#allocation40_spill] sm:$0xff] }
 0x1a0   :  { %2425 = vmatprep.subr.bf16.mxu1 %v6440_v0  ;;  %v1482_v19 = vpop.f32.mrf.mxu1  ;;  %2387 = vmatpush1.bf16.msra.mxu0 %v6443_v22  ;;  %v1171_v57 = vpop.f32.mrf.mxu0  ;;  %v6450_v0 = vld [vmem:[#allocation41_spill] sm:$0xff]  ;;  %v6456_v22 = vld [vmem:[#allocation39_spill] sm:$0xff] }
 0x1a1   :  { %2388 = vmatprep.subr.bf16.mxu0 %v6446_v17  ;;  %6447 = vst [vmem:[#allocation37_spill] sm:$0xff] %v5140_v41  ;;  %v6451_v42 = vpack.c.bf16 %v6449_v38, %v6450_v0  ;;  %6452 = vst [vmem:[#allocation32_spill] sm:$0xff] %v5149_v12  ;;  %v5155_v17 = vmul.f32 %v1482_v19, %v4036_v16  ;;  %v6457_v26 = vpack.c.bf16 %v6455_v1, %v6456_v22  ;;  %v6459_v38 = vld [vmem:[#allocation21_spill] sm:$0xff]  ;;  %v6462_v1 = vld [vmem:[#allocation18_spill] sm:$0xff] }
 0x1a2   :  { %v1484_v21 = vpop.f32.mrf.mxu1  ;;  %v1173_v24 = vpop.f32.mrf.mxu0  ;;  %v6460_v0 = vpack.c.bf16 %v6458_v35, %v6459_v38  ;;  %v6463_v22 = vld [vmem:[#allocation17_spill] sm:$0xff]  ;;  %v6474_v38 = vld [vmem:[#allocation10_spill] sm:$0xff] }
 0x1a3   :  { %v5143_v23 = vmul.f32 %v1484_v21, %v4088_v63  ;;  %2426 = vmatpush1.bf16.msra.mxu1 %v6451_v42  ;;  %v5152_v49 = vmul.f32 %v1173_v24, %v4158_v4  ;;  %6454 = vst [vmem:[#allocation45_spill] sm:$0xff] %v5155_v17  ;;  %v5161_v21 = vmul.f32 %v1171_v57, %v4105_v53  ;;  %v6466_v24 = vld [vmem:[#allocation35_spill] sm:$0xff] }
 0x1a4   :  { %2427 = vmatprep.subr.bf16.mxu1 %v6457_v26  ;;  %v1486_v28 = vpop.f32.mrf.mxu1  ;;  %2389 = vmatpush1.bf16.msra.mxu0 %v6460_v0  ;;  %v1175_v55 = vpop.f32.mrf.mxu0  ;;  %v6464_v26 = vpack.c.bf16 %v6462_v1, %v6463_v22  ;;  %v6465_v0 = vld [vmem:[#allocation36_spill] sm:$0xff]  ;;  %v6470_v1 = vpack.c.bf16 %v6468_v11, %v6469_v60 }
 0x1a5   :  { %6448 = vst [vmem:[#allocation34_spill] sm:$0xff] %v5143_v23  ;;  %6453 = vst [vmem:[#allocation46_spill] sm:$0xff] %v5152_v49  ;;  %v5169_v42 = vmul.f32 %v1486_v28, %v4042_v20  ;;  %v5177_v57 = vmul.f32 %v1175_v55, %v4114_v47  ;;  %v6467_v28 = vpack.c.bf16 %v6465_v0, %v6466_v24  ;;  %v6471_v55 = vld [vmem:[#allocation14_spill] sm:$0xff]  ;;  %v6475_v23 = vld [vmem:[#allocation9_spill] sm:$0xff] }
 0x1a6   :  { %2390 = vmatprep.subr.bf16.mxu0 %v6464_v26  ;;  %v1490_v7 = vpop.f32.mrf.mxu1  ;;  %v5179_v35 = vpop.f32.mrf.mxu0  ;;  %v6472_v26 = vld [vmem:[#allocation13_spill] sm:$0xff]  ;;  %v6476_v45 = vpack.c.bf16 %v6474_v38, %v6475_v23  ;;  %v6479_v11 = vld [vmem:[#allocation28_spill] sm:$0xff]  ;;  %v6486_v23 = vld [vmem:[#allocation7_spill] sm:$0xff] }
 0x1a7   :  { %6461 = vst [vmem:[#allocation44_spill] sm:$0xff] %v5169_v42  ;;  %2428 = vmatpush1.bf16.msra.mxu1 %v6467_v28  ;;  %v6473_v59 = vpack.c.bf16 %v6471_v55, %v6472_v26  ;;  %v5204_v28 = vmul.f32 %v1490_v7, %v4169_v33  ;;  %v6483_v55 = vld [vmem:[#allocation23_spill] sm:$0xff]  ;;  %v6495_v7 = vpack.c.bf16 %v4634_v6, %v4631_v30 }
 0x1a8   :  { %2429 = vmatprep.subr.bf16.mxu1 %v6470_v1  ;;  %v5191_v22 = vpop.f32.mrf.mxu1  ;;  %v5196_v41 = vpop.f32.mrf.mxu0  ;;  %v6480_v1 = vld [vmem:[#allocation27_spill] sm:$0xff] }
 0x1a9   :  { %2391 = vmatpush1.bf16.msra.mxu0 %v6473_v59  ;;  %6477 = vst [vmem:[#allocation43_spill] sm:$0xff] %v5204_v28  ;;  %v6481_v19 = vpack.c.bf16 %v6479_v11, %v6480_v1  ;;  %v6482_v59 = vld [vmem:[#allocation25_spill] sm:$0xff]  ;;  %v6489_v1 = vld [vmem:[#allocation20_spill] sm:$0xff]  ;;  %v6501_v30 = vld [vmem:[#allocation63_spill] sm:$0xff] }
 0x1aa   :  { %2392 = vmatprep.subr.bf16.mxu0 %v6476_v45  ;;  %v1494_v24 = vpop.f32.mrf.mxu1  ;;  %v5201_v0 = vpop.f32.mrf.mxu0  ;;  %v6484_v26 = vpack.c.bf16 %v6482_v59, %v6483_v55  ;;  %v6485_v45 = vld [vmem:[#allocation8_spill] sm:$0xff]  ;;  %v6490_v59 = vld [vmem:[#allocation19_spill] sm:$0xff] }
 0x1ab   :  { %v5207_v60 = vmul.f32 %v1494_v24, %v4174_v51  ;;  %2430 = vmatpush1.bf16.msra.mxu1 %v6481_v19  ;;  %v6487_v38 = vpack.c.bf16 %v6485_v45, %v6486_v23  ;;  %v6488_v24 = vpack.c.bf16 %v4650_v31, %v4640_v52  ;;  %v6491_v55 = vpack.c.bf16 %v6489_v1, %v6490_v59  ;;  %v6493_v45 = vld [vmem:[#allocation15_spill] sm:$0xff]  ;;  %v6497_v59 = vld [vmem:[#allocation12_spill] sm:$0xff] }
 0x1ac   :  { %2431 = vmatprep.subr.bf16.mxu1 %v6484_v26  ;;  %v5215_v61 = vpop.f32.mrf.mxu1  ;;  %v5220_v36 = vpop.f32.mrf.mxu0  ;;  %v6492_v26 = vld [vmem:[#allocation16_spill] sm:$0xff]  ;;  %v6496_v31 = vpack.c.bf16 %v4611_v10, %v4601_v9 }
 0x1ad   :  { %6478 = vst [vmem:[#allocation30_spill] sm:$0xff] %v5207_v60  ;;  %2393 = vmatpush1.bf16.msra.mxu0 %v6487_v38  ;;  %v6494_v23 = vpack.c.bf16 %v6492_v26, %v6493_v45  ;;  %v6500_v45 = vpack.c.bf16 %v4684_v62, %v4676_v39  ;;  %v6503_v10 = vld [vmem:[#allocation60_spill] sm:$0xff]  ;;  %v2522_v39 = vmul.f32 %v4950_v29, %v4012_v48 }
 0x1ae   :  { %2402 = vmatprep.subr.bf16.mxu0 %v6488_v24  ;;  %v5227_v19 = vpop.f32.mrf.mxu1  ;;  %v5229_v11 = vpop.f32.mrf.mxu0  ;;  %v6506_v62 = vpack.c.bf16 %v4667_v14, %v4664_v54  ;;  %v6512_v29 = vld [vmem:[#allocation52_spill] sm:$0xff] }
 0x1af   :  { %2432 = vmatpush1.bf16.msra.mxu1 %v6491_v55  ;;  %v6498_v55 = vld [vmem:[#allocation11_spill] sm:$0xff] }
 0x1b0   :  { %2433 = vmatprep.subr.bf16.mxu1 %v6494_v23  ;;  %v5237_v38 = vpop.f32.mrf.mxu1  ;;  %v5242_v52 = vpop.f32.mrf.mxu0  ;;  %v6499_v26 = vpack.c.bf16 %v6497_v59, %v6498_v55  ;;  %v6504_v23 = vld [vmem:[#allocation58_spill] sm:$0xff] }
 0x1b1   :  { %2403 = vmatpush2.bf16.msra.mxu0 %v6495_v7  ;;  %v6502_v7 = vpack.c.bf16 %v4595_v34, %v6501_v30  ;;  %v6507_v34 = vld [vmem:[#allocation68_spill] sm:$0xff]  ;;  %v6510_v30 = vld [vmem:[#allocation55_spill] sm:$0xff] }
 0x1b2   :  { %2404 = vmatprep.subr.bf16.mxu0 %v6496_v31  ;;  %v5247_v24 = vpop.f32.mrf.mxu1  ;;  %v5249_v1 = vpop.f32.mrf.mxu0  ;;  %v6505_v31 = vpack.c.bf16 %v6503_v10, %v6504_v23  ;;  %v6508_v55 = vpack.c.bf16 %v4645_v27, %v6507_v34  ;;  %v2518_v23 = vmul.f32 %v4932_v8, %v4010_v40  ;;  %v5298_v27 = vld [vmem:[%s6072_s7] sm:$0xff]  ;;  %v3372_v8 = vcombine.low %v5006_v56, %v5006_v56 }
 0x1b3   :  { %2434 = vmatpush1.bf16.msra.mxu1 %v6499_v26  ;;  %6515 = vst [vmem:[#allocation29_spill] sm:$0xff] %v5298_v27  ;;  %v6516_v34 = vld [vmem:[#allocation67_spill] sm:$0xff]  ;;  %v2524_v56 = vmul.f32 %v4987_v50, %v4042_v20 }
 0x1b4   :  { %2443 = vmatprep.subr.bf16.mxu1 %v6500_v45  ;;  %v5257_v6 = vpop.f32.mrf.mxu1  ;;  %v5262_v9 = vpop.f32.mrf.mxu0  ;;  %v6509_v45 = vld [vmem:[#allocation56_spill] sm:$0xff]  ;;  %v6534_v50 = vld [vmem:[#allocation123_spill] sm:$0xff] }
 0x1b5   :  { %2405 = vmatpush2.bf16.msra.mxu0 %v6502_v7  ;;  %v6511_v7 = vpack.c.bf16 %v6509_v45, %v6510_v30  ;;  %v6519_v30 = vld [vmem:[#allocation65_spill] sm:$0xff] }
 0x1b6   :  { %2406 = vmatprep.subr.bf16.mxu0 %v6505_v31  ;;  %v5267_v17 = vpop.f32.mrf.mxu1  ;;  %v5269_v59 = vpop.f32.mrf.mxu0  ;;  %v6513_v31 = vld [vmem:[#allocation51_spill] sm:$0xff] }
 0x1b7   :  { %2444 = vmatpush2.bf16.msra.mxu1 %v6506_v62  ;;  %v6514_v42 = vpack.c.bf16 %v6512_v29, %v6513_v31  ;;  %v2618_v62 = vpack.c.bf16 %v2522_v39, %v2518_v23  ;;  %v6522_v31 = vld [vmem:[#allocation50_spill] sm:$0xff]  ;;  %v5317_v39 = vcombine.high %v5298_v27, %v5298_v27 }
 0x1b8   :  { %2445 = vmatprep.subr.bf16.mxu1 %v6508_v55  ;;  %v5279_v26 = vpop.f32.mrf.mxu1  ;;  %v5284_v10 = vpop.f32.mrf.mxu0  ;;  %v6517_v55 = vld [vmem:[#allocation66_spill] sm:$0xff]  ;;  %v6524_v28 = vpack.c.bf16 %v6522_v31, %v6523_v5  ;;  %v2520_v5 = vmul.f32 %v4967_v32, %v4036_v16  ;;  %v6533_v31 = vld [vmem:[#allocation124_spill] sm:$0xff] }
 0x1b9   :  { %2407 = vmatpush2.bf16.msra.mxu0 %v6511_v7  ;;  %v6518_v45 = vpack.c.bf16 %v6516_v34, %v6517_v55  ;;  %v6520_v7 = vld [vmem:[#allocation64_spill] sm:$0xff]  ;;  %6525 = vst [vmem:[#allocation26_spill] sm:$0xff] %v5317_v39  ;;  %v6527_v55 = vld [vmem:[#allocation62_spill] sm:$0xff]  ;;  %v6535_v27 = vpack.c.bf16 %v6533_v31, %v6534_v50  ;;  %v6544_v31 = vld [vmem:[#allocation115_spill] sm:$0xff] }
 0x1ba   :  { %2408 = vmatprep.subr.bf16.mxu0 %v6514_v42  ;;  %v5291_v54 = vpop.f32.mrf.mxu1  ;;  %v5293_v14 = vpop.f32.mrf.mxu0  ;;  %v6521_v42 = vpack.c.bf16 %v6519_v30, %v6520_v7 }
 0x1bb   :  { %2446 = vmatpush2.bf16.msra.mxu1 %v6518_v45  ;;  %v6528_v45 = vld [vmem:[#allocation61_spill] sm:$0xff] }
 0x1bc   :  { %2447 = vmatprep.subr.bf16.mxu1 %v6521_v42  ;;  %v5308_v29 = vpop.f32.mrf.mxu1  ;;  %v5313_v60 = vpop.f32.mrf.mxu0  ;;  %v6529_v30 = vpack.c.bf16 %v6527_v55, %v6528_v45  ;;  %v2620_v45 = vpack.c.bf16 %v2524_v56, %v2520_v5 }
 0x1bd   :  { %2409 = vmatpush2.bf16.msra.mxu0 %v6524_v28  ;;  %v6530_v28 = vld [vmem:[#allocation59_spill] sm:$0xff] }
 0x1be   :  { %2660 = vmatprep.subr.bf16.mxu0 %v2618_v62  ;;  %v5321_v23 = vpop.f32.mrf.mxu1  ;;  %v5323_v34 = vpop.f32.mrf.mxu0  ;;  %v6531_v62 = vld [vmem:[#allocation57_spill] sm:$0xff] }
 0x1bf   :  { %6526 = vst [vmem:[#allocation24_spill] sm:$0xff] %v5323_v34  ;;  %2448 = vmatpush2.bf16.msra.mxu1 %v6529_v30  ;;  %v6532_v7 = vpack.c.bf16 %v6530_v28, %v6531_v62  ;;  %v6537_v34 = vld [vmem:[#allocation120_spill] sm:$0xff]  ;;  %v6540_v28 = vld [vmem:[#allocation54_spill] sm:$0xff]  ;;  %v6541_v62 = vld [vmem:[#allocation53_spill] sm:$0xff] }
 0x1c0   :  { %2411 = vmatmul.mubr.bf16.vlgmr.msra.gmra.mxu0 %v3372_v8  ;;  %v5333_v42 = vpop.f32.mrf.mxu1  ;;  %v5338_v18 = vpop.f32.mrf.mxu0  ;;  %v6539_v55 = vpack.c.bf16 %v6537_v34, %v6538_v58  ;;  %v6546_v58 = vld [vmem:[#allocation112_spill] sm:$0xff]  ;;  %v6547_v34 = vld [vmem:[#allocation110_spill] sm:$0xff] }
 0x1c1   :  { %2449 = vmatprep.subr.bf16.mxu1 %v6532_v7  ;;  %2661 = vmatpush1.bf16.msra.mxu0 %v6535_v27  ;;  %6536 = vst [vmem:[#allocation42_spill] sm:$0xff] %v5338_v18  ;;  %v6542_v7 = vpack.c.bf16 %v6540_v28, %v6541_v62  ;;  %v6543_v27 = vld [vmem:[#allocation116_spill] sm:$0xff]  ;;  %v6554_v62 = vld [vmem:[#allocation125_spill] sm:$0xff] }
 0x1c2   :  { %2662 = vmatprep.subr.bf16.mxu0 %v6539_v55  ;;  %2692 = vmatprep.mubr.bf16.mxu0 %v5317_v39  ;;  %v5344_v32 = vpop.f32.mrf.mxu1  ;;  %v1213_v30 = vpop.f32.mrf.mxu0  ;;  %v6545_v50 = vpack.c.bf16 %v6543_v27, %v6544_v31  ;;  %v6548_v55 = vpack.c.bf16 %v6546_v58, %v6547_v34  ;;  %v6558_v31 = vld [vmem:[#allocation107_spill] sm:$0xff]  ;;  %v6560_v58 = vld [vmem:[#allocation104_spill] sm:$0xff]  ;;  %v6561_v34 = vld [vmem:[#allocation102_spill] sm:$0xff] }
 0x1c3   :  { %2450 = vmatpush2.bf16.msra.mxu1 %v6542_v7  ;;  %v6550_v30 = vld [vmem:[#allocation129_spill] sm:$0xff] }
 0x1c4   :  { %2701 = vmatprep.subr.bf16.mxu1 %v2620_v45  ;;  %v5349_v25 = vpop.f32.mrf.mxu1  ;;  %v1214_v18 = vpop.f32.mrf.mxu0  ;;  %v6552_v28 = vpack.c.bf16 %v6550_v30, %v6551_v13  ;;  %v6553_v45 = vld [vmem:[#allocation126_spill] sm:$0xff] }
 0x1c5   :  { %2663 = vmatpush1.bf16.msra.mxu0 %v6545_v50  ;;  %v6555_v7 = vpack.c.bf16 %v6553_v45, %v6554_v62  ;;  %v6557_v18 = vld [vmem:[#allocation108_spill] sm:$0xff]  ;;  %v6563_v30 = vld [vmem:[#allocation122_spill] sm:$0xff] }
 0x1c6   :  { %2664 = vmatprep.subr.bf16.mxu0 %v6548_v55  ;;  %2452 = vmatmul.mubr.bf16.vlgmr.msra.gmra.mxu1 %v3372_v8  ;;  %v5357_v56 = vpop.f32.mrf.mxu1  ;;  %v1760_v5 = vpop.f32.mrf.mxu0  ;;  %v6559_v50 = vpack.c.bf16 %v6557_v18, %v6558_v31  ;;  %v6562_v55 = vpack.c.bf16 %v6560_v58, %v6561_v34  ;;  %v6569_v18 = vld [vmem:[#allocation117_spill] sm:$0xff]  ;;  %v6572_v58 = vld [vmem:[#allocation99_spill] sm:$0xff] }
 0x1c7   :  { %6549 = vst [vmem:[#allocation41_spill] sm:$0xff] %v5357_v56  ;;  %2702 = vmatpush1.bf16.msra.mxu1 %v6552_v28  ;;  %2733 = vmatprep.mubr.bf16.mxu1 %v5317_v39  ;;  %v6564_v28 = vld [vmem:[#allocation121_spill] sm:$0xff]  ;;  %v5378_v45 = vmul.f32 %v1760_v5, %v4156_v3  ;;  %v6575_v5 = vld [vmem:[#allocation96_spill] sm:$0xff] }
 0x1c8   :  { %2703 = vmatprep.subr.bf16.mxu1 %v6555_v7  ;;  %v5366_v27 = vpop.f32.mrf.mxu1  ;;  %v1762_v8 = vpop.f32.mrf.mxu0  ;;  %v6565_v39 = vpack.c.bf16 %v6563_v30, %v6564_v28  ;;  %v6568_v7 = vld [vmem:[#allocation119_spill] sm:$0xff]  ;;  %v6576_v30 = vld [vmem:[#allocation94_spill] sm:$0xff] }
 0x1c9   :  { %6556 = vst [vmem:[#allocation40_spill] sm:$0xff] %v5366_v27  ;;  %2665 = vmatpush1.bf16.msra.mxu0 %v6559_v50  ;;  %6566 = vst [vmem:[#allocation39_spill] sm:$0xff] %v5378_v45  ;;  %v6570_v31 = vpack.c.bf16 %v6568_v7, %v6569_v18  ;;  %v6571_v27 = vld [vmem:[#allocation100_spill] sm:$0xff] }
 0x1ca   :  { %2666 = vmatprep.subr.bf16.mxu0 %v6562_v55  ;;  %v1534_v56 = vpop.f32.mrf.mxu1  ;;  %v1764_v13 = vpop.f32.mrf.mxu0  ;;  %v6573_v34 = vpack.c.bf16 %v6571_v27, %v6572_v58  ;;  %v5390_v55 = vmul.f32 %v1762_v8, %v4105_v53  ;;  %v6582_v58 = vld [vmem:[#allocation111_spill] sm:$0xff]  ;;  %v6585_v45 = vld [vmem:[#allocation92_spill] sm:$0xff] }
 0x1cb   :  { %2704 = vmatpush1.bf16.msra.mxu1 %v6565_v39  ;;  %v5381_v62 = vmul.f32 %v1764_v13, %v4158_v4  ;;  %v6577_v13 = vpack.c.bf16 %v6575_v5, %v6576_v30  ;;  %v6586_v5 = vld [vmem:[#allocation91_spill] sm:$0xff] }
 0x1cc   :  { %2705 = vmatprep.subr.bf16.mxu1 %v6570_v31  ;;  %v1535_v50 = vpop.f32.mrf.mxu1  ;;  %v1766_v56 = vpop.f32.mrf.mxu0  ;;  %6574 = vst [vmem:[#allocation21_spill] sm:$0xff] %v5390_v55  ;;  %v6579_v31 = vld [vmem:[#allocation114_spill] sm:$0xff]  ;;  %v6587_v30 = vpack.c.bf16 %v6585_v45, %v6586_v5  ;;  %v6604_v55 = vld [vmem:[#allocation84_spill] sm:$0xff] }
 0x1cd   :  { %6567 = vst [vmem:[#allocation22_spill] sm:$0xff] %v5381_v62  ;;  %2667 = vmatpush1.bf16.msra.mxu0 %v6573_v34  ;;  %v5398_v28 = vmul.f32 %v1766_v56, %v4114_v47  ;;  %v6580_v50 = vld [vmem:[#allocation113_spill] sm:$0xff]  ;;  %v6589_v62 = vld [vmem:[#allocation86_spill] sm:$0xff] }
 0x1ce   :  { %2668 = vmatprep.subr.bf16.mxu0 %v6577_v13  ;;  %v1961_v7 = vpop.f32.mrf.mxu1  ;;  %v1770_v18 = vpop.f32.mrf.mxu0  ;;  %v6581_v27 = vpack.c.bf16 %v6579_v31, %v6580_v50  ;;  %v6583_v34 = vld [vmem:[#allocation109_spill] sm:$0xff]  ;;  %v6588_v13 = vld [vmem:[#allocation88_spill] sm:$0xff] }
 0x1cf   :  { %6578 = vst [vmem:[#allocation18_spill] sm:$0xff] %v5398_v28  ;;  %v6584_v15 = vpack.c.bf16 %v6582_v58, %v6583_v34  ;;  %v6590_v2 = vpack.c.bf16 %v6588_v13, %v6589_v62  ;;  %v5415_v50 = vmul.f32 %v1961_v7, %v4169_v33  ;;  %v6593_v58 = vld [vmem:[#allocation106_spill] sm:$0xff]  ;;  %v5424_v45 = vmul.f32 %v1770_v18, %v4063_v46  ;;  %v6598_v62 = vld [vmem:[#allocation5_spill] sm:$0xff] }
 0x1d0   :  { %2706 = vmatpush1.bf16.msra.mxu1 %v6581_v27  ;;  %v1963_v39 = vpop.f32.mrf.mxu1  ;;  %v1772_v56 = vpop.f32.mrf.mxu0  ;;  %v6601_v13 = vld [vmem:[#allocation101_spill] sm:$0xff] }
 0x1d1   :  { %2707 = vmatprep.subr.bf16.mxu1 %v6584_v15  ;;  %2669 = vmatpush1.bf16.msra.mxu0 %v6587_v30  ;;  %6591 = vst [vmem:[#allocation17_spill] sm:$0xff] %v5415_v50  ;;  %v6594_v15 = vld [vmem:[#allocation105_spill] sm:$0xff]  ;;  %6596 = vst [vmem:[#allocation35_spill] sm:$0xff] %v5424_v45  ;;  %v6600_v30 = vld [vmem:[#allocation103_spill] sm:$0xff] }
 0x1d2   :  { %2670 = vmatprep.subr.bf16.mxu0 %v6590_v2  ;;  %v1965_v12 = vpop.f32.mrf.mxu1  ;;  %v1774_v31 = vpop.f32.mrf.mxu0  ;;  %v6595_v34 = vpack.c.bf16 %v6593_v58, %v6594_v15  ;;  %v5430_v2 = vmul.f32 %v1963_v39, %v6598_v62  ;;  %v6602_v7 = vpack.c.bf16 %v6600_v30, %v6601_v13  ;;  %v6605_v58 = vld [vmem:[#allocation83_spill] sm:$0xff]  ;;  %v6609_v30 = vld [vmem:[#allocation80_spill] sm:$0xff]  ;;  %v6610_v13 = vld [vmem:[#allocation78_spill] sm:$0xff] }
 0x1d3   :  { %v5418_v27 = vmul.f32 %v1965_v12, %v4174_v51  ;;  %v5427_v5 = vmul.f32 %v1774_v31, %v4065_v37  ;;  %v5436_v12 = vmul.f32 %v1772_v56, %v4010_v40  ;;  %v6606_v15 = vpack.c.bf16 %v6604_v55, %v6605_v58  ;;  %v6615_v31 = vld [vmem:[#allocation97_spill] sm:$0xff]  ;;  %v6621_v45 = vld [vmem:[#allocation75_spill] sm:$0xff] }
 0x1d4   :  { %2708 = vmatpush1.bf16.msra.mxu1 %v6595_v34  ;;  %6599 = vst [vmem:[#allocation31_spill] sm:$0xff] %v5430_v2  ;;  %v1967_v8 = vpop.f32.mrf.mxu1  ;;  %v1776_v18 = vpop.f32.mrf.mxu0  ;;  %v6607_v34 = vld [vmem:[#allocation6_spill] sm:$0xff]  ;;  %v2586_v58 = vmul.f32 %v5313_v60, %v4012_v48  ;;  %v6623_v2 = vld [vmem:[#allocation72_spill] sm:$0xff] }
 0x1d5   :  { %6592 = vst [vmem:[#allocation36_spill] sm:$0xff] %v5418_v27  ;;  %6597 = vst [vmem:[#allocation33_spill] sm:$0xff] %v5427_v5  ;;  %2709 = vmatprep.subr.bf16.mxu1 %v6602_v7  ;;  %2671 = vmatpush1.bf16.msra.mxu0 %v6606_v15  ;;  %v5444_v28 = vmul.f32 %v1967_v8, %v6607_v34  ;;  %v6611_v7 = vpack.c.bf16 %v6609_v30, %v6610_v13  ;;  %v6614_v15 = vld [vmem:[#allocation98_spill] sm:$0xff]  ;;  %v6617_v13 = vld [vmem:[#allocation95_spill] sm:$0xff] }
 0x1d6   :  { %6603 = vst [vmem:[#allocation14_spill] sm:$0xff] %v5436_v12  ;;  %v5452_v56 = vmul.f32 %v1776_v18, %v4012_v48  ;;  %v1971_v49 = vpop.f32.mrf.mxu1  ;;  %v5454_v55 = vpop.f32.mrf.mxu0  ;;  %v6616_v50 = vpack.c.bf16 %v6614_v15, %v6615_v31  ;;  %v6620_v27 = vld [vmem:[#allocation76_spill] sm:$0xff]  ;;  %v2582_v8 = vmul.f32 %v5284_v10, %v4010_v40  ;;  %v6624_v31 = vld [vmem:[#allocation71_spill] sm:$0xff]  ;;  %v2585_v15 = vmul.f32 %v5293_v14, %v4065_v37  ;;  %v6628_v10 = vld [vmem:[#allocation90_spill] sm:$0xff] }
 0x1d7   :  { %6608 = vst [vmem:[#allocation13_spill] sm:$0xff] %v5444_v28  ;;  %2672 = vmatprep.subr.bf16.mxu0 %v6611_v7  ;;  %6613 = vst [vmem:[#allocation9_spill] sm:$0xff] %v5454_v55  ;;  %v6618_v7 = vld [vmem:[#allocation93_spill] sm:$0xff]  ;;  %v6622_v5 = vpack.c.bf16 %v6620_v27, %v6621_v45  ;;  %v5485_v45 = vmul.f32 %v1971_v49, %v4082_v44  ;;  %v2581_v14 = vmul.f32 %v5269_v59, %v4063_v46 }
 0x1d8   :  { %6612 = vst [vmem:[#allocation10_spill] sm:$0xff] %v5452_v56  ;;  %2710 = vmatpush1.bf16.msra.mxu1 %v6616_v50  ;;  %v6619_v18 = vpack.c.bf16 %v6617_v13, %v6618_v7  ;;  %v1973_v39 = vpop.f32.mrf.mxu1  ;;  %v5471_v60 = vpop.f32.mrf.mxu0  ;;  %v6625_v50 = vpack.c.bf16 %v6623_v2, %v6624_v31  ;;  %v2578_v7 = vmul.f32 %v5262_v9, %v4114_v47  ;;  %v6631_v31 = vld [vmem:[#allocation87_spill] sm:$0xff]  ;;  %v6634_v9 = vld [vmem:[#allocation70_spill] sm:$0xff] }
 0x1d9   :  { %2673 = vmatpush1.bf16.msra.mxu0 %v6622_v5  ;;  %v2650_v27 = vpack.c.bf16 %v2586_v58, %v2582_v8  ;;  %6626 = vst [vmem:[#allocation28_spill] sm:$0xff] %v5485_v45  ;;  %v6635_v58 = vld [vmem:[#allocation69_spill] sm:$0xff] }
 0x1da   :  { %2711 = vmatprep.subr.bf16.mxu1 %v6619_v18  ;;  %2674 = vmatprep.subr.bf16.mxu0 %v6625_v50  ;;  %v1975_v30 = vpop.f32.mrf.mxu1  ;;  %v5480_v13 = vpop.f32.mrf.mxu0  ;;  %v6629_v18 = vld [vmem:[#allocation89_spill] sm:$0xff]  ;;  %v6636_v8 = vpack.c.bf16 %v6634_v9, %v6635_v58  ;;  %v6640_v58 = vld [vmem:[#allocation82_spill] sm:$0xff] }
 0x1db   :  { %v5488_v5 = vmul.f32 %v1975_v30, %v4088_v63  ;;  %v6630_v2 = vpack.c.bf16 %v6628_v10, %v6629_v18  ;;  %v6632_v50 = vld [vmem:[#allocation85_spill] sm:$0xff]  ;;  %v2574_v30 = vmul.f32 %v5242_v52, %v4105_v53  ;;  %v5506_v10 = vmul.f32 %v1973_v39, %v4036_v16 }
 0x1dc   :  { %v6633_v28 = vpack.c.bf16 %v6631_v31, %v6632_v50  ;;  %v1977_v12 = vpop.f32.mrf.mxu1  ;;  %v5501_v49 = vpop.f32.mrf.mxu0  ;;  %v2588_v31 = vmul.f32 %v5349_v25, %v4042_v20  ;;  %v2570_v39 = vmul.f32 %v5220_v36, %v4012_v48  ;;  %v2584_v25 = vmul.f32 %v5333_v42, %v4036_v16 }
 0x1dd   :  { %6627 = vst [vmem:[#allocation27_spill] sm:$0xff] %v5488_v5  ;;  %2712 = vmatpush1.bf16.msra.mxu1 %v6630_v2  ;;  %2675 = vmatpush1.bf16.msra.mxu0 %v6636_v8  ;;  %6637 = vst [vmem:[#allocation25_spill] sm:$0xff] %v5506_v10  ;;  %v5511_v18 = vmul.f32 %v1977_v12, %v4042_v20  ;;  %v2649_v2 = vpack.c.bf16 %v2585_v15, %v2581_v14  ;;  %v6643_v15 = vld [vmem:[#allocation79_spill] sm:$0xff]  ;;  %v6644_v14 = vld [vmem:[#allocation77_spill] sm:$0xff] }
 0x1de   :  { %2713 = vmatprep.subr.bf16.mxu1 %v6633_v28  ;;  %2676 = vmatprep.subr.bf16.mxu0 %v2650_v27  ;;  %v2577_v28 = vmul.f32 %v5249_v1, %v4158_v4  ;;  %v5517_v50 = vpop.f32.mrf.mxu1  ;;  %v5519_v52 = vpop.f32.mrf.mxu0  ;;  %v2646_v9 = vpack.c.bf16 %v2578_v7, %v2574_v30  ;;  %v6641_v27 = vld [vmem:[#allocation81_spill] sm:$0xff]  ;;  %v2573_v1 = vmul.f32 %v5229_v11, %v4156_v3 }
 0x1df   :  { %6638 = vst [vmem:[#allocation23_spill] sm:$0xff] %v5511_v18  ;;  %6639 = vst [vmem:[#allocation8_spill] sm:$0xff] %v5517_v50  ;;  %v6642_v8 = vpack.c.bf16 %v6640_v58, %v6641_v27  ;;  %v6645_v59 = vpack.c.bf16 %v6643_v15, %v6644_v14  ;;  %v2566_v7 = vmul.f32 %v5196_v41, %v4010_v40  ;;  %v6648_v15 = vld [vmem:[#allocation74_spill] sm:$0xff]  ;;  %v6649_v14 = vld [vmem:[#allocation73_spill] sm:$0xff] }
 0x1e0   :  { %v5535_v45 = vpop.f32.mrf.mxu1  ;;  %v5537_v36 = vpop.f32.mrf.mxu0  ;;  %v2587_v30 = vmul.f32 %v5344_v32, %v4088_v63  ;;  %v2569_v11 = vmul.f32 %v5201_v0, %v4065_v37  ;;  %v2645_v42 = vpack.c.bf16 %v2577_v28, %v2573_v1  ;;  %v2580_v58 = vmul.f32 %v5308_v29, %v6607_v34 }
 0x1e1   :  { %2714 = vmatpush1.bf16.msra.mxu1 %v6642_v8  ;;  %6646 = vst [vmem:[#allocation7_spill] sm:$0xff] %v5535_v45  ;;  %2677 = vmatpush2.bf16.msra.mxu0 %v2649_v2  ;;  %v2642_v8 = vpack.c.bf16 %v2570_v39, %v2566_v7  ;;  %v2583_v41 = vmul.f32 %v5321_v23, %v4082_v44 }
 0x1e2   :  { %2715 = vmatprep.subr.bf16.mxu1 %v6645_v59  ;;  %2678 = vmatprep.subr.bf16.mxu0 %v2646_v9  ;;  %v2652_v59 = vpack.c.bf16 %v2588_v31, %v2584_v25  ;;  %v5547_v27 = vpop.f32.mrf.mxu1  ;;  %v5549_v2 = vpop.f32.mrf.mxu0  ;;  %v6650_v32 = vpack.c.bf16 %v6648_v15, %v6649_v14  ;;  %v2565_v0 = vmul.f32 %v5179_v35, %v4063_v46 }
 0x1e3   :  { %6647 = vst [vmem:[#allocation20_spill] sm:$0xff] %v5547_v27  ;;  %v2576_v28 = vmul.f32 %v5279_v26, %v6598_v62  ;;  %v2579_v39 = vmul.f32 %v5291_v54, %v4174_v51  ;;  %v2651_v23 = vpack.c.bf16 %v2587_v30, %v2583_v41  ;;  %v2572_v1 = vmul.f32 %v5257_v6, %v4042_v20 }
 0x1e4   :  { %v5560_v29 = vpop.f32.mrf.mxu1  ;;  %v5562_v31 = vpop.f32.mrf.mxu0  ;;  %v2641_v9 = vpack.c.bf16 %v2569_v11, %v2565_v0  ;;  %v2575_v26 = vmul.f32 %v5267_v17, %v4169_v33  ;;  %v2571_v6 = vmul.f32 %v5247_v24, %v4088_v63  ;;  %v2564_v17 = vmul.f32 %v5215_v61, %v6607_v34  ;;  %v6657_v61 = vld [vmem:[#allocation32_spill] sm:$0xff]  ;;  %v6659_v0 = vld [vmem:[#allocation142_spill] sm:$0xff] }
 0x1e5   :  { %2716 = vmatpush1.bf16.msra.mxu1 %v6650_v32  ;;  %6651 = vst [vmem:[#allocation19_spill] sm:$0xff] %v5560_v29  ;;  %2679 = vmatpush2.bf16.msra.mxu0 %v2645_v42  ;;  %v2648_v25 = vpack.c.bf16 %v2580_v58, %v2576_v28  ;;  %v2568_v42 = vmul.f32 %v5237_v38, %v4036_v16 }
 0x1e6   :  { %2717 = vmatprep.subr.bf16.mxu1 %v2652_v59  ;;  %2680 = vmatprep.subr.bf16.mxu0 %v2642_v8  ;;  %v5568_v35 = vpop.f32.mrf.mxu1  ;;  %v5570_v7 = vpop.f32.mrf.mxu0  ;;  %v2647_v11 = vpack.c.bf16 %v2579_v39, %v2575_v26  ;;  %v6654_v58 = vpack.c.bf16 %v5177_v57, %v5161_v21  ;;  %v2546_v41 = vmul.f32 %v5064_v43, %v4114_v47  ;;  %v6656_v57 = vld [vmem:[#allocation46_spill] sm:$0xff] }
 0x1e7   :  { %6652 = vst [vmem:[#allocation16_spill] sm:$0xff] %v5568_v35  ;;  %v2644_v59 = vpack.c.bf16 %v2572_v1, %v2568_v42  ;;  %v2567_v15 = vmul.f32 %v5227_v19, %v4082_v44  ;;  %v2560_v24 = vmul.f32 %v5191_v22, %v6598_v62  ;;  %v6658_v14 = vpack.c.bf16 %v6656_v57, %v6657_v61  ;;  %v6660_v39 = vld [vmem:[#allocation38_spill] sm:$0xff]  ;;  %v6669_v57 = vld [vmem:[#allocation48_spill] sm:$0xff] }
 0x1e8   :  { %v5576_v54 = vpop.f32.mrf.mxu1  ;;  %v5578_v30 = vpop.f32.mrf.mxu0  ;;  %v2542_v28 = vmul.f32 %v6659_v0, %v4105_v53  ;;  %v2548_v61 = vmul.f32 %v6669_v57, %v6607_v34  ;;  %v6670_v0 = vld [vmem:[#allocation132_spill] sm:$0xff]  ;;  %v6679_v57 = vld [vmem:[#allocation145_spill] sm:$0xff] }
 0x1e9   :  { %2718 = vmatpush2.bf16.msra.mxu1 %v2651_v23  ;;  %6653 = vst [vmem:[#allocation15_spill] sm:$0xff] %v5576_v54  ;;  %2681 = vmatpush2.bf16.msra.mxu0 %v2641_v9  ;;  %v2643_v43 = vpack.c.bf16 %v2571_v6, %v2567_v15  ;;  %v6661_v23 = vld [vmem:[#allocation47_spill] sm:$0xff]  ;;  %v2640_v9 = vpack.c.bf16 %v2564_v17, %v2560_v24  ;;  %v6668_v17 = vld [vmem:[#allocation134_spill] sm:$0xff] }
 0x1ea   :  { %2719 = vmatprep.subr.bf16.mxu1 %v2648_v25  ;;  %2682 = vmatprep.subr.bf16.mxu0 %v6654_v58  ;;  %v5587_v8 = vpop.f32.mrf.mxu1  ;;  %v5589_v38 = vpop.f32.mrf.mxu0  ;;  %v6662_v19 = vpack.c.bf16 %v6660_v39, %v6661_v23  ;;  %v6664_v25 = vld [vmem:[#allocation140_spill] sm:$0xff]  ;;  %v2630_v42 = vpack.c.bf16 %v2546_v41, %v2542_v28  ;;  %v2534_v24 = vmul.f32 %v6668_v17, %v4010_v40  ;;  %v6671_v39 = vld [vmem:[#allocation30_spill] sm:$0xff]  ;;  %v6672_v23 = vld [vmem:[#allocation43_spill] sm:$0xff] }
 0x1eb   :  { %6655 = vst [vmem:[#allocation12_spill] sm:$0xff] %v5587_v8  ;;  %v2538_v26 = vmul.f32 %v6664_v25, %v4012_v48  ;;  %v6665_v58 = vld [vmem:[#allocation152_spill] sm:$0xff]  ;;  %v2530_v28 = vmul.f32 %v6670_v0, %v4114_v47  ;;  %v6678_v17 = vld [vmem:[#allocation146_spill] sm:$0xff]  ;;  %v6682_v0 = vld [vmem:[#allocation147_spill] sm:$0xff] }
 0x1ec   :  { %v5597_v21 = vpop.f32.mrf.mxu1  ;;  %v5602_v32 = vpop.f32.mrf.mxu0  ;;  %v6680_v12 = vpack.c.bf16 %v6678_v17, %v6679_v57  ;;  %v6686_v17 = vld [vmem:[#allocation141_spill] sm:$0xff] }
 0x1ed   :  { %2720 = vmatpush2.bf16.msra.mxu1 %v2647_v11  ;;  %2683 = vmatpush2.bf16.msra.mxu0 %v6658_v14 }
 0x1ee   :  { %2721 = vmatprep.subr.bf16.mxu1 %v2644_v59  ;;  %2684 = vmatprep.subr.bf16.mxu0 %v6662_v19  ;;  %v5609_v1 = vpop.f32.mrf.mxu1  ;;  %v5611_v22 = vpop.f32.mrf.mxu0  ;;  %v6666_v59 = vld [vmem:[#allocation151_spill] sm:$0xff]  ;;  %v6673_v19 = vpack.c.bf16 %v6671_v39, %v6672_v23  ;;  %v2540_v39 = vmul.f32 %v6682_v0, %v4042_v20 }
 0x1ef   :  { %6663 = vst [vmem:[#allocation11_spill] sm:$0xff] %v5609_v1  ;;  %v6667_v6 = vpack.c.bf16 %v6665_v58, %v6666_v59  ;;  %v6675_v58 = vld [vmem:[#allocation44_spill] sm:$0xff] }
 0x1f0   :  { %v5615_v11 = vpop.f32.mrf.mxu1  ;;  %v5620_v15 = vpop.f32.mrf.mxu0 }
 0x1f1   :  { %2722 = vmatpush2.bf16.msra.mxu1 %v2643_v43  ;;  %2685 = vmatpush2.bf16.msra.mxu0 %v6667_v6  ;;  %v2626_v43 = vpack.c.bf16 %v2538_v26, %v2534_v24  ;;  %v6681_v26 = vld [vmem:[#allocation127_spill] sm:$0xff] }
 0x1f2   :  { %2723 = vmatprep.subr.bf16.mxu1 %v2640_v9  ;;  %2686 = vmatprep.subr.bf16.mxu0 %v2630_v42  ;;  %v5626_v14 = vpop.f32.mrf.mxu1  ;;  %v5628_v41 = vpop.f32.mrf.mxu0  ;;  %v6674_v9 = vld [vmem:[#allocation148_spill] sm:$0xff]  ;;  %v6676_v42 = vld [vmem:[#allocation45_spill] sm:$0xff]  ;;  %v2526_v24 = vmul.f32 %v6681_v26, %v4105_v53  ;;  %v6687_v26 = vld [vmem:[#allocation138_spill] sm:$0xff] }
 0x1f3   :  { %v2544_v25 = vmul.f32 %v6674_v9, %v6598_v62  ;;  %v6677_v59 = vpack.c.bf16 %v6675_v58, %v6676_v42  ;;  %v6683_v42 = vld [vmem:[#allocation34_spill] sm:$0xff] }
 0x1f4   :  { %v5640_v6 = vpop.f32.mrf.mxu1  ;;  %v1816_v5 = vpop.f32.mrf.mxu0  ;;  %v2622_v58 = vpack.c.bf16 %v2530_v28, %v2526_v24 }
 0x1f5   :  { %2724 = vmatpush2.bf16.msra.mxu1 %v6673_v19  ;;  %2687 = vmatpush2.bf16.msra.mxu0 %v6680_v12  ;;  %v2632_v23 = vpack.c.bf16 %v2548_v61, %v2544_v25  ;;  %v2536_v12 = vmul.f32 %v6686_v17, %v4036_v16  ;;  %v6690_v61 = vld [vmem:[#allocation139_spill] sm:$0xff]  ;;  %v2787_v55 = vmul.f32 %v1816_v5, %v4012_v48 }
 0x1f6   :  { %2725 = vmatprep.subr.bf16.mxu1 %v6677_v59  ;;  %2688 = vmatprep.subr.bf16.mxu0 %v2626_v43  ;;  %v5649_v19 = vpop.f32.mrf.mxu1  ;;  %v1820_v9 = vpop.f32.mrf.mxu0  ;;  %v6684_v59 = vld [vmem:[#allocation37_spill] sm:$0xff]  ;;  %v2532_v25 = vmul.f32 %v6690_v61, %v6607_v34  ;;  %v6698_v61 = vld [vmem:[#allocation130_spill] sm:$0xff]  ;;  %v5711_v5 = vmul.f32 %v5549_v2, %v4065_v37 }
 0x1f7   :  { %v6685_v10 = vpack.c.bf16 %v6683_v42, %v6684_v59  ;;  %v6688_v43 = vld [vmem:[#allocation137_spill] sm:$0xff]  ;;  %v2628_v28 = vpack.c.bf16 %v2540_v39, %v2536_v12 }
 0x1f8   :  { %v5656_v57 = vpop.f32.mrf.mxu1  ;;  %v6689_v18 = vpack.c.bf16 %v6687_v26, %v6688_v43  ;;  %v1822_v0 = vpop.f32.mrf.mxu0  ;;  %v6692_v59 = vld [vmem:[#allocation149_spill] sm:$0xff]  ;;  %v6697_v43 = vld [vmem:[#allocation131_spill] sm:$0xff] }
 0x1f9   :  { %2726 = vmatpush2.bf16.msra.mxu1 %v6685_v10  ;;  %v6691_v10 = vld [vmem:[#allocation150_spill] sm:$0xff]  ;;  %v6696_v26 = vld [vmem:[#allocation133_spill] sm:$0xff]  ;;  %v6699_v39 = vpack.c.bf16 %v6697_v43, %v6698_v61  ;;  %v6704_v61 = vld [vmem:[#allocation136_spill] sm:$0xff] }
 0x1fa   :  { %2727 = vmatprep.subr.bf16.mxu1 %v2632_v23  ;;  %2689 = vmatpush2.bf16.msra.mxu0 %v6689_v18  ;;  %v5663_v24 = vpop.f32.mrf.mxu1  ;;  %v1824_v42 = vpop.f32.mrf.mxu0  ;;  %v6693_v50 = vpack.c.bf16 %v6691_v10, %v6692_v59  ;;  %v6694_v23 = vld [vmem:[#allocation29_spill] sm:$0xff]  ;;  %v2528_v18 = vmul.f32 %v6696_v26, %v6598_v62  ;;  %v6701_v59 = vld [vmem:[#allocation143_spill] sm:$0xff]  ;;  %v6703_v26 = vld [vmem:[#allocation26_spill] sm:$0xff] }
 0x1fb   :  { %2690 = vmatprep.subr.bf16.mxu0 %v2622_v58  ;;  %v5670_v17 = vcombine.low %v6694_v23, %v6694_v23 }
 0x1fc   :  { %v5674_v58 = vpop.f32.mrf.mxu1  ;;  %v1826_v12 = vpop.f32.mrf.mxu0  ;;  %v2624_v56 = vpack.c.bf16 %v2532_v25, %v2528_v18 }
 0x1fd   :  { %2728 = vmatpush2.bf16.msra.mxu1 %v6693_v50  ;;  %6695 = vst [vmem:[#allocation63_spill] sm:$0xff] %v5670_v17  ;;  %v6700_v50 = vld [vmem:[#allocation144_spill] sm:$0xff] }
 0x1fe   :  { %2729 = vmatprep.subr.bf16.mxu1 %v2628_v28  ;;  %2691 = vmatpush2.bf16.msra.mxu0 %v6699_v39  ;;  %v5679_v27 = vpop.f32.mrf.mxu1  ;;  %v1830_v10 = vpop.f32.mrf.mxu0  ;;  %v6702_v45 = vpack.c.bf16 %v6700_v50, %v6701_v59  ;;  %v6705_v39 = vld [vmem:[#allocation135_spill] sm:$0xff] }
 0x1ff   :  { %v6706_v25 = vpack.c.bf16 %v6704_v61, %v6705_v39  ;;  %v2798_v59 = vmul.f32 %v1830_v10, %v4063_v46  ;;  %v2791_v61 = vmul.f32 %v1822_v0, %v4105_v53  ;;  %v5707_v10 = vmul.f32 %v5537_v36, %v4010_v40 }
 0x200   :  { %v2023_v23 = vpop.f32.mrf.mxu1  ;;  %v1832_v28 = vpop.f32.mrf.mxu0  ;;  %v2783_v0 = vmul.f32 %v5620_v15, %v4010_v40  ;;  %v2779_v36 = vmul.f32 %v5602_v32, %v4114_v47  ;;  %v2786_v15 = vmul.f32 %v5628_v41, %v4065_v37 }
 0x201   :  { %2730 = vmatpush2.bf16.msra.mxu1 %v6702_v45  ;;  %2693 = vmatmul.mubr.bf16.vlgmr.msra.gmra.mxu0 %v5670_v17  ;;  %v2795_v45 = vmul.f32 %v1826_v12, %v4114_v47  ;;  %v2799_v50 = vmul.f32 %v1832_v28, %v4010_v40  ;;  %v5702_v12 = vmul.f32 %v5501_v49, %v4114_v47 }
 0x202   :  { %2731 = vmatprep.subr.bf16.mxu1 %v2624_v56  ;;  %2966 = vmatprep.mubr.bf16.mxu0 %v6703_v26  ;;  %v5686_v35 = vpop.f32.mrf.mxu1  ;;  %v1834_v43 = vpop.f32.mrf.mxu0  ;;  %v2794_v28 = vmul.f32 %v1824_v42, %v4158_v4  ;;  %v5717_v49 = vmul.f32 %v5570_v7, %v4156_v3  ;;  %v2790_v42 = vmul.f32 %v1820_v9, %v4156_v3 }
 0x203   :  { %v2802_v8 = vmul.f32 %v1834_v43, %v4065_v37 }
 0x204   :  { %v2027_v18 = vpop.f32.mrf.mxu1  ;;  %v1836_v29 = vpop.f32.mrf.mxu0 }
 0x205   :  { %2732 = vmatpush2.bf16.msra.mxu1 %v6706_v25  ;;  %v2803_v56 = vmul.f32 %v1836_v29, %v4012_v48  ;;  %v2898_v43 = vpack.c.bf16 %v2802_v8, %v2798_v59  ;;  %v5721_v8 = vmul.f32 %v5589_v38, %v4158_v4  ;;  %v2894_v38 = vpack.c.bf16 %v2794_v28, %v2790_v42 }
 0x206   :  { %v2031_v54 = vpop.f32.mrf.mxu1  ;;  %v1840_v1 = vpop.f32.mrf.mxu0  ;;  %v2797_v59 = vmul.f32 %v2027_v18, %v6607_v34  ;;  %v2771_v18 = vmul.f32 %v5562_v31, %v4012_v48  ;;  %v2775_v28 = vmul.f32 %v5578_v30, %v4105_v53  ;;  %v2789_v30 = vmul.f32 %v5674_v58, %v4042_v20  ;;  %v6759_v31 = vld [vmem:[#allocation31_spill] sm:$0xff] }
 0x207   :  { %v2899_v39 = vpack.c.bf16 %v2803_v56, %v2799_v50  ;;  %v5729_v56 = vmul.f32 %v1840_v1, %v4156_v3  ;;  %v2886_v42 = vpack.c.bf16 %v5721_v8, %v5717_v49  ;;  %v2781_v49 = vmul.f32 %v5640_v6, %v6607_v34 }
 0x208   :  { %2734 = vmatmul.mubr.bf16.vlgmr.msra.gmra.mxu1 %v5670_v17  ;;  %v2033_v29 = vpop.f32.mrf.mxu1  ;;  %v1842_v25 = vpop.f32.mrf.mxu0  ;;  %v2887_v1 = vpack.c.bf16 %v2779_v36, %v2775_v28  ;;  %v2792_v58 = vmul.f32 %v5679_v27, %v4169_v33 }
 0x209   :  { %3007 = vmatprep.mubr.bf16.mxu1 %v6703_v26  ;;  %v2895_v26 = vpack.c.bf16 %v2795_v45, %v2791_v61  ;;  %2934 = vmatprep.subr.bf16.mxu0 %v2899_v39  ;;  %v2891_v45 = vpack.c.bf16 %v2787_v55, %v2783_v0  ;;  %6707 = vst [vmem:[#allocation60_spill] sm:$0xff] %v5729_v56 }
 0x20a   :  { %v2035_v2 = vpop.f32.mrf.mxu1  ;;  %v1844_v50 = vpop.f32.mrf.mxu0  ;;  %2935 = vmatpush1.bf16.msra.mxu0 %v2898_v43  ;;  %v2801_v32 = vmul.f32 %v2033_v29, %v4036_v16  ;;  %v5739_v55 = vmul.f32 %v1842_v25, %v4105_v53  ;;  %v2782_v29 = vmul.f32 %v5611_v22, %v4063_v46  ;;  %v2800_v0 = vmul.f32 %v2031_v54, %v4082_v44 }
 0x20b   :  { %v5732_v7 = vmul.f32 %v1844_v50, %v4158_v4  ;;  %2936 = vmatprep.subr.bf16.mxu0 %v2895_v26  ;;  %v2804_v9 = vmul.f32 %v2035_v2, %v4088_v63  ;;  %v2793_v2 = vmul.f32 %v2023_v23, %v6598_v62  ;;  %v2796_v54 = vmul.f32 %v5686_v35, %v4174_v51 }
 0x20c   :  { %v2037_v61 = vpop.f32.mrf.mxu1  ;;  %v1846_v39 = vpop.f32.mrf.mxu0  ;;  %6709 = vst [vmem:[#allocation68_spill] sm:$0xff] %v5739_v55  ;;  %v2785_v23 = vmul.f32 %v5656_v57, %v4036_v16 }
 0x20d   :  { %6708 = vst [vmem:[#allocation58_spill] sm:$0xff] %v5732_v7  ;;  %v2805_v43 = vmul.f32 %v2037_v61, %v4042_v20  ;;  %v5744_v41 = vmul.f32 %v1846_v39, %v4114_v47  ;;  %v2890_v61 = vpack.c.bf16 %v2786_v15, %v2782_v29  ;;  %v2900_v22 = vpack.c.bf16 %v2804_v9, %v2800_v0  ;;  %v6743_v29 = vld [vmem:[#allocation21_spill] sm:$0xff] }
 0x20e   :  { %v2041_v26 = vpop.f32.mrf.mxu1  ;;  %v1850_v25 = vpop.f32.mrf.mxu0  ;;  %2937 = vmatpush1.bf16.msra.mxu0 %v2894_v38  ;;  %v2897_v8 = vpack.c.bf16 %v2797_v59, %v2793_v2  ;;  %v2788_v15 = vmul.f32 %v5663_v24, %v4088_v63  ;;  %v2893_v24 = vpack.c.bf16 %v2789_v30, %v2785_v23  ;;  %v2896_v27 = vpack.c.bf16 %v2796_v54, %v2792_v58  ;;  %v6720_v58 = vld [vmem:[#allocation9_spill] sm:$0xff] }
 0x20f   :  { %6710 = vst [vmem:[#allocation56_spill] sm:$0xff] %v5744_v41  ;;  %v2901_v50 = vpack.c.bf16 %v2805_v43, %v2801_v32  ;;  %2938 = vmatprep.subr.bf16.mxu0 %v2891_v45  ;;  %v5771_v35 = vmul.f32 %v2041_v26, %v4169_v33  ;;  %v5777_v57 = vmul.f32 %v1850_v25, %v4063_v46 }
 0x210   :  { %v2043_v39 = vpop.f32.mrf.mxu1  ;;  %v1852_v38 = vpop.f32.mrf.mxu0  ;;  %v2766_v25 = vmul.f32 %v5519_v52, %v4063_v46  ;;  %v2883_v2 = vpack.c.bf16 %v2771_v18, %v5707_v10  ;;  %v2759_v54 = vmul.f32 %v5471_v60, %v4105_v53  ;;  %v2780_v18 = vmul.f32 %v5626_v14, %v4174_v51 }
 0x211   :  { %2975 = vmatprep.subr.bf16.mxu1 %v2901_v50  ;;  %6711 = vst [vmem:[#allocation55_spill] sm:$0xff] %v5771_v35  ;;  %6713 = vst [vmem:[#allocation51_spill] sm:$0xff] %v5777_v57  ;;  %v5783_v32 = vmul.f32 %v2043_v39, %v6598_v62  ;;  %v5786_v43 = vmul.f32 %v1852_v38, %v4010_v40  ;;  %v2784_v50 = vmul.f32 %v5649_v19, %v4082_v44  ;;  %v6748_v39 = vld [vmem:[#allocation39_spill] sm:$0xff] }
 0x212   :  { %v2045_v45 = vpop.f32.mrf.mxu1  ;;  %2976 = vmatpush1.bf16.msra.mxu1 %v2900_v22  ;;  %v1854_v36 = vpop.f32.mrf.mxu0  ;;  %2939 = vmatpush1.bf16.msra.mxu0 %v2890_v61  ;;  %v2777_v22 = vmul.f32 %v5615_v11, %v6598_v62  ;;  %v2762_v19 = vmul.f32 %v5480_v13, %v4158_v4  ;;  %v2882_v10 = vpack.c.bf16 %v5711_v5, %v2766_v25  ;;  %v6721_v13 = vld [vmem:[#allocation11_spill] sm:$0xff] }
 0x213   :  { %v5774_v6 = vmul.f32 %v2045_v45, %v4174_v51  ;;  %2977 = vmatprep.subr.bf16.mxu1 %v2897_v8  ;;  %v5780_v59 = vmul.f32 %v1854_v36, %v4065_v37  ;;  %2940 = vmatprep.subr.bf16.mxu0 %v2887_v1  ;;  %6715 = vst [vmem:[#allocation66_spill] sm:$0xff] %v5783_v32  ;;  %6716 = vst [vmem:[#allocation65_spill] sm:$0xff] %v5786_v43 }
 0x214   :  { %v2047_v9 = vpop.f32.mrf.mxu1  ;;  %v1856_v28 = vpop.f32.mrf.mxu0  ;;  %v2879_v11 = vpack.c.bf16 %v5702_v12, %v2759_v54  ;;  %v2773_v23 = vmul.f32 %v5597_v21, %v4042_v20  ;;  %v2889_v8 = vpack.c.bf16 %v2781_v49, %v2777_v22  ;;  %v2758_v45 = vmul.f32 %v6720_v58, %v4156_v3 }
 0x215   :  { %6712 = vst [vmem:[#allocation52_spill] sm:$0xff] %v5774_v6  ;;  %6714 = vst [vmem:[#allocation67_spill] sm:$0xff] %v5780_v59  ;;  %v5791_v0 = vmul.f32 %v2047_v9, %v6607_v34  ;;  %v5796_v1 = vmul.f32 %v1856_v28, %v4012_v48  ;;  %v2776_v5 = vmul.f32 %v6721_v13, %v4169_v33  ;;  %v6726_v28 = vld [vmem:[#allocation12_spill] sm:$0xff] }
 0x216   :  { %v2051_v61 = vpop.f32.mrf.mxu1  ;;  %2978 = vmatpush1.bf16.msra.mxu1 %v2896_v27  ;;  %v5803_v30 = vpop.f32.mrf.mxu0  ;;  %2941 = vmatpush1.bf16.msra.mxu0 %v2886_v42  ;;  %v2892_v42 = vpack.c.bf16 %v2788_v15, %v2784_v50  ;;  %v6722_v15 = vld [vmem:[#allocation15_spill] sm:$0xff]  ;;  %v2878_v49 = vpack.c.bf16 %v2762_v19, %v2758_v45  ;;  %v2772_v25 = vmul.f32 %v6726_v28, %v4088_v63  ;;  %v6729_v19 = vld [vmem:[#allocation16_spill] sm:$0xff] }
 0x217   :  { %6717 = vst [vmem:[#allocation64_spill] sm:$0xff] %v5791_v0  ;;  %6718 = vst [vmem:[#allocation50_spill] sm:$0xff] %v5796_v1  ;;  %2979 = vmatprep.subr.bf16.mxu1 %v2893_v24  ;;  %2942 = vmatprep.subr.bf16.mxu0 %v2883_v2  ;;  %v2769_v24 = vmul.f32 %v6722_v15, %v4036_v16  ;;  %v5832_v12 = vmul.f32 %v2051_v61, %v4082_v44  ;;  %v6725_v27 = vld [vmem:[#allocation19_spill] sm:$0xff]  ;;  %v6732_v45 = vld [vmem:[#allocation20_spill] sm:$0xff] }
 0x218   :  { %6719 = vst [vmem:[#allocation49_spill] sm:$0xff] %v5803_v30  ;;  %v2053_v60 = vpop.f32.mrf.mxu1  ;;  %v5818_v38 = vpop.f32.mrf.mxu0  ;;  %v2765_v9 = vmul.f32 %v6725_v27, %v6607_v34  ;;  %v2888_v2 = vpack.c.bf16 %v2780_v18, %v2776_v5  ;;  %v2764_v13 = vmul.f32 %v6732_v45, %v4174_v51  ;;  %v6734_v15 = vld [vmem:[#allocation10_spill] sm:$0xff]  ;;  %v6740_v45 = vld [vmem:[#allocation35_spill] sm:$0xff] }
 0x219   :  { %6723 = vst [vmem:[#allocation62_spill] sm:$0xff] %v5832_v12  ;;  %v2885_v22 = vpack.c.bf16 %v2773_v23, %v2769_v24  ;;  %v5844_v61 = vmul.f32 %v2053_v60, %v4036_v16  ;;  %v6731_v23 = vld [vmem:[#allocation7_spill] sm:$0xff]  ;;  %v6735_v24 = vld [vmem:[#allocation14_spill] sm:$0xff]  ;;  %v6758_v60 = vld [vmem:[#allocation13_spill] sm:$0xff] }
 0x21a   :  { %v2055_v36 = vpop.f32.mrf.mxu1  ;;  %2980 = vmatpush1.bf16.msra.mxu1 %v2892_v42  ;;  %v5827_v14 = vpop.f32.mrf.mxu0  ;;  %2943 = vmatpush1.bf16.msra.mxu0 %v2882_v10  ;;  %v2761_v58 = vmul.f32 %v6731_v23, %v6598_v62  ;;  %v6736_v27 = vpack.c.bf16 %v6734_v15, %v6735_v24  ;;  %v6739_v23 = vld [vmem:[#allocation33_spill] sm:$0xff] }
 0x21b   :  { %v5835_v21 = vmul.f32 %v2055_v36, %v4088_v63  ;;  %2981 = vmatprep.subr.bf16.mxu1 %v2889_v8  ;;  %2944 = vmatprep.subr.bf16.mxu0 %v2879_v11  ;;  %6727 = vst [vmem:[#allocation59_spill] sm:$0xff] %v5844_v61  ;;  %v2768_v11 = vmul.f32 %v6729_v19, %v4082_v44 }
 0x21c   :  { %v2057_v50 = vpop.f32.mrf.mxu1  ;;  %v5841_v54 = vpop.f32.mrf.mxu0 }
 0x21d   :  { %6724 = vst [vmem:[#allocation61_spill] sm:$0xff] %v5835_v21  ;;  %v5849_v42 = vmul.f32 %v2057_v50, %v4042_v20  ;;  %v2884_v5 = vpack.c.bf16 %v2772_v25, %v2768_v11  ;;  %v6741_v25 = vpack.c.bf16 %v6739_v23, %v6740_v45  ;;  %v6742_v11 = vld [vmem:[#allocation18_spill] sm:$0xff]  ;;  %v6750_v23 = vld [vmem:[#allocation23_spill] sm:$0xff] }
 0x21e   :  { %v5853_v8 = vpop.f32.mrf.mxu1  ;;  %2982 = vmatpush1.bf16.msra.mxu1 %v2888_v2  ;;  %v5855_v18 = vpop.f32.mrf.mxu0  ;;  %2945 = vmatpush1.bf16.msra.mxu0 %v2878_v49  ;;  %v2881_v49 = vpack.c.bf16 %v2765_v9, %v2761_v58  ;;  %v6737_v2 = vld [vmem:[#allocation8_spill] sm:$0xff]  ;;  %v6744_v15 = vpack.c.bf16 %v6742_v11, %v6743_v29 }
 0x21f   :  { %6728 = vst [vmem:[#allocation57_spill] sm:$0xff] %v5849_v42  ;;  %6730 = vst [vmem:[#allocation124_spill] sm:$0xff] %v5853_v8  ;;  %2983 = vmatprep.subr.bf16.mxu1 %v2885_v22  ;;  %2946 = vmatprep.subr.bf16.mxu0 %v6736_v27  ;;  %v2760_v50 = vmul.f32 %v6737_v2, %v4169_v33  ;;  %v6747_v2 = vld [vmem:[#allocation22_spill] sm:$0xff]  ;;  %v6756_v11 = vld [vmem:[#allocation28_spill] sm:$0xff] }
 0x220   :  { %v5863_v36 = vpop.f32.mrf.mxu1  ;;  %v5868_v28 = vpop.f32.mrf.mxu0  ;;  %v6749_v10 = vpack.c.bf16 %v6747_v2, %v6748_v39  ;;  %v6760_v39 = vpack.c.bf16 %v6758_v60, %v6759_v31 }
 0x221   :  { %6733 = vst [vmem:[#allocation123_spill] sm:$0xff] %v5863_v36  ;;  %v2880_v24 = vpack.c.bf16 %v2764_v13, %v2760_v50 }
 0x222   :  { %v5872_v19 = vpop.f32.mrf.mxu1  ;;  %2984 = vmatpush1.bf16.msra.mxu1 %v2884_v5  ;;  %v5874_v22 = vpop.f32.mrf.mxu0  ;;  %2947 = vmatpush1.bf16.msra.mxu0 %v6741_v25  ;;  %v6755_v25 = vld [vmem:[#allocation27_spill] sm:$0xff] }
 0x223   :  { %6738 = vst [vmem:[#allocation120_spill] sm:$0xff] %v5872_v19  ;;  %2985 = vmatprep.subr.bf16.mxu1 %v2881_v49  ;;  %2948 = vmatprep.subr.bf16.mxu0 %v6744_v15  ;;  %v6751_v49 = vld [vmem:[#allocation25_spill] sm:$0xff]  ;;  %v6757_v15 = vpack.c.bf16 %v6755_v25, %v6756_v11 }
 0x224   :  { %v5882_v27 = vpop.f32.mrf.mxu1  ;;  %v5884_v9 = vpop.f32.mrf.mxu0  ;;  %v6752_v45 = vpack.c.bf16 %v6750_v23, %v6751_v49  ;;  %v6762_v49 = vld [vmem:[#allocation36_spill] sm:$0xff] }
 0x225   :  { %6745 = vst [vmem:[#allocation118_spill] sm:$0xff] %v5882_v27 }
 0x226   :  { %v5886_v58 = vpop.f32.mrf.mxu1  ;;  %2986 = vmatpush1.bf16.msra.mxu1 %v2880_v24  ;;  %v5888_v5 = vpop.f32.mrf.mxu0  ;;  %2949 = vmatpush1.bf16.msra.mxu0 %v6749_v10 }
 0x227   :  { %6746 = vst [vmem:[#allocation54_spill] sm:$0xff] %v5886_v58  ;;  %2987 = vmatprep.subr.bf16.mxu1 %v6752_v45  ;;  %v6763_v45 = vld [vmem:[#allocation17_spill] sm:$0xff] }
 0x228   :  { %v5896_v29 = vpop.f32.mrf.mxu1  ;;  %v5898_v13 = vpop.f32.mrf.mxu0  ;;  %v6764_v26 = vpack.c.bf16 %v6762_v49, %v6763_v45 }
 0x229   :  { %6753 = vst [vmem:[#allocation53_spill] sm:$0xff] %v5896_v29 }
 0x22a   :  { %v5900_v50 = vpop.f32.mrf.mxu1  ;;  %2988 = vmatpush1.bf16.msra.mxu1 %v6757_v15  ;;  %v5905_v24 = vpop.f32.mrf.mxu0 }
 0x22b   :  { %6754 = vst [vmem:[#allocation116_spill] sm:$0xff] %v5900_v50  ;;  %2989 = vmatprep.subr.bf16.mxu1 %v6760_v39 }
 0x22c   :  { %v5910_v10 = vpop.f32.mrf.mxu1  ;;  %v1886_v2 = vpop.f32.mrf.mxu0 }
 0x22e   :  { %v5912_v23 = vpop.f32.mrf.mxu1  ;;  %2990 = vmatpush1.bf16.msra.mxu1 %v6764_v26  ;;  %v1890_v52 = vpop.f32.mrf.mxu0 }
 0x22f   :  { %6761 = vst [vmem:[#allocation115_spill] sm:$0xff] %v5912_v23 }
 0x230   :  { %v5917_v35 = vpop.f32.mrf.mxu1  ;;  %v1892_v25 = vpop.f32.mrf.mxu0 }
 0x232   :  { %v5919_v11 = vpop.f32.mrf.mxu1  ;;  %v1894_v15 = vpop.f32.mrf.mxu0 }
 0x234   :  { %v5921_v6 = vpop.f32.mrf.mxu1  ;;  %v1896_v31 = vpop.f32.mrf.mxu0 }
 0x236   :  { %v5923_v60 = vpop.f32.mrf.mxu1  ;;  %v1900_v39 = vpop.f32.mrf.mxu0 }
 0x238   :  { %v5925_v32 = vpop.f32.mrf.mxu1  ;;  %v1902_v0 = vpop.f32.mrf.mxu0 }
 0x239   :  { %v2855_v58 = vmul.f32 %v1902_v0, %v4105_v53  ;;  %v2843_v0 = vmul.f32 %v1886_v2, %v4114_v47 }
 0x23a   :  { %v5927_v12 = vpop.f32.mrf.mxu1  ;;  %v1904_v49 = vpop.f32.mrf.mxu0 }
 0x23b   :  { %v2858_v50 = vmul.f32 %v1904_v49, %v4158_v4 }
 0x23c   :  { %v2097_v26 = vpop.f32.mrf.mxu1  ;;  %v1906_v45 = vpop.f32.mrf.mxu0 }
 0x23d   :  { %v2859_v59 = vmul.f32 %v1906_v45, %v4114_v47  ;;  %v2851_v45 = vmul.f32 %v1896_v31, %v4012_v48 }
 0x23e   :  { %v2101_v21 = vpop.f32.mrf.mxu1  ;;  %v1910_v17 = vpop.f32.mrf.mxu0 }
 0x23f   :  { %v2862_v43 = vmul.f32 %v1910_v17, %v4063_v46  ;;  %v2927_v30 = vpack.c.bf16 %v2859_v59, %v2855_v58 }
 0x240   :  { %v2103_v61 = vpop.f32.mrf.mxu1  ;;  %v1912_v42 = vpop.f32.mrf.mxu0 }
 0x241   :  { %v2863_v8 = vmul.f32 %v1912_v42, %v4010_v40 }
 0x242   :  { %v2105_v56 = vpop.f32.mrf.mxu1  ;;  %v1914_v7 = vpop.f32.mrf.mxu0 }
 0x243   :  { %v2866_v41 = vmul.f32 %v1914_v7, %v4065_v37 }
 0x244   :  { %v2107_v55 = vpop.f32.mrf.mxu1  ;;  %v1916_v57 = vpop.f32.mrf.mxu0 }
 0x245   :  { %v2867_v19 = vmul.f32 %v1916_v57, %v4012_v48  ;;  %v2930_v23 = vpack.c.bf16 %v2866_v41, %v2862_v43  ;;  %v2854_v57 = vmul.f32 %v1900_v39, %v4156_v3  ;;  %v2861_v59 = vmul.f32 %v2107_v55, %v6607_v34 }
 0x246   :  { %v2111_v1 = vpop.f32.mrf.mxu1  ;;  %v5934_v36 = vpop.f32.mrf.mxu0  ;;  %v2842_v55 = vmul.f32 %v5905_v24, %v4158_v4  ;;  %v2856_v24 = vmul.f32 %v2101_v21, %v4169_v33 }
 0x247   :  { %6765 = vst [vmem:[#allocation112_spill] sm:$0xff] %v5934_v36  ;;  %v2931_v27 = vpack.c.bf16 %v2867_v19, %v2863_v8  ;;  %v2847_v36 = vmul.f32 %v1892_v25, %v4010_v40  ;;  %v2850_v8 = vmul.f32 %v1894_v15, %v4065_v37  ;;  %v2926_v19 = vpack.c.bf16 %v2858_v50, %v2854_v57 }
 0x248   :  { %v2113_v29 = vpop.f32.mrf.mxu1  ;;  %v5938_v7 = vpop.f32.mrf.mxu0  ;;  %v2839_v50 = vmul.f32 %v5898_v13, %v4105_v53  ;;  %v2835_v57 = vmul.f32 %v5884_v9, %v4012_v48  ;;  %v2853_v13 = vmul.f32 %v2097_v26, %v4042_v20  ;;  %v2849_v48 = vmul.f32 %v5925_v32, %v4036_v16 }
 0x249   :  { %2950 = vmatprep.subr.bf16.mxu0 %v2931_v27  ;;  %v2923_v31 = vpack.c.bf16 %v2851_v45, %v2847_v36  ;;  %v2865_v27 = vmul.f32 %v2113_v29, %v4036_v16  ;;  %v2857_v36 = vmul.f32 %v2103_v61, %v6598_v62  ;;  %v2834_v9 = vmul.f32 %v5874_v22, %v4065_v37 }
 0x24a   :  { %v2115_v42 = vpop.f32.mrf.mxu1  ;;  %2951 = vmatpush2.bf16.msra.mxu0 %v2930_v23  ;;  %v1924_v17 = vpop.f32.mrf.mxu0  ;;  %v2846_v23 = vmul.f32 %v1890_v52, %v4063_v46  ;;  %v2860_v52 = vmul.f32 %v2105_v56, %v4174_v51  ;;  %v2925_v32 = vpack.c.bf16 %v2853_v13, %v2849_v48  ;;  %v2848_v37 = vmul.f32 %v5923_v60, %v4082_v44 }
 0x24b   :  { %2952 = vmatprep.subr.bf16.mxu0 %v2927_v30  ;;  %v2868_v41 = vmul.f32 %v2115_v42, %v4088_v63  ;;  %v2864_v30 = vmul.f32 %v2111_v1, %v4082_v44  ;;  %v2919_v42 = vpack.c.bf16 %v2843_v0, %v2839_v50  ;;  %v2929_v61 = vpack.c.bf16 %v2861_v59, %v2857_v36  ;;  %v6770_v36 = vld [vmem:[#allocation118_spill] sm:$0xff] }
 0x24c   :  { %v2117_v43 = vpop.f32.mrf.mxu1  ;;  %v1925_v49 = vpop.f32.mrf.mxu0  ;;  %v2922_v29 = vpack.c.bf16 %v2850_v8, %v2846_v23  ;;  %v2838_v17 = vmul.f32 %v5888_v5, %v4156_v3  ;;  %v2852_v5 = vmul.f32 %v5927_v12, %v4088_v63  ;;  %v2928_v21 = vpack.c.bf16 %v2860_v52, %v2856_v24  ;;  %v6772_v52 = vld [vmem:[#allocation123_spill] sm:$0xff] }
 0x24d   :  { %v2869_v58 = vmul.f32 %v2117_v43, %v4042_v20  ;;  %v2932_v39 = vpack.c.bf16 %v2868_v41, %v2864_v30  ;;  %v2827_v43 = vmul.f32 %v5841_v54, %v4114_v47  ;;  %v2823_v22 = vmul.f32 %v5818_v38, %v4105_v53  ;;  %v6766_v53 = vld [vmem:[#allocation49_spill] sm:$0xff]  ;;  %v6769_v30 = vld [vmem:[#allocation116_spill] sm:$0xff] }
 0x24e   :  { %2953 = vmatpush2.bf16.msra.mxu0 %v2926_v19  ;;  %v5951_v2 = vpop.f32.mrf.mxu1  ;;  %v5953_v25 = vpop.f32.mrf.mxu0  ;;  %v2831_v19 = vmul.f32 %v5868_v28, %v4010_v40  ;;  %v2918_v26 = vpack.c.bf16 %v2842_v55, %v2838_v17  ;;  %v2845_v40 = vmul.f32 %v5921_v6, %v6607_v34  ;;  %v2830_v28 = vmul.f32 %v5855_v18, %v4063_v46  ;;  %v6771_v55 = vld [vmem:[#allocation54_spill] sm:$0xff] }
 0x24f   :  { %v2933_v15 = vpack.c.bf16 %v2869_v58, %v2865_v27  ;;  %2954 = vmatprep.subr.bf16.mxu0 %v2923_v31  ;;  %v2841_v47 = vmul.f32 %v5917_v35, %v6598_v62  ;;  %v2826_v6 = vmul.f32 %v5827_v14, %v4158_v4  ;;  %v2844_v46 = vmul.f32 %v5919_v11, %v4174_v51  ;;  %v6767_v35 = vld [vmem:[#allocation115_spill] sm:$0xff]  ;;  %v6768_v14 = vld [vmem:[#allocation53_spill] sm:$0xff] }
 0x250   :  { %v5961_v1 = vpop.f32.mrf.mxu1  ;;  %v5963_v45 = vpop.f32.mrf.mxu0  ;;  %v2915_v49 = vpack.c.bf16 %v2835_v57, %v2831_v19  ;;  %v2914_v54 = vpack.c.bf16 %v2834_v9, %v2830_v28  ;;  %v2924_v18 = vpack.c.bf16 %v2852_v5, %v2848_v37  ;;  %v2911_v31 = vpack.c.bf16 %v2827_v43, %v2823_v22  ;;  %v6774_v57 = vld [vmem:[#allocation65_spill] sm:$0xff]  ;;  %v6782_v19 = vld [vmem:[#allocation68_spill] sm:$0xff]  ;;  %v6796_v37 = vld [vmem:[#allocation66_spill] sm:$0xff] }
 0x251   :  { %2991 = vmatprep.subr.bf16.mxu1 %v2933_v15  ;;  %v2837_v59 = vmul.f32 %v5910_v10, %v4042_v20  ;;  %v2921_v27 = vpack.c.bf16 %v2845_v40, %v2841_v47  ;;  %v2822_v38 = vmul.f32 %v6766_v53, %v4156_v3  ;;  %v2840_v58 = vmul.f32 %v6767_v35, %v4169_v33  ;;  %v6785_v5 = vld [vmem:[#allocation60_spill] sm:$0xff]  ;;  %v6791_v43 = vld [vmem:[#allocation61_spill] sm:$0xff] }
 0x252   :  { %2992 = vmatpush2.bf16.msra.mxu1 %v2932_v39  ;;  %2955 = vmatpush2.bf16.msra.mxu0 %v2922_v29  ;;  %v2125_v56 = vpop.f32.mrf.mxu1  ;;  %v2179_v8 = vpop.f32.mrf.mxu0  ;;  %v2833_v23 = vmul.f32 %v6768_v14, %v4036_v16  ;;  %v2836_v50 = vmul.f32 %v6769_v30, %v4088_v63  ;;  %v2829_v3 = vmul.f32 %v6770_v36, %v6607_v34  ;;  %v6773_v39 = vld [vmem:[#allocation50_spill] sm:$0xff]  ;;  %v6776_v63 = vld [vmem:[#allocation120_spill] sm:$0xff] }
 0x253   :  { %2993 = vmatprep.subr.bf16.mxu1 %v2929_v61  ;;  %2956 = vmatprep.subr.bf16.mxu0 %v2919_v42  ;;  %v2910_v11 = vpack.c.bf16 %v2826_v6, %v2822_v38  ;;  %v2920_v20 = vpack.c.bf16 %v2844_v46, %v2840_v58  ;;  %v2832_v29 = vmul.f32 %v6771_v55, %v4082_v44  ;;  %v6777_v34 = vld [vmem:[#allocation124_spill] sm:$0xff]  ;;  %v6778_v44 = vld [vmem:[#allocation67_spill] sm:$0xff] }
 0x254   :  { %v2126_v0 = vpop.f32.mrf.mxu1  ;;  %v2180_v41 = vpop.f32.mrf.mxu0  ;;  %v2917_v15 = vpack.c.bf16 %v2837_v59, %v2833_v23  ;;  %v2825_v16 = vmul.f32 %v6772_v52, %v6598_v62  ;;  %v6775_v42 = vpack.c.bf16 %v6773_v39, %v6774_v57  ;;  %v2828_v13 = vmul.f32 %v6776_v63, %v4174_v51  ;;  %v6779_v56 = vld [vmem:[#allocation51_spill] sm:$0xff]  ;;  %v6781_v62 = vld [vmem:[#allocation56_spill] sm:$0xff] }
 0x255   :  { %v2916_v61 = vpack.c.bf16 %v2836_v50, %v2832_v29  ;;  %v2824_v24 = vmul.f32 %v6777_v34, %v4169_v33  ;;  %v6780_v8 = vpack.c.bf16 %v6778_v44, %v6779_v56  ;;  %v6783_v48 = vpack.c.bf16 %v6781_v62, %v6782_v19  ;;  %v6788_v0 = vld [vmem:[#allocation59_spill] sm:$0xff]  ;;  %v6795_v28 = vld [vmem:[#allocation64_spill] sm:$0xff] }
 0x256   :  { %2994 = vmatpush2.bf16.msra.mxu1 %v2928_v21  ;;  %2957 = vmatpush2.bf16.msra.mxu0 %v2918_v26  ;;  %v2216_v12 = vpop.f32.mrf.mxu1  ;;  %v2913_v17 = vpack.c.bf16 %v2829_v3, %v2825_v16  ;;  %v6784_v26 = vld [vmem:[#allocation58_spill] sm:$0xff]  ;;  %v6787_v21 = vld [vmem:[#allocation57_spill] sm:$0xff]  ;;  %v6790_v33 = vld [vmem:[#allocation63_spill] sm:$0xff]  ;;  %v6797_v22 = vpack.c.bf16 %v6795_v28, %v6796_v37 }
 0x257   :  { %2995 = vmatprep.subr.bf16.mxu1 %v2925_v32  ;;  %2958 = vmatprep.subr.bf16.mxu0 %v2915_v49  ;;  %v2912_v9 = vpack.c.bf16 %v2828_v13, %v2824_v24  ;;  %v6786_v51 = vpack.c.bf16 %v6784_v26, %v6785_v5  ;;  %v6789_v41 = vpack.c.bf16 %v6787_v21, %v6788_v0  ;;  %v6792_v49 = vld [vmem:[#allocation62_spill] sm:$0xff]  ;;  %v6794_v32 = vmov 0   ;;  %v6798_v47 = vld [vmem:[#allocation52_spill] sm:$0xff]  ;;  %v6799_v6 = vld [vmem:[#allocation55_spill] sm:$0xff] }
 0x258   :  { %v2218_v60 = vpop.f32.mrf.mxu1  ;;  %v6793_v40 = vpack.c.bf16 %v6791_v43, %v6792_v49  ;;  %v6801_v30 = vld [vmem:[#allocation112_spill] sm:$0xff]  ;;  %v3028_v5 = vld [vmem:[%s6073_s8] sm:$0x3]  ;;  %s3465_s8 = smov [#allocation2]  }
 0x259   :  { %s3150_s0 = sshll.u32 %s3465_s8, 4  ;;  %s3151_s0 = int_to_ptr.vmem [resolvable:$true] %s3150_s0 }
 0x25a   :  { %2996 = vmatpush2.bf16.msra.mxu1 %v2924_v18  ;;  %2959 = vmatpush2.bf16.msra.mxu0 %v2914_v54  ;;  %v2220_v4 = vpop.f32.mrf.mxu1  ;;  %v6800_v54 = vpack.c.bf16 %v6798_v47, %v6799_v6  ;;  %s3441_s2 = scalar_lea.vmem %s3151_s0, 256  ;;  %p3446_p1 = scmp.lt.s32.totalorder %s3151_s0, %s3151_s0 }
 0x25b   :  { %2997 = vmatprep.subr.bf16.mxu1 %v2921_v27  ;;  %2960 = vmatprep.subr.bf16.mxu0 %v2911_v31  ;;  %p3442_p0 = scmp.ne.s32.totalorder %s3151_s0, %s3441_s2  ;;  %p3447_p2 = scmp.lt.s32.totalorder %s3441_s2, %s3441_s2 }
 0x25c   :  { %v2221_v10 = vpop.f32.mrf.mxu1 }
 0x25d   :  { %p3448_p3 = por %p3447_p2, %p3446_p1 }
 0x25e   :  { %2998 = vmatpush2.bf16.msra.mxu1 %v2920_v20  ;;  %2961 = vmatpush2.bf16.msra.mxu0 %v2910_v11 }
 0x25f   :  { %2999 = vmatprep.subr.bf16.mxu1 %v2917_v15  ;;  %2962 = vmatprep.subr.bf16.mxu0 %v6775_v42  ;;  %v6802_v42 = vld [vmem:[#allocation24_spill] sm:$0xff]  ;;  %p3449_p4 = pnand %p3448_p3, %p3442_p0 }
 0x262   :  { %3000 = vmatpush2.bf16.msra.mxu1 %v2916_v61  ;;  %2963 = vmatpush2.bf16.msra.mxu0 %v6780_v8 }
 0x263   :  { %3001 = vmatprep.subr.bf16.mxu1 %v2913_v17  ;;  %2964 = vmatprep.subr.bf16.mxu0 %v6783_v48  ;;  %v6803_v17 = vld [vmem:[#allocation42_spill] sm:$0xff]  ;;  %v6805_v48 = vld [vmem:[#allocation40_spill] sm:$0xff] }
 0x266   :  { %3002 = vmatpush2.bf16.msra.mxu1 %v2912_v9  ;;  %2965 = vmatpush2.bf16.msra.mxu0 %v6786_v51 }
 0x267   :  { %3003 = vmatprep.subr.bf16.mxu1 %v6789_v41 }
 0x269   :  { %2967 = vmatmul.mubr.bf16.vlgmr.msra.gmra.mxu0 %v6790_v33 }
 0x26a   :  { %3004 = vmatpush2.bf16.msra.mxu1 %v6793_v40  ;;  %3084 = vmatprep.mubr.bf16.mxu0 %v6794_v32 }
 0x26b   :  { %3005 = vmatprep.subr.bf16.mxu1 %v6797_v22 }
 0x26e   :  { %3006 = vmatpush2.bf16.msra.mxu1 %v6800_v54 }
 0x271   :  { %3008 = vmatmul.mubr.bf16.vlgmr.msra.gmra.mxu1 %v6790_v33 }
 0x272   :  { %3125 = vmatprep.mubr.bf16.mxu1 %v6794_v32 }
 0x280   :  { %v2412_v46 = vpop.f32.mrf.mxu0 }
 0x281   :  { %v3016_v18 = vmul.f32 %v2412_v46, %v5953_v25 }
 0x282   :  { %v2414_v31 = vpop.f32.mrf.mxu0 }
 0x283   :  { %v3017_v59 = vmul.f32 %v2414_v31, %v5963_v45 }
 0x284   :  { %v2416_v27 = vpop.f32.mrf.mxu0 }
 0x286   :  { %v2417_v53 = vpop.f32.mrf.mxu0  ;;  %v2453_v38 = vpop.f32.mrf.mxu1 }
 0x287   :  { %v3018_v35 = vmul.f32 %v2453_v38, %v2216_v12 }
 0x288   :  { %v2455_v58 = vpop.f32.mrf.mxu1 }
 0x289   :  { %v3019_v4 = vmul.f32 %v2455_v58, %v2218_v60 }
 0x28a   :  { %v2457_v14 = vpop.f32.mrf.mxu1 }
 0x28c   :  { %v2458_v23 = vpop.f32.mrf.mxu1 }
 0x2c1   :  { %v2694_v11 = vpop.f32.mrf.mxu0 }
 0x2c2   :  { %v3020_v50 = vmul.f32 %v2694_v11, %v6801_v30 }
 0x2c3   :  { %v2696_v20 = vpop.f32.mrf.mxu0 }
 0x2c4   :  { %v3029_v10 = vpack.c.bf16 %v3020_v50, %v3016_v18  ;;  %v3021_v36 = vmul.f32 %v2696_v20, %v5938_v7 }
 0x2c5   :  { %v2698_v3 = vpop.f32.mrf.mxu0 }
 0x2c6   :  { %v3030_v25 = vpack.c.bf16 %v3021_v36, %v3017_v59 }
 0x2c7   :  { %v2699_v15 = vpop.f32.mrf.mxu0 }
 0x2c8   :  { %v2735_v55 = vpop.f32.mrf.mxu1 }
 0x2c9   :  { %v3022_v45 = vmul.f32 %v2735_v55, %v5951_v2 }
 0x2ca   :  { %v2737_v29 = vpop.f32.mrf.mxu1 }
 0x2cb   :  { %v3031_v52 = vpack.c.bf16 %v3022_v45, %v3018_v35  ;;  %v3023_v12 = vmul.f32 %v2737_v29, %v5961_v1  ;;  %v6804_v1 = vld [vmem:[#allocation41_spill] sm:$0xff] }
 0x2cc   :  { %v2739_v60 = vpop.f32.mrf.mxu1 }
 0x2cd   :  { %v3032_v16 = vpack.c.bf16 %v3023_v12, %v3019_v4 }
 0x2ce   :  { %v2740_v39 = vpop.f32.mrf.mxu1 }
 0x329   :  { %v2968_v57 = vpop.f32.mrf.mxu0 }
 0x32a   :  { %v3024_v63 = vmul.f32 %v2968_v57, %v6802_v42 }
 0x32b   :  { %v2970_v13 = vpop.f32.mrf.mxu0 }
 0x32c   :  { %v3033_v61 = vpack.c.bf16 %v3024_v63, %v3024_v63  ;;  %v3025_v7 = vmul.f32 %v2970_v13, %v6803_v17 }
 0x32d   :  { %v2972_v34 = vpop.f32.mrf.mxu0 }
 0x32e   :  { %v3034_v24 = vpack.c.bf16 %v3025_v7, %v3025_v7  ;;  %v3041_v56 = vsel %vm1713_vm1, %v3033_v61, 0 }
 0x32f   :  { %v2973_v44 = vpop.f32.mrf.mxu0 }
 0x330   :  { %3378 = vmatprep.subr.msk.bf16.mxu0 %vm1713_vm1, %v3034_v24 }
 0x331   :  { %v3009_v2 = vpop.f32.mrf.mxu1  ;;  %3065 = vmatpush1.bf16.msra.mxu0 %v3041_v56 }
 0x332   :  { %v3026_v8 = vmul.f32 %v3009_v2, %v6804_v1  ;;  %3066 = vmatprep.subr.bf16.mxu0 %v3030_v25 }
 0x333   :  { %v3011_v62 = vpop.f32.mrf.mxu1 }
 0x334   :  { %v3035_v19 = vpack.c.bf16 %v3026_v8, %v3026_v8  ;;  %v3027_v9 = vmul.f32 %v3011_v62, %v6805_v48 }
 0x335   :  { %v3013_v26 = vpop.f32.mrf.mxu1  ;;  %3067 = vmatpush1.bf16.msra.mxu0 %v3029_v10 }
 0x336   :  { %v3036_v51 = vpack.c.bf16 %v3027_v9, %v3027_v9  ;;  %v3047_v0 = vsel %vm1713_vm1, %v3035_v19, 0 }
 0x337   :  { %v3014_v21 = vpop.f32.mrf.mxu1 }
 0x338   :  { %3380 = vmatprep.subr.msk.bf16.mxu1 %vm1713_vm1, %v3036_v51  ;;  %3379 = vmatmul.mubr.msk.bf16.vlgmr.msra.gmra.mxu0 %vm1661_vm2, %v3028_v5 }
 0x339   :  { %3106 = vmatpush1.bf16.msra.mxu1 %v3047_v0 }
 0x33a   :  { %3107 = vmatprep.subr.bf16.mxu1 %v3032_v16 }
 0x33d   :  { %3108 = vmatpush1.bf16.msra.mxu1 %v3031_v52 }
 0x340   :  { %3381 = vmatmul.mubr.msk.bf16.vlgmr.msra.gmra.mxu1 %vm1661_vm2, %v3028_v5 }
 0x3f8   :  { %v3086_v41 = vpop.f32.mrf.mxu0 }
 0x3fa   :  { %v3088_v33 = vpop.f32.mrf.mxu0 }
 0x3fb   :  { %v3138_v43 = vcombine.low %v3086_v41, %v3088_v33 }
 0x3fc   :  { %v3090_v49 = vpop.f32.mrf.mxu0 }
 0x3fd   :  { %3142 = vst [vmem:[#allocation2] sm:$0xff] %v3138_v43 }
 0x3fe   :  { %v3091_v40 = vpop.f32.mrf.mxu0 }
 0x400   :  { %v3127_v32 = vpop.f32.mrf.mxu1 }
 0x402   :  { %v3129_v28 = vpop.f32.mrf.mxu1 }
 0x403   :  { %v3139_v37 = vcombine.low %v3127_v32, %v3129_v28 }
 0x404   :  { %v3131_v22 = vpop.f32.mrf.mxu1 }
 0x405   :  { %3143 = vst [vmem:[#allocation2 + $0x8] sm:$0xff] %v3139_v37 }
 0x406   :  { %v3132_v47 = vpop.f32.mrf.mxu1 }
 0x407   :  { %3452 = shalt.err (!%p3449_p4)
}
 0x408   :  { %3153 = dma.vmem_to_hbm [thread:$0]  %s3151_s0, 256, %s6074_s9, [#allocation3]  }
 0x409   :  { %3461 = dma.done.wait [#allocation3], 256  }
 0x40a   :  { %3462 = vsyncadd [#allocation3], 4294967040 }
 0x40b   :  { %3157 = vsyncpa [#allocation3], 1 }

</bundles_post_ra>
